<compile_context>
chip_gen: v6e
topology: v6e:2x2x1
jax: 0.10.0
libtpu: 0.0.40
codegen_flags: <defaults>
</compile_context>

<pallas_src>
import functools

import jax
import jax.numpy as jnp
from jax.experimental import pallas as pl
from jax.experimental.pallas import tpu as pltpu


def _iaff_kernel(x_ref, r_ref, w1_ref, w2_ref, b_ref, o_ref, *, inter, batch_tile):
    """Block shapes: x/r/o (batch_tile, C, S); w1 (3, Ci, C); w2 (3, C, Ci); b (3, Ci+C, 1).

    Branch order along the packed leading axis: [local_att, global_att, local_att2].
    """
    Ci = inter
    w1 = w1_ref[...]                        # (3, Ci, C)   folded conv1 weights
    w2 = w2_ref[...]                        # (3, C,  Ci)  folded conv2 weights
    bb = b_ref[...].astype(jnp.float32)     # (3, Ci+C, 1) folded biases [b1; b2]

    def branch(inp, i):
        # 1x1 conv (+ folded BN), weights-on-left:  (Cout, Cin) @ (Cin, S')
        h = jnp.dot(w1[i], inp, preferred_element_type=jnp.float32) + bb[i, :Ci]
        h = jnp.maximum(h, 0.0)
        return jnp.dot(w2[i], h, preferred_element_type=jnp.float32) + bb[i, Ci:]

    for b in range(batch_tile):             # small static unroll over samples in the block
        x = x_ref[b].astype(jnp.float32)    # (C, S)
        r = r_ref[b].astype(jnp.float32)

        # ---- first iteration ----
        xa = x + r
        xl = branch(xa, 0)                                        # local_att        (C, S)
        xg = branch(jnp.mean(xa, axis=-1, keepdims=True), 1)      # global_att       (C, 1)
        wei = jax.nn.sigmoid(xl + xg)
        xi = r + (x - r) * wei                                    # == x*wei + r*(1-wei)

        # ---- second iteration (local_att2 + reused global_att, as in the PyTorch code) ----
        xl2 = branch(xi, 2)                                       # local_att2
        xg2 = branch(jnp.mean(xi, axis=-1, keepdims=True), 1)     # global_att (reused)
        wei2 = jax.nn.sigmoid(xl2 + xg2)

        o_ref[b] = (r + (x - r) * wei2).astype(o_ref.dtype)


def _fold_bn(w, b, gamma, beta, mean, var, eps=1e-5):
    """Fold eval-mode BatchNorm into a preceding 1x1 conv.

    w: (Cout, Cin)  (PyTorch Conv2d weight with the trailing 1x1 squeezed),
    b: (Cout,).  Returns folded (w', b').
    """
    scale = gamma / jnp.sqrt(var + eps)
    w_f = (w * scale[:, None]).astype(jnp.float32)
    b_f = (b * scale + beta - mean * scale).astype(jnp.float32)
    return w_f, b_f


def iaff_forward(x_nchw, res_nchw, params, *, batch_tile=None, stream_dtype=None):
    """x_nchw, res_nchw: (N, C, H, W).  params: packed folded weights (see make_params).

    stream_dtype: optionally stream activations as e.g. jnp.bfloat16 (v6e/v7x) to halve
    HBM bytes; the kernel upcasts to f32 for the elementwise/accumulation math.
    """
    N, C, H, W = x_nchw.shape
    S = H * W
    Ci = params["w1"].shape[1]

    # NCHW -> (N, C, S): pure reshape of contiguous dims -- no HBM relayout pass.
    x = x_nchw.reshape(N, C, S)
    r = res_nchw.reshape(N, C, S)
    if stream_dtype is not None:
        x = x.astype(stream_dtype)
        r = r.astype(stream_dtype)

    if batch_tile is None:
        # Batch samples per grid step to amortize per-step overhead, but keep >= 2
        # grid steps so a v7x chip can split the batch across its two TensorCores.
        vmem_cap = max(1, (2 * 1024 * 1024) // (C * S * x.dtype.itemsize))
        batch_tile = min(max(1, N // 2), vmem_cap, N)
        while N % batch_tile:
            batch_tile -= 1
    assert N % batch_tile == 0

    grid = (N // batch_tile,)
    data_spec = pl.BlockSpec((batch_tile, C, S), lambda b: (b, 0, 0))
    weight_specs = [pl.BlockSpec(params[k].shape, lambda b: (0, 0, 0))
                    for k in ("w1", "w2", "b")]

    kernel = functools.partial(_iaff_kernel, inter=Ci, batch_tile=batch_tile)

    out = pl.pallas_call(
        kernel,
        out_shape=jax.ShapeDtypeStruct((N, C, S), x.dtype),
        grid_spec=pltpu.PrefetchScalarGridSpec(
            num_scalar_prefetch=0,
            grid=grid,
            in_specs=[data_spec, data_spec] + weight_specs,
            out_specs=data_spec,
        ),
        compiler_params=pltpu.CompilerParams(
            dimension_semantics=("parallel",)),
    )(x, r, params["w1"], params["w2"], params["b"])

    # (N, C, S) -> NCHW: again a free reshape, no transpose.
    return out.reshape(N, C, H, W)


def make_params(key, channels=64, r=4):
    """Deterministic synthetic parameters matching iAFF.__init__ shapes, BN folded & packed.

    Packed layout (branch order: local_att, global_att, local_att2):
      w1: (3, Ci, C)      first  1x1 conv, BN folded (PyTorch (Cout, Cin, 1, 1) squeezed)
      w2: (3, C,  Ci)     second 1x1 conv, BN folded
      b : (3, Ci + C, 1)  [bias1 ; bias2], BN folded
    global_att2 is initialized in the PyTorch module but never used in forward(); omitted.
    """
    inter = channels // r
    ks = iter(jax.random.split(key, 48))

    def conv_w(k, cout, cin):
        return 0.1 * jax.random.normal(k, (cout, cin), jnp.float32)

    def bn(k, c):
        g = 1.0 + 0.05 * jax.random.normal(k, (c,), jnp.float32)
        b = 0.05 * jax.random.normal(jax.random.fold_in(k, 1), (c,), jnp.float32)
        m = 0.02 * jax.random.normal(jax.random.fold_in(k, 2), (c,), jnp.float32)
        v = 1.0 + 0.1 * jnp.abs(jax.random.normal(jax.random.fold_in(k, 3), (c,), jnp.float32))
        return g, b, m, v

    def branch():
        w1 = conv_w(next(ks), inter, channels)
        b1 = 0.05 * jax.random.normal(next(ks), (inter,), jnp.float32)
        bn1 = bn(next(ks), inter)
        w2 = conv_w(next(ks), channels, inter)
        b2 = 0.05 * jax.random.normal(next(ks), (channels,), jnp.float32)
        bn2 = bn(next(ks), channels)
        w1f, b1f = _fold_bn(w1, b1, *bn1)
        w2f, b2f = _fold_bn(w2, b2, *bn2)
        return w1f, b1f, w2f, b2f

    branches = [branch() for _ in range(3)]   # local_att, global_att, local_att2
    W1 = jnp.stack([br[0] for br in branches])
    W2 = jnp.stack([br[2] for br in branches])
    B = jnp.stack([jnp.concatenate([br[1], br[3]])[:, None] for br in branches])
    return {"w1": W1, "w2": W2, "b": B}


def iaff_reference(x, r, p):
    """Pure-JAX reference (same math, same packed params) for sanity checking."""
    N, C, H, W = x.shape
    S = H * W
    Ci = p["w1"].shape[1]
    xk = x.reshape(N, C, S)
    rk = r.reshape(N, C, S)

    def branch(inp, i):                      # inp: (N, C, S')
        h = jnp.einsum("oc,ncs->nos", p["w1"][i], inp) + p["b"][i, :Ci]
        h = jnp.maximum(h, 0.0)
        return jnp.einsum("oc,ncs->nos", p["w2"][i], h) + p["b"][i, Ci:]

    xa = xk + rk
    wei = jax.nn.sigmoid(branch(xa, 0) + branch(xa.mean(-1, keepdims=True), 1))
    xi = xk * wei + rk * (1.0 - wei)
    wei2 = jax.nn.sigmoid(branch(xi, 2) + branch(xi.mean(-1, keepdims=True), 1))
    out = xk * wei2 + rk * (1.0 - wei2)
    return out.reshape(N, C, H, W)


if __name__ == "__main__":
    key = jax.random.PRNGKey(0)
    k_x, k_r, k_p = jax.random.split(key, 3)

    # channels=64, r=4 -> inter_channels=16 (module defaults); H*W = 256 = 2*128 (lane-dense).
    N, C, H, W = 4, 64, 16, 16
    x = jax.random.normal(k_x, (N, C, H, W), jnp.float32)
    residual = jax.random.normal(k_r, (N, C, H, W), jnp.float32)
    params = make_params(k_p, channels=C, r=4)

    out = iaff_forward(x, residual, params)   # auto batch_tile=2 -> grid=(2,), 2 samples/step
    out = jax.block_until_ready(out)

    ref = iaff_reference(x, residual, params)
    assert out.shape == (N, C, H, W)
    assert jnp.allclose(out, ref, atol=1e-4, rtol=1e-4), "mismatch vs reference"

    print("KERNEL_OK")
</pallas_src>

<mosaic_0001>
module attributes {stable_mosaic.version = 11 : i64} {
  func.func @_iaff_kernel(%arg0: i32, %arg1: memref<2x64x256xf32, #tpu.memory_space<vmem>>, %arg2: memref<2x64x256xf32, #tpu.memory_space<vmem>>, %arg3: memref<3x16x64xf32, #tpu.memory_space<vmem>>, %arg4: memref<3x64x16xf32, #tpu.memory_space<vmem>>, %arg5: memref<3x80x1xf32, #tpu.memory_space<vmem>>, %arg6: memref<2x64x256xf32, #tpu.memory_space<vmem>>) attributes {dimension_semantics = [#tpu.dimension_semantics<parallel>], iteration_bounds = array<i64: 2>, scalar_prefetch = 0 : i64, scratch_operands = 0 : i64, tpu.core_type = #tpu.core_type<tc>, window_params = [{transform_indices = @transform_0, window_bounds = array<i64: 2, 64, 256>}, {transform_indices = @transform_1, window_bounds = array<i64: 2, 64, 256>}, {pipeline_mode = #tpu.pipeline_mode<synchronous>, transform_indices = @transform_2, window_bounds = array<i64: 3, 16, 64>}, {pipeline_mode = #tpu.pipeline_mode<synchronous>, transform_indices = @transform_3, window_bounds = array<i64: 3, 64, 16>}, {pipeline_mode = #tpu.pipeline_mode<synchronous>, transform_indices = @transform_4, window_bounds = array<i64: 3, 80, 1>}, {transform_indices = @transform_5, window_bounds = array<i64: 2, 64, 256>}]} {
    %c0 = arith.constant 0 : index
    %c0_0 = arith.constant 0 : index
    %c0_1 = arith.constant 0 : index
    %0 = vector.load %arg3[%c0, %c0_0, %c0_1] : memref<3x16x64xf32, #tpu.memory_space<vmem>>, vector<3x16x64xf32>
    %c0_2 = arith.constant 0 : index
    %c0_3 = arith.constant 0 : index
    %c0_4 = arith.constant 0 : index
    %1 = vector.load %arg4[%c0_2, %c0_3, %c0_4] : memref<3x64x16xf32, #tpu.memory_space<vmem>>, vector<3x64x16xf32>
    %c0_5 = arith.constant 0 : index
    %c0_6 = arith.constant 0 : index
    %c0_7 = arith.constant 0 : index
    %2 = vector.load %arg5[%c0_5, %c0_6, %c0_7] : memref<3x80x1xf32, #tpu.memory_space<vmem>>, vector<3x80x1xf32>
    %c0_8 = arith.constant 0 : index
    %c0_9 = arith.constant 0 : index
    %c0_10 = arith.constant 0 : index
    %3 = vector.load %arg1[%c0_8, %c0_9, %c0_10] : memref<2x64x256xf32, #tpu.memory_space<vmem>>, vector<1x64x256xf32>
    %4 = vector.shape_cast %3 : vector<1x64x256xf32> to vector<64x256xf32>
    %c0_11 = arith.constant 0 : index
    %c0_12 = arith.constant 0 : index
    %c0_13 = arith.constant 0 : index
    %5 = vector.load %arg2[%c0_11, %c0_12, %c0_13] : memref<2x64x256xf32, #tpu.memory_space<vmem>>, vector<1x64x256xf32>
    %6 = vector.shape_cast %5 : vector<1x64x256xf32> to vector<64x256xf32>
    %7 = arith.addf %4, %6 : vector<64x256xf32>
    %8 = vector.extract_strided_slice %0 {offsets = [0, 0, 0], sizes = [1, 16, 64], strides = [1, 1, 1]} : vector<3x16x64xf32> to vector<1x16x64xf32>
    %9 = vector.shape_cast %8 : vector<1x16x64xf32> to vector<16x64xf32>
    %cst = arith.constant dense<0.000000e+00> : vector<16x256xf32>
    %10 = tpu.matmul %9, %7, %cst {dimension_numbers = #tpu.dot_dimension_numbers<[1], [0], [0], [1], [0, 0, 1, 1], [], []>} : vector<16x64xf32>, vector<64x256xf32>, vector<16x256xf32> -> vector<16x256xf32>
    %11 = vector.extract_strided_slice %2 {offsets = [0, 0, 0], sizes = [1, 16, 1], strides = [1, 1, 1]} : vector<3x80x1xf32> to vector<1x16x1xf32>
    %12 = vector.shape_cast %11 : vector<1x16x1xf32> to vector<16x1xf32>
    %13 = vector.broadcast %12 : vector<16x1xf32> to vector<16x256xf32>
    %14 = arith.addf %10, %13 : vector<16x256xf32>
    %cst_14 = arith.constant 0.000000e+00 : f32
    %15 = vector.broadcast %cst_14 : f32 to vector<16x256xf32>
    %16 = arith.maximumf %14, %15 : vector<16x256xf32>
    %17 = vector.extract_strided_slice %1 {offsets = [0, 0, 0], sizes = [1, 64, 16], strides = [1, 1, 1]} : vector<3x64x16xf32> to vector<1x64x16xf32>
    %18 = vector.shape_cast %17 : vector<1x64x16xf32> to vector<64x16xf32>
    %cst_15 = arith.constant dense<0.000000e+00> : vector<64x256xf32>
    %19 = tpu.matmul %18, %16, %cst_15 {dimension_numbers = #tpu.dot_dimension_numbers<[1], [0], [0], [1], [0, 0, 1, 1], [], []>} : vector<64x16xf32>, vector<16x256xf32>, vector<64x256xf32> -> vector<64x256xf32>
    %20 = vector.extract_strided_slice %2 {offsets = [0, 16, 0], sizes = [1, 64, 1], strides = [1, 1, 1]} : vector<3x80x1xf32> to vector<1x64x1xf32>
    %21 = vector.shape_cast %20 : vector<1x64x1xf32> to vector<64x1xf32>
    %22 = vector.broadcast %21 : vector<64x1xf32> to vector<64x256xf32>
    %23 = arith.addf %19, %22 : vector<64x256xf32>
    %cst_16 = arith.constant dense<0.000000e+00> : vector<64xf32>
    %24 = vector.multi_reduction <add>, %7, %cst_16 [1] : vector<64x256xf32> to vector<64xf32>
    %25 = vector.shape_cast %24 : vector<64xf32> to vector<64x1xf32>
    %cst_17 = arith.constant 2.560000e+02 : f32
    %26 = vector.broadcast %cst_17 : f32 to vector<64x1xf32>
    %27 = arith.divf %25, %26 : vector<64x1xf32>
    %28 = vector.extract_strided_slice %0 {offsets = [1, 0, 0], sizes = [1, 16, 64], strides = [1, 1, 1]} : vector<3x16x64xf32> to vector<1x16x64xf32>
    %29 = vector.shape_cast %28 : vector<1x16x64xf32> to vector<16x64xf32>
    %cst_18 = arith.constant dense<0.000000e+00> : vector<16x1xf32>
    %30 = tpu.matmul %29, %27, %cst_18 {dimension_numbers = #tpu.dot_dimension_numbers<[1], [0], [0], [1], [0, 0, 1, 1], [], []>} : vector<16x64xf32>, vector<64x1xf32>, vector<16x1xf32> -> vector<16x1xf32>
    %31 = vector.extract_strided_slice %2 {offsets = [1, 0, 0], sizes = [1, 16, 1], strides = [1, 1, 1]} : vector<3x80x1xf32> to vector<1x16x1xf32>
    %32 = vector.shape_cast %31 : vector<1x16x1xf32> to vector<16x1xf32>
    %33 = arith.addf %30, %32 : vector<16x1xf32>
    %cst_19 = arith.constant 0.000000e+00 : f32
    %34 = vector.broadcast %cst_19 : f32 to vector<16x1xf32>
    %35 = arith.maximumf %33, %34 : vector<16x1xf32>
    %36 = vector.extract_strided_slice %1 {offsets = [1, 0, 0], sizes = [1, 64, 16], strides = [1, 1, 1]} : vector<3x64x16xf32> to vector<1x64x16xf32>
    %37 = vector.shape_cast %36 : vector<1x64x16xf32> to vector<64x16xf32>
    %cst_20 = arith.constant dense<0.000000e+00> : vector<64x1xf32>
    %38 = tpu.matmul %37, %35, %cst_20 {dimension_numbers = #tpu.dot_dimension_numbers<[1], [0], [0], [1], [0, 0, 1, 1], [], []>} : vector<64x16xf32>, vector<16x1xf32>, vector<64x1xf32> -> vector<64x1xf32>
    %39 = vector.extract_strided_slice %2 {offsets = [1, 16, 0], sizes = [1, 64, 1], strides = [1, 1, 1]} : vector<3x80x1xf32> to vector<1x64x1xf32>
    %40 = vector.shape_cast %39 : vector<1x64x1xf32> to vector<64x1xf32>
    %41 = arith.addf %38, %40 : vector<64x1xf32>
    %42 = vector.broadcast %41 : vector<64x1xf32> to vector<64x256xf32>
    %43 = arith.addf %23, %42 : vector<64x256xf32>
    %44 = arith.negf %43 : vector<64x256xf32>
    %45 = math.exp %44 : vector<64x256xf32>
    %cst_21 = arith.constant 1.000000e+00 : f32
    %46 = vector.broadcast %cst_21 : f32 to vector<64x256xf32>
    %47 = arith.addf %46, %45 : vector<64x256xf32>
    %48 = arith.divf %46, %47 : vector<64x256xf32>
    %49 = arith.subf %4, %6 : vector<64x256xf32>
    %50 = arith.mulf %49, %48 : vector<64x256xf32>
    %51 = arith.addf %6, %50 : vector<64x256xf32>
    %52 = vector.extract_strided_slice %0 {offsets = [2, 0, 0], sizes = [1, 16, 64], strides = [1, 1, 1]} : vector<3x16x64xf32> to vector<1x16x64xf32>
    %53 = vector.shape_cast %52 : vector<1x16x64xf32> to vector<16x64xf32>
    %cst_22 = arith.constant dense<0.000000e+00> : vector<16x256xf32>
    %54 = tpu.matmul %53, %51, %cst_22 {dimension_numbers = #tpu.dot_dimension_numbers<[1], [0], [0], [1], [0, 0, 1, 1], [], []>} : vector<16x64xf32>, vector<64x256xf32>, vector<16x256xf32> -> vector<16x256xf32>
    %55 = vector.extract_strided_slice %2 {offsets = [2, 0, 0], sizes = [1, 16, 1], strides = [1, 1, 1]} : vector<3x80x1xf32> to vector<1x16x1xf32>
    %56 = vector.shape_cast %55 : vector<1x16x1xf32> to vector<16x1xf32>
    %57 = vector.broadcast %56 : vector<16x1xf32> to vector<16x256xf32>
    %58 = arith.addf %54, %57 : vector<16x256xf32>
    %cst_23 = arith.constant 0.000000e+00 : f32
    %59 = vector.broadcast %cst_23 : f32 to vector<16x256xf32>
    %60 = arith.maximumf %58, %59 : vector<16x256xf32>
    %61 = vector.extract_strided_slice %1 {offsets = [2, 0, 0], sizes = [1, 64, 16], strides = [1, 1, 1]} : vector<3x64x16xf32> to vector<1x64x16xf32>
    %62 = vector.shape_cast %61 : vector<1x64x16xf32> to vector<64x16xf32>
    %cst_24 = arith.constant dense<0.000000e+00> : vector<64x256xf32>
    %63 = tpu.matmul %62, %60, %cst_24 {dimension_numbers = #tpu.dot_dimension_numbers<[1], [0], [0], [1], [0, 0, 1, 1], [], []>} : vector<64x16xf32>, vector<16x256xf32>, vector<64x256xf32> -> vector<64x256xf32>
    %64 = vector.extract_strided_slice %2 {offsets = [2, 16, 0], sizes = [1, 64, 1], strides = [1, 1, 1]} : vector<3x80x1xf32> to vector<1x64x1xf32>
    %65 = vector.shape_cast %64 : vector<1x64x1xf32> to vector<64x1xf32>
    %66 = vector.broadcast %65 : vector<64x1xf32> to vector<64x256xf32>
    %67 = arith.addf %63, %66 : vector<64x256xf32>
    %cst_25 = arith.constant dense<0.000000e+00> : vector<64xf32>
    %68 = vector.multi_reduction <add>, %51, %cst_25 [1] : vector<64x256xf32> to vector<64xf32>
    %69 = vector.shape_cast %68 : vector<64xf32> to vector<64x1xf32>
    %cst_26 = arith.constant 2.560000e+02 : f32
    %70 = vector.broadcast %cst_26 : f32 to vector<64x1xf32>
    %71 = arith.divf %69, %70 : vector<64x1xf32>
    %72 = vector.extract_strided_slice %0 {offsets = [1, 0, 0], sizes = [1, 16, 64], strides = [1, 1, 1]} : vector<3x16x64xf32> to vector<1x16x64xf32>
    %73 = vector.shape_cast %72 : vector<1x16x64xf32> to vector<16x64xf32>
    %cst_27 = arith.constant dense<0.000000e+00> : vector<16x1xf32>
    %74 = tpu.matmul %73, %71, %cst_27 {dimension_numbers = #tpu.dot_dimension_numbers<[1], [0], [0], [1], [0, 0, 1, 1], [], []>} : vector<16x64xf32>, vector<64x1xf32>, vector<16x1xf32> -> vector<16x1xf32>
    %75 = vector.extract_strided_slice %2 {offsets = [1, 0, 0], sizes = [1, 16, 1], strides = [1, 1, 1]} : vector<3x80x1xf32> to vector<1x16x1xf32>
    %76 = vector.shape_cast %75 : vector<1x16x1xf32> to vector<16x1xf32>
    %77 = arith.addf %74, %76 : vector<16x1xf32>
    %cst_28 = arith.constant 0.000000e+00 : f32
    %78 = vector.broadcast %cst_28 : f32 to vector<16x1xf32>
    %79 = arith.maximumf %77, %78 : vector<16x1xf32>
    %80 = vector.extract_strided_slice %1 {offsets = [1, 0, 0], sizes = [1, 64, 16], strides = [1, 1, 1]} : vector<3x64x16xf32> to vector<1x64x16xf32>
    %81 = vector.shape_cast %80 : vector<1x64x16xf32> to vector<64x16xf32>
    %cst_29 = arith.constant dense<0.000000e+00> : vector<64x1xf32>
    %82 = tpu.matmul %81, %79, %cst_29 {dimension_numbers = #tpu.dot_dimension_numbers<[1], [0], [0], [1], [0, 0, 1, 1], [], []>} : vector<64x16xf32>, vector<16x1xf32>, vector<64x1xf32> -> vector<64x1xf32>
    %83 = vector.extract_strided_slice %2 {offsets = [1, 16, 0], sizes = [1, 64, 1], strides = [1, 1, 1]} : vector<3x80x1xf32> to vector<1x64x1xf32>
    %84 = vector.shape_cast %83 : vector<1x64x1xf32> to vector<64x1xf32>
    %85 = arith.addf %82, %84 : vector<64x1xf32>
    %86 = vector.broadcast %85 : vector<64x1xf32> to vector<64x256xf32>
    %87 = arith.addf %67, %86 : vector<64x256xf32>
    %88 = arith.negf %87 : vector<64x256xf32>
    %89 = math.exp %88 : vector<64x256xf32>
    %cst_30 = arith.constant 1.000000e+00 : f32
    %90 = vector.broadcast %cst_30 : f32 to vector<64x256xf32>
    %91 = arith.addf %90, %89 : vector<64x256xf32>
    %92 = arith.divf %90, %91 : vector<64x256xf32>
    %93 = arith.subf %4, %6 : vector<64x256xf32>
    %94 = arith.mulf %93, %92 : vector<64x256xf32>
    %95 = arith.addf %6, %94 : vector<64x256xf32>
    %c0_31 = arith.constant 0 : index
    %c0_32 = arith.constant 0 : index
    %c0_33 = arith.constant 0 : index
    %96 = vector.load %arg6[%c0_31, %c0_32, %c0_33] : memref<2x64x256xf32, #tpu.memory_space<vmem>>, vector<1x64x256xf32>
    %97 = vector.shape_cast %96 : vector<1x64x256xf32> to vector<64x256xf32>
    %98 = vector.shape_cast %95 : vector<64x256xf32> to vector<1x64x256xf32>
    tpu.vector_store %arg6[%c0_31, %c0_32, %c0_33], %98 {strides = array<i32>} : memref<2x64x256xf32, #tpu.memory_space<vmem>>, vector<1x64x256xf32>,
    %c1 = arith.constant 1 : index
    %c0_34 = arith.constant 0 : index
    %c0_35 = arith.constant 0 : index
    %99 = vector.load %arg1[%c1, %c0_34, %c0_35] : memref<2x64x256xf32, #tpu.memory_space<vmem>>, vector<1x64x256xf32>
    %100 = vector.shape_cast %99 : vector<1x64x256xf32> to vector<64x256xf32>
    %c1_36 = arith.constant 1 : index
    %c0_37 = arith.constant 0 : index
    %c0_38 = arith.constant 0 : index
    %101 = vector.load %arg2[%c1_36, %c0_37, %c0_38] : memref<2x64x256xf32, #tpu.memory_space<vmem>>, vector<1x64x256xf32>
    %102 = vector.shape_cast %101 : vector<1x64x256xf32> to vector<64x256xf32>
    %103 = arith.addf %100, %102 : vector<64x256xf32>
    %104 = vector.extract_strided_slice %0 {offsets = [0, 0, 0], sizes = [1, 16, 64], strides = [1, 1, 1]} : vector<3x16x64xf32> to vector<1x16x64xf32>
    %105 = vector.shape_cast %104 : vector<1x16x64xf32> to vector<16x64xf32>
    %cst_39 = arith.constant dense<0.000000e+00> : vector<16x256xf32>
    %106 = tpu.matmul %105, %103, %cst_39 {dimension_numbers = #tpu.dot_dimension_numbers<[1], [0], [0], [1], [0, 0, 1, 1], [], []>} : vector<16x64xf32>, vector<64x256xf32>, vector<16x256xf32> -> vector<16x256xf32>
    %107 = vector.extract_strided_slice %2 {offsets = [0, 0, 0], sizes = [1, 16, 1], strides = [1, 1, 1]} : vector<3x80x1xf32> to vector<1x16x1xf32>
    %108 = vector.shape_cast %107 : vector<1x16x1xf32> to vector<16x1xf32>
    %109 = vector.broadcast %108 : vector<16x1xf32> to vector<16x256xf32>
    %110 = arith.addf %106, %109 : vector<16x256xf32>
    %cst_40 = arith.constant 0.000000e+00 : f32
    %111 = vector.broadcast %cst_40 : f32 to vector<16x256xf32>
    %112 = arith.maximumf %110, %111 : vector<16x256xf32>
    %113 = vector.extract_strided_slice %1 {offsets = [0, 0, 0], sizes = [1, 64, 16], strides = [1, 1, 1]} : vector<3x64x16xf32> to vector<1x64x16xf32>
    %114 = vector.shape_cast %113 : vector<1x64x16xf32> to vector<64x16xf32>
    %cst_41 = arith.constant dense<0.000000e+00> : vector<64x256xf32>
    %115 = tpu.matmul %114, %112, %cst_41 {dimension_numbers = #tpu.dot_dimension_numbers<[1], [0], [0], [1], [0, 0, 1, 1], [], []>} : vector<64x16xf32>, vector<16x256xf32>, vector<64x256xf32> -> vector<64x256xf32>
    %116 = vector.extract_strided_slice %2 {offsets = [0, 16, 0], sizes = [1, 64, 1], strides = [1, 1, 1]} : vector<3x80x1xf32> to vector<1x64x1xf32>
    %117 = vector.shape_cast %116 : vector<1x64x1xf32> to vector<64x1xf32>
    %118 = vector.broadcast %117 : vector<64x1xf32> to vector<64x256xf32>
    %119 = arith.addf %115, %118 : vector<64x256xf32>
    %cst_42 = arith.constant dense<0.000000e+00> : vector<64xf32>
    %120 = vector.multi_reduction <add>, %103, %cst_42 [1] : vector<64x256xf32> to vector<64xf32>
    %121 = vector.shape_cast %120 : vector<64xf32> to vector<64x1xf32>
    %cst_43 = arith.constant 2.560000e+02 : f32
    %122 = vector.broadcast %cst_43 : f32 to vector<64x1xf32>
    %123 = arith.divf %121, %122 : vector<64x1xf32>
    %124 = vector.extract_strided_slice %0 {offsets = [1, 0, 0], sizes = [1, 16, 64], strides = [1, 1, 1]} : vector<3x16x64xf32> to vector<1x16x64xf32>
    %125 = vector.shape_cast %124 : vector<1x16x64xf32> to vector<16x64xf32>
    %cst_44 = arith.constant dense<0.000000e+00> : vector<16x1xf32>
    %126 = tpu.matmul %125, %123, %cst_44 {dimension_numbers = #tpu.dot_dimension_numbers<[1], [0], [0], [1], [0, 0, 1, 1], [], []>} : vector<16x64xf32>, vector<64x1xf32>, vector<16x1xf32> -> vector<16x1xf32>
    %127 = vector.extract_strided_slice %2 {offsets = [1, 0, 0], sizes = [1, 16, 1], strides = [1, 1, 1]} : vector<3x80x1xf32> to vector<1x16x1xf32>
    %128 = vector.shape_cast %127 : vector<1x16x1xf32> to vector<16x1xf32>
    %129 = arith.addf %126, %128 : vector<16x1xf32>
    %cst_45 = arith.constant 0.000000e+00 : f32
    %130 = vector.broadcast %cst_45 : f32 to vector<16x1xf32>
    %131 = arith.maximumf %129, %130 : vector<16x1xf32>
    %132 = vector.extract_strided_slice %1 {offsets = [1, 0, 0], sizes = [1, 64, 16], strides = [1, 1, 1]} : vector<3x64x16xf32> to vector<1x64x16xf32>
    %133 = vector.shape_cast %132 : vector<1x64x16xf32> to vector<64x16xf32>
    %cst_46 = arith.constant dense<0.000000e+00> : vector<64x1xf32>
    %134 = tpu.matmul %133, %131, %cst_46 {dimension_numbers = #tpu.dot_dimension_numbers<[1], [0], [0], [1], [0, 0, 1, 1], [], []>} : vector<64x16xf32>, vector<16x1xf32>, vector<64x1xf32> -> vector<64x1xf32>
    %135 = vector.extract_strided_slice %2 {offsets = [1, 16, 0], sizes = [1, 64, 1], strides = [1, 1, 1]} : vector<3x80x1xf32> to vector<1x64x1xf32>
    %136 = vector.shape_cast %135 : vector<1x64x1xf32> to vector<64x1xf32>
    %137 = arith.addf %134, %136 : vector<64x1xf32>
    %138 = vector.broadcast %137 : vector<64x1xf32> to vector<64x256xf32>
    %139 = arith.addf %119, %138 : vector<64x256xf32>
    %140 = arith.negf %139 : vector<64x256xf32>
    %141 = math.exp %140 : vector<64x256xf32>
    %cst_47 = arith.constant 1.000000e+00 : f32
    %142 = vector.broadcast %cst_47 : f32 to vector<64x256xf32>
    %143 = arith.addf %142, %141 : vector<64x256xf32>
    %144 = arith.divf %142, %143 : vector<64x256xf32>
    %145 = arith.subf %100, %102 : vector<64x256xf32>
    %146 = arith.mulf %145, %144 : vector<64x256xf32>
    %147 = arith.addf %102, %146 : vector<64x256xf32>
    %148 = vector.extract_strided_slice %0 {offsets = [2, 0, 0], sizes = [1, 16, 64], strides = [1, 1, 1]} : vector<3x16x64xf32> to vector<1x16x64xf32>
    %149 = vector.shape_cast %148 : vector<1x16x64xf32> to vector<16x64xf32>
    %cst_48 = arith.constant dense<0.000000e+00> : vector<16x256xf32>
    %150 = tpu.matmul %149, %147, %cst_48 {dimension_numbers = #tpu.dot_dimension_numbers<[1], [0], [0], [1], [0, 0, 1, 1], [], []>} : vector<16x64xf32>, vector<64x256xf32>, vector<16x256xf32> -> vector<16x256xf32>
    %151 = vector.extract_strided_slice %2 {offsets = [2, 0, 0], sizes = [1, 16, 1], strides = [1, 1, 1]} : vector<3x80x1xf32> to vector<1x16x1xf32>
    %152 = vector.shape_cast %151 : vector<1x16x1xf32> to vector<16x1xf32>
    %153 = vector.broadcast %152 : vector<16x1xf32> to vector<16x256xf32>
    %154 = arith.addf %150, %153 : vector<16x256xf32>
    %cst_49 = arith.constant 0.000000e+00 : f32
    %155 = vector.broadcast %cst_49 : f32 to vector<16x256xf32>
    %156 = arith.maximumf %154, %155 : vector<16x256xf32>
    %157 = vector.extract_strided_slice %1 {offsets = [2, 0, 0], sizes = [1, 64, 16], strides = [1, 1, 1]} : vector<3x64x16xf32> to vector<1x64x16xf32>
    %158 = vector.shape_cast %157 : vector<1x64x16xf32> to vector<64x16xf32>
    %cst_50 = arith.constant dense<0.000000e+00> : vector<64x256xf32>
    %159 = tpu.matmul %158, %156, %cst_50 {dimension_numbers = #tpu.dot_dimension_numbers<[1], [0], [0], [1], [0, 0, 1, 1], [], []>} : vector<64x16xf32>, vector<16x256xf32>, vector<64x256xf32> -> vector<64x256xf32>
    %160 = vector.extract_strided_slice %2 {offsets = [2, 16, 0], sizes = [1, 64, 1], strides = [1, 1, 1]} : vector<3x80x1xf32> to vector<1x64x1xf32>
    %161 = vector.shape_cast %160 : vector<1x64x1xf32> to vector<64x1xf32>
    %162 = vector.broadcast %161 : vector<64x1xf32> to vector<64x256xf32>
    %163 = arith.addf %159, %162 : vector<64x256xf32>
    %cst_51 = arith.constant dense<0.000000e+00> : vector<64xf32>
    %164 = vector.multi_reduction <add>, %147, %cst_51 [1] : vector<64x256xf32> to vector<64xf32>
    %165 = vector.shape_cast %164 : vector<64xf32> to vector<64x1xf32>
    %cst_52 = arith.constant 2.560000e+02 : f32
    %166 = vector.broadcast %cst_52 : f32 to vector<64x1xf32>
    %167 = arith.divf %165, %166 : vector<64x1xf32>
    %168 = vector.extract_strided_slice %0 {offsets = [1, 0, 0], sizes = [1, 16, 64], strides = [1, 1, 1]} : vector<3x16x64xf32> to vector<1x16x64xf32>
    %169 = vector.shape_cast %168 : vector<1x16x64xf32> to vector<16x64xf32>
    %cst_53 = arith.constant dense<0.000000e+00> : vector<16x1xf32>
    %170 = tpu.matmul %169, %167, %cst_53 {dimension_numbers = #tpu.dot_dimension_numbers<[1], [0], [0], [1], [0, 0, 1, 1], [], []>} : vector<16x64xf32>, vector<64x1xf32>, vector<16x1xf32> -> vector<16x1xf32>
    %171 = vector.extract_strided_slice %2 {offsets = [1, 0, 0], sizes = [1, 16, 1], strides = [1, 1, 1]} : vector<3x80x1xf32> to vector<1x16x1xf32>
    %172 = vector.shape_cast %171 : vector<1x16x1xf32> to vector<16x1xf32>
    %173 = arith.addf %170, %172 : vector<16x1xf32>
    %cst_54 = arith.constant 0.000000e+00 : f32
    %174 = vector.broadcast %cst_54 : f32 to vector<16x1xf32>
    %175 = arith.maximumf %173, %174 : vector<16x1xf32>
    %176 = vector.extract_strided_slice %1 {offsets = [1, 0, 0], sizes = [1, 64, 16], strides = [1, 1, 1]} : vector<3x64x16xf32> to vector<1x64x16xf32>
    %177 = vector.shape_cast %176 : vector<1x64x16xf32> to vector<64x16xf32>
    %cst_55 = arith.constant dense<0.000000e+00> : vector<64x1xf32>
    %178 = tpu.matmul %177, %175, %cst_55 {dimension_numbers = #tpu.dot_dimension_numbers<[1], [0], [0], [1], [0, 0, 1, 1], [], []>} : vector<64x16xf32>, vector<16x1xf32>, vector<64x1xf32> -> vector<64x1xf32>
    %179 = vector.extract_strided_slice %2 {offsets = [1, 16, 0], sizes = [1, 64, 1], strides = [1, 1, 1]} : vector<3x80x1xf32> to vector<1x64x1xf32>
    %180 = vector.shape_cast %179 : vector<1x64x1xf32> to vector<64x1xf32>
    %181 = arith.addf %178, %180 : vector<64x1xf32>
    %182 = vector.broadcast %181 : vector<64x1xf32> to vector<64x256xf32>
    %183 = arith.addf %163, %182 : vector<64x256xf32>
    %184 = arith.negf %183 : vector<64x256xf32>
    %185 = math.exp %184 : vector<64x256xf32>
    %cst_56 = arith.constant 1.000000e+00 : f32
    %186 = vector.broadcast %cst_56 : f32 to vector<64x256xf32>
    %187 = arith.addf %186, %185 : vector<64x256xf32>
    %188 = arith.divf %186, %187 : vector<64x256xf32>
    %189 = arith.subf %100, %102 : vector<64x256xf32>
    %190 = arith.mulf %189, %188 : vector<64x256xf32>
    %191 = arith.addf %102, %190 : vector<64x256xf32>
    %c1_57 = arith.constant 1 : index
    %c0_58 = arith.constant 0 : index
    %c0_59 = arith.constant 0 : index
    %192 = vector.load %arg6[%c1_57, %c0_58, %c0_59] : memref<2x64x256xf32, #tpu.memory_space<vmem>>, vector<1x64x256xf32>
    %193 = vector.shape_cast %192 : vector<1x64x256xf32> to vector<64x256xf32>
    %194 = vector.shape_cast %191 : vector<64x256xf32> to vector<1x64x256xf32>
    tpu.vector_store %arg6[%c1_57, %c0_58, %c0_59], %194 {strides = array<i32>} : memref<2x64x256xf32, #tpu.memory_space<vmem>>, vector<1x64x256xf32>,
    return
  }
  func.func @transform_0(%arg0: i32) -> (i32, i32, i32) {
    %c0_i32 = arith.constant 0 : i32
    %c0_i32_0 = arith.constant 0 : i32
    %c0_i32_1 = arith.constant 0 : i32
    return %arg0, %c0_i32, %c0_i32_0 : i32, i32, i32
  }
  func.func @transform_1(%arg0: i32) -> (i32, i32, i32) {
    %c0_i32 = arith.constant 0 : i32
    %c0_i32_0 = arith.constant 0 : i32
    %c0_i32_1 = arith.constant 0 : i32
    return %arg0, %c0_i32, %c0_i32_0 : i32, i32, i32
  }
  func.func @transform_2(%arg0: i32) -> (i32, i32, i32) {
    %c0_i32 = arith.constant 0 : i32
    %c0_i32_0 = arith.constant 0 : i32
    %c0_i32_1 = arith.constant 0 : i32
    %c0_i32_2 = arith.constant 0 : i32
    return %c0_i32, %c0_i32_0, %c0_i32_1 : i32, i32, i32
  }
  func.func @transform_3(%arg0: i32) -> (i32, i32, i32) {
    %c0_i32 = arith.constant 0 : i32
    %c0_i32_0 = arith.constant 0 : i32
    %c0_i32_1 = arith.constant 0 : i32
    %c0_i32_2 = arith.constant 0 : i32
    return %c0_i32, %c0_i32_0, %c0_i32_1 : i32, i32, i32
  }
  func.func @transform_4(%arg0: i32) -> (i32, i32, i32) {
    %c0_i32 = arith.constant 0 : i32
    %c0_i32_0 = arith.constant 0 : i32
    %c0_i32_1 = arith.constant 0 : i32
    %c0_i32_2 = arith.constant 0 : i32
    return %c0_i32, %c0_i32_0, %c0_i32_1 : i32, i32, i32
  }
  func.func @transform_5(%arg0: i32) -> (i32, i32, i32) {
    %c0_i32 = arith.constant 0 : i32
    %c0_i32_0 = arith.constant 0 : i32
    %c0_i32_1 = arith.constant 0 : i32
    return %arg0, %c0_i32, %c0_i32_0 : i32, i32, i32
  }
}

</mosaic_0001>

<bundles_post_ra>
// kernel: tpu_custom_call.1
= control target key start
LH: loop header
LB: loop body
LE: loop exit
PB: predicated region body
PF: predicated region fallthrough
CT: control target
= control target key end

     0   :  { %10 = vsyncpa [#allocation3], 0  ;;  %s5814_s0 = inlined_call_operand.hbm [shape: f32[4,64,256], index: 0, kind: input, shape index: {}]   ;;  %s5815_s1 = inlined_call_operand.hbm [shape: f32[4,64,256], index: 1, kind: input, shape index: {}]   ;;  %s5816_s2 = inlined_call_operand.vmem [shape: f32[3,16,64], index: 2, kind: input, shape index: {}]   ;;  %s5817_s3 = inlined_call_operand.vmem [shape: f32[3,64,16], index: 3, kind: input, shape index: {}]   ;;  %s5818_s4 = inlined_call_operand.vmem [shape: f32[3,80,1], index: 4, kind: input, shape index: {}]   ;;  %s5819_s5 = inlined_call_operand.hbm [shape: f32[4,64,256], index: 5, kind: output, shape index: {}]  }
   0x1   :  { %12 = vsyncpa [#allocation3 + $0x1], 0 }
   0x2   :  { %13 = vsyncpa [#allocation6], 0 }
   0x3   :  { %15 = vsyncpa [#allocation6 + $0x1], 0 }
   0x4   :  { %16 = vsyncpa [#allocation4], 0 }
   0x5   :  { %18 = vsyncpa [#allocation4 + $0x1], 0  ;;  %s4191_s18 = smov 0   ;;  %s4193_s19 = smov 0  }
   0x6   :  { %s4195_s20 = smov 0   ;;  %s4197_s21 = smov 0  }
   0x7 LB: > { %s4212_s22 = sadd.s32 4294967295, %s4150_s21   ;;  %s3183_s23 = sadd.s32 4294967294, %s4150_s21   ;;  %s4150_s21 = sphi %s4197_s21, %s6070_s21   ;;  %s4146_s20 = sphi %s4195_s20, %s6069_s20   ;;  %s4142_s19 = sphi %s4193_s19, %s6068_s19   ;;  %s4138_s18 = sphi %s4191_s18, %s6067_s18  }
   0x8   : > { %s4216_s24 = sadd.s32 1, %s4150_s21   ;;  %s31_s25 = sadd.s32 1, %s4146_s20 }
   0x9   : > { %s28_s26 = ssub.s32 %s4150_s21, %s4216_s24  ;;  %p38_p0 = scmp.ne.s32.totalorder %s4146_s20, %s4142_s19 }
   0xa   : > { %p29_p1 = scmp.eq.s32.totalorder %s28_s26, 0  ;;  %p39_p2 = scmp.eq.s32.totalorder %s4150_s21, 0 }
   0xb   : > { %p44_p3 = scmp.ne.s32.totalorder %s4142_s19, %s4138_s18  ;;  %p45_p4 = scmp.eq.s32.totalorder %s4212_s22, 0 }
   0xc   : > { %s4228_s27 = scalar_select %p29_p1, %s4146_s20, %s31_s25  }
   0xd   : > { %p4230_p5 = por %p39_p2, %p38_p0  ;;  %p4234_p6 = por %p45_p4, %p44_p3 }
   0xe   : > { %p157_p7 = scmp.eq.s32.totalorder %s4212_s22, 1  ;;  %p163_p8 = scmp.eq.s32.totalorder %s3183_s23, 1 }
   0xf   : > { %s5898_s29 = scalar_select %p4234_p6, 1, 0 }
  0x10   : > { %p3639_p10 = scmp.lt.s32.totalorder %s4150_s21, 2  ;;  %p4241_p11 = por %p157_p7, %p38_p0 }
  0x11   : > { %p4245_p12 = por %p163_p8, %p44_p3  ;;  %s4250_s7 = sand.u32 1, %s4146_s20  }
  0x12   : > { %s5899_s30 = scalar_select %p4241_p11, 1, 0 }
  0x13   : > { %s5900_s6 = scalar_select %p4245_p12, 1, 0 }
  0x14   : > { %s3397_s8 = sshll.u32 %s4150_s21, 12  ;;  %s3186_s9 = sshll.u32 %s4250_s7, 8 }
  0x15   : > { %s4259_s12 = scalar_lea.hbm %s5814_s0, %s3397_s8  ;;  %s196_s13 = scalar_lea.vmem [#allocation2], %s3186_s9 }
  0x16   : > { %s204_s14 = sshll.u32 %s196_s13, 4  ;;  %p4265_p13 = pnand %p3639_p10, %p4230_p5  ;;  %s4269_s14 = int_to_ptr.vmem [resolvable:$true] %s204_s14 }
  0x17   : > { %s193_s16 = scalar_lea.sflag [#allocation3], %s4250_s7  ;;  %s4026_s17 = scalar_lea.hbm %s4259_s12, 4096 }
  0x18   : > { %p4027_p0 = scmp.ne.s32.totalorder %s4259_s12, %s4026_s17  ;;  %p4028_p1 = pneg %p4265_p13 }
  0x19   : > { %s4031_s26 = scalar_lea.hbm %s5814_s0, 8192  ;;  %p4032_p4 = scmp.lt.s32.totalorder %s4259_s12, %s5814_s0 }
  0x1a   : > { %p4029_p2 = pnand %p4028_p1, %p4027_p0  ;;  %p4033_p5 = scmp.lt.s32.totalorder %s4031_s26, %s4026_s17 }
  0x1c   : > { %p4030_p3 = pneg %p4029_p2  ;;  %p4034_p7 = por %p4033_p5, %p4032_p4 }
  0x1e   : > { %p4035_p8 = pnand %p4034_p7, %p4030_p3 }
  0x20   : > { %4038 = shalt.err (!%p4035_p8)
}
  0x21   : > { %s4039_s11 = scalar_lea.vmem %s4269_s14, 4096  ;;  %s4152_s13 = smov [#allocation2]  }
  0x22   : > { %p4040_p10 = scmp.ne.s32.totalorder %s4269_s14, %s4039_s11  ;;  %s4044_s23 = sshll.u32 %s4152_s13, 4  ;;  %s4045_s23 = int_to_ptr.vmem [resolvable:$false] %s4044_s23 }
  0x23   : > { %s4046_s25 = scalar_lea.vmem %s4045_s23, 8192  ;;  %p4047_p9 = scmp.lt.s32.totalorder %s4269_s14, %s4045_s23 }
  0x24   : > { %p4042_p0 = pnand %p4040_p10, %p4028_p1  ;;  %p4048_p12 = scmp.lt.s32.totalorder %s4046_s25, %s4039_s11 }
  0x26   : > { %p4043_p2 = pneg %p4042_p0  ;;  %p4049_p11 = por %p4048_p12, %p4047_p9 }
  0x28   : > { %p4050_p4 = pnand %p4049_p11, %p4043_p2 }
  0x2a   : > { %4053 = shalt.err (!%p4050_p4)
}
  0x2b   : > { %s5821_s17 = smov 256   ;;  %s4154_s26 = smov 16  }
  0x2c   : > { %3631 = dma.hbm_to_vmem [thread:$0]  (!%p4265_p13), %s4259_s12, 4096, %s4269_s14, %s193_s16, %s5821_s17, %s5821_s17, %s4154_s26  }
  0x2d   : > { %p3194_p9 = scmp.ge.s32.totalorder %s4150_s21, 1  ;;  %p234_p11 = scmp.lt.s32.totalorder %s4150_s21, 3 }
  0x2e   : > { %s4312_s13 = scalar_lea.hbm %s5815_s1, %s3397_s8  ;;  %s218_s23 = scalar_lea.vmem [#allocation5], %s3186_s9 }
  0x2f   : > { %p4303_p12 = pnand %p3194_p9, %p234_p11  ;;  %s226_s25 = sshll.u32 %s218_s23, 4  ;;  %s4316_s25 = int_to_ptr.vmem [resolvable:$true] %s226_s25 }
  0x30   : > { %s215_s12 = scalar_lea.sflag [#allocation6], %s4250_s7  ;;  %s4054_s14 = scalar_lea.hbm %s4312_s13, 4096 }
  0x31   : > { %p4055_p3 = scmp.ne.s32.totalorder %s4312_s13, %s4054_s14  ;;  %s4059_s8 = scalar_lea.hbm %s5815_s1, 8192 }
  0x32   : > { %p4060_p8 = scmp.lt.s32.totalorder %s4312_s13, %s5815_s1  ;;  %p4061_p10 = scmp.lt.s32.totalorder %s4059_s8, %s4054_s14 }
  0x33   : > { %p4057_p5 = pnand %p4055_p3, %p4028_p1 }
  0x34   : > { %p4062_p0 = por %p4061_p10, %p4060_p8 }
  0x35   : > { %p4058_p7 = pneg %p4057_p5 }
  0x37   : > { %p4063_p2 = pnand %p4062_p0, %p4058_p7 }
  0x39   : > { %4066 = shalt.err (!%p4063_p2)
}
  0x3a   : > { %s4067_s7 = scalar_lea.vmem %s4316_s25, 4096  ;;  %s4155_s9 = smov [#allocation5]  }
  0x3b   : > { %p4068_p4 = scmp.ne.s32.totalorder %s4316_s25, %s4067_s7  ;;  %s4072_s17 = sshll.u32 %s4155_s9, 4  ;;  %s4073_s17 = int_to_ptr.vmem [resolvable:$false] %s4072_s17 }
  0x3c   : > { %s4074_s23 = scalar_lea.vmem %s4073_s17, 8192  ;;  %p4075_p3 = scmp.lt.s32.totalorder %s4316_s25, %s4073_s17 }
  0x3d   : > { %p4070_p9 = pnand %p4068_p4, %p4028_p1  ;;  %p4076_p5 = scmp.lt.s32.totalorder %s4074_s23, %s4067_s7 }
  0x3f   : > { %p4071_p11 = pneg %p4070_p9  ;;  %p4077_p6 = por %p4076_p5, %p4075_p3 }
  0x41   : > { %p4078_p8 = pnand %p4077_p6, %p4071_p11 }
  0x43   : > { %4081 = shalt.err (!%p4078_p8)
}
  0x44   : > { %s5903_s14 = smov 256   ;;  %238 = sbr.rel (%p4303_p12) target bundleno = 2533 (0x9e5), region = 40 }
  0x45   : > { %3634 = dma.hbm_to_vmem [thread:$0]  (!%p4265_p13), %s4312_s13, 4096, %s4316_s25, %s215_s12, %s5903_s14, %s5903_s14, %s4154_s26  }
  0x49   : > { %s4347_s16 = sand.u32 1, %s4142_s19   ;;  %p5904_p6 = scmp.ne.s32.totalorder %s5898_s29, 0 }
  0x4a   : > { %s4350_s8 = sshll.u32 %s4347_s16, 8  ;;  %s241_s10 = scalar_lea.sflag [#allocation3], %s4347_s16 }
  0x4b   : > { %s4354_s15 = scalar_lea.vmem [#allocation2], %s4350_s8 }
  0x4c   : > { %4125 = dma.done.wait (%p5904_p6), %s241_s10, 4096  }
  0x4d   : > { %4127 = vsyncadd (%p5904_p6), %s241_s10, 4294963200  ;;  %s250_s26 = scalar_lea.sflag [#allocation6], %s4347_s16  ;;  %s4362_s28 = scalar_lea.vmem [#allocation5], %s4350_s8 }
  0x4e   : > { %4129 = dma.done.wait (%p5904_p6), %s250_s26, 4096  }
  0x4f   : > { %4131 = vsyncadd (%p5904_p6), %s250_s26, 4294963200  ;;  %v5823_v0 = vmov 0.0   ;;  %v4157_v1 = vmov 0   ;;  %v4371_v2 = vld [vmem:[%s4354_s15 + $0x70] sm:$0xff]  ;;  %v4374_v3 = vld [vmem:[%s4354_s15 + $0x78] sm:$0xff]  ;;  %vm406_vm0 = vcmask 523264  }
  0x50   : > { %477 = vmatprep.mubr.f32.mxu0 %v5823_v0  ;;  %3679 = vset.pattern.permute.xlu0 %v4157_v1  ;;  %v4377_v4 = vld [vmem:[%s4362_s28 + $0x70] sm:$0xff]  ;;  %v4380_v5 = vld [vmem:[%s4362_s28 + $0x78] sm:$0xff]  ;;  %v4385_v7 = vld [vmem:[%s4354_s15 + $0x60] sm:$0xff]  ;;  %vm534_vm1 = vcmask 130048   ;;  %s5554_s23 = scalar_lea.vmem [#allocation7], %s4350_s8  ;;  %s3401_s9 = sshll.u32 %s4212_s22, 12 }
  0x51   : > { %3680 = vset.pattern.permute.xlu1 %v4157_v1  ;;  %623 = vmatprep.mubr.f32.mxu1 %v5823_v0  ;;  %v394_v6 = vadd.f32 %v4377_v4, %v4371_v2  ;;  %v4388_v8 = vld [vmem:[%s4354_s15 + $0x68] sm:$0xff]  ;;  %v395_v9 = vadd.f32 %v4380_v5, %v4374_v3  ;;  %v4393_v10 = vld [vmem:[%s4362_s28 + $0x60] sm:$0xff]  ;;  %v4399_v12 = vld [vmem:[%s4354_s15 + $0x50] sm:$0xff]  ;;  %s3087_s17 = sshll.u32 %s5554_s23, 4  ;;  %s5765_s14 = scalar_lea.hbm %s5819_s5, %s3401_s9  ;;  %s5767_s17 = int_to_ptr.vmem [resolvable:$true] %s3087_s17 }
  0x52   : > { %v4396_v11 = vld [vmem:[%s4362_s28 + $0x68] sm:$0xff]  ;;  %v392_v13 = vadd.f32 %v4393_v10, %v4385_v7  ;;  %v4406_v15 = vld [vmem:[%s4354_s15 + $0x58] sm:$0xff]  ;;  %v4409_v16 = vld [vmem:[%s4362_s28 + $0x50] sm:$0xff]  ;;  %s3073_s10 = scalar_lea.sflag [#allocation4], %s4347_s16  ;;  %s4082_s26 = scalar_lea.vmem %s5767_s17, 4096 }
  0x53   : > { %v393_v14 = vadd.f32 %v4396_v11, %v4388_v8  ;;  %v4412_v17 = vld [vmem:[%s4362_s28 + $0x58] sm:$0xff]  ;;  %v693_v18 = vadd.f32 %v395_v9, %v394_v6  ;;  %v390_v19 = vadd.f32 %v4409_v16, %v4399_v12  ;;  %v4419_v21 = vld [vmem:[%s4354_s15 + $0x40] sm:$0xff]  ;;  %v4422_v22 = vld [vmem:[%s4354_s15 + $0x48] sm:$0xff]  ;;  %429 = vmatprep.subr.mxu0 %v395_v9  ;;  %p4083_p13 = scmp.ne.s32.totalorder %s5767_s17, %s4082_s26  ;;  %p6064_p1 = scmp.ne.s32.totalorder %s5899_s30, 0 }
  0x54   : > { %v391_v20 = vadd.f32 %v4412_v17, %v4406_v15  ;;  %v4425_v23 = vld [vmem:[%s4362_s28 + $0x40] sm:$0xff]  ;;  %v4428_v24 = vld [vmem:[%s4362_s28 + $0x48] sm:$0xff]  ;;  %v4433_v26 = vld [vmem:[%s4354_s15 + $0x30] sm:$0xff]  ;;  %430 = vmatpush1.msra.mxu0 %v394_v6 }
  0x55   : > { %v388_v25 = vadd.f32 %v4425_v23, %v4419_v21  ;;  %v4436_v27 = vld [vmem:[%s4354_s15 + $0x38] sm:$0xff]  ;;  %694 = vadd.xlane.f32.xlu0 %v693_v18  ;;  %v690_v28 = vadd.f32 %v393_v14, %v392_v13  ;;  %v389_v30 = vadd.f32 %v4428_v24, %v4422_v22  ;;  %v4441_v31 = vld [vmem:[%s4362_s28 + $0x30] sm:$0xff]  ;;  %v4447_v33 = vld [vmem:[%s4354_s15 + $0x20] sm:$0xff]  ;;  %431 = vmatprep.subr.mxu0 %v393_v14  ;;  %p4084_p12 = pnand %p4083_p13, %p6064_p1 }
  0x56   : > { %v687_v29 = vadd.f32 %v391_v20, %v390_v19  ;;  %v4444_v32 = vld [vmem:[%s4362_s28 + $0x38] sm:$0xff]  ;;  %v386_v34 = vadd.f32 %v4441_v31, %v4433_v26  ;;  %v4454_v36 = vld [vmem:[%s4354_s15 + $0x28] sm:$0xff]  ;;  %v4457_v37 = vld [vmem:[%s4362_s28 + $0x20] sm:$0xff]  ;;  %432 = vmatpush1.msra.mxu0 %v392_v13 }
  0x57   : > { %v387_v35 = vadd.f32 %v4444_v32, %v4436_v27  ;;  %v4460_v38 = vld [vmem:[%s4362_s28 + $0x28] sm:$0xff]  ;;  %v684_v39 = vadd.f32 %v389_v30, %v388_v25  ;;  %v384_v40 = vadd.f32 %v4457_v37, %v4447_v33  ;;  %v4467_v42 = vld [vmem:[%s4354_s15 + $0x10] sm:$0xff]  ;;  %v4470_v43 = vld [vmem:[%s4354_s15 + $0x18] sm:$0xff]  ;;  %433 = vmatprep.subr.mxu0 %v391_v20  ;;  %p4085_p7 = pneg %p4084_p12 }
  0x58   : > { %688 = vadd.xlane.f32.xlu1 %v687_v29  ;;  %v385_v41 = vadd.f32 %v4460_v38, %v4454_v36  ;;  %5905 = vst [vmem:[#allocation11_spill] sm:$0xff] %v4467_v42  ;;  %5906 = vst [vmem:[#allocation12_spill] sm:$0xff] %v4470_v43  ;;  %v4473_v44 = vld [vmem:[%s4362_s28 + $0x10] sm:$0xff]  ;;  %v4476_v45 = vld [vmem:[%s4362_s28 + $0x18] sm:$0xff]  ;;  %434 = vmatpush1.msra.mxu0 %v390_v19 }
  0x59   : > { %5907 = vst [vmem:[#allocation13_spill] sm:$0xff] %v4473_v44  ;;  %5908 = vst [vmem:[#allocation14_spill] sm:$0xff] %v4476_v45  ;;  %v4479_v46 = vld [vmem:[%s4354_s15] sm:$0xff]  ;;  %v4482_v47 = vld [vmem:[%s4354_s15 + $0x8] sm:$0xff]  ;;  %691 = vadd.xlane.f32.xlu0 %v690_v28  ;;  %v681_v48 = vadd.f32 %v387_v35, %v386_v34  ;;  %v382_v49 = vadd.f32 %v4473_v44, %v4467_v42  ;;  %v383_v50 = vadd.f32 %v4476_v45, %v4470_v43 }
  0x5a   : > { %v4489_v51 = vld [vmem:[%s4362_s28] sm:$0xff]  ;;  %v4492_v52 = vld [vmem:[%s4362_s28 + $0x8] sm:$0xff]  ;;  %435 = vmatprep.subr.mxu0 %v389_v30  ;;  %v678_v53 = vadd.f32 %v385_v41, %v384_v40  ;;  %v4513_v61 = vld [vmem:[%s5816_s2 + $0x10] sm:$0xff] }
  0x5b   : > { %v380_v54 = vadd.f32 %v4489_v51, %v4479_v46  ;;  %v381_v55 = vadd.f32 %v4492_v52, %v4482_v47  ;;  %436 = vmatpush1.msra.mxu0 %v388_v25  ;;  %v675_v56 = vadd.f32 %v383_v50, %v382_v49  ;;  %v288_v58 = vld [vmem:[%s5816_s2] sm:$0xff]  ;;  %v289_v59 = vld [vmem:[%s5816_s2 + $0x8] sm:$0xff]  ;;  %v321_v13 = vld [vmem:[%s5818_s4 + $0x18] sm:$0xff] }
  0x5c   : > { %685 = vadd.xlane.f32.xlu1 %v684_v39  ;;  %437 = vmatprep.subr.mxu0 %v387_v35  ;;  %v318_v60 = vld [vmem:[%s5818_s4] sm:$0xff]  ;;  %v319_v62 = vld [vmem:[%s5818_s4 + $0x8] sm:$0xff]  ;;  %v325_v14 = vld [vmem:[%s5818_s4 + $0x38] sm:$0xff] }
  0x5d   : > { %682 = vadd.xlane.f32.xlu0 %v681_v48  ;;  %438 = vmatpush1.msra.mxu0 %v386_v34  ;;  %v672_v57 = vadd.f32 %v381_v55, %v380_v54  ;;  %v323_v63 = vld [vmem:[%s5818_s4 + $0x28] sm:$0xff]  ;;  %v322_v6 = vld [vmem:[%s5818_s4 + $0x20] sm:$0xff]  ;;  %v320_v18 = vld [vmem:[%s5818_s4 + $0x10] sm:$0xff] }
  0x5e   : > { %439 = vmatprep.subr.mxu0 %v385_v41  ;;  %v327_v1 = vld [vmem:[%s5818_s4 + $0x48] sm:$0xff]  ;;  %v326_v9 = vld [vmem:[%s5818_s4 + $0x40] sm:$0xff]  ;;  %v324_v19 = vld [vmem:[%s5818_s4 + $0x30] sm:$0xff] }
  0x5f   : > { %440 = vmatpush1.msra.mxu0 %v384_v40 }
  0x60   : > { %679 = vadd.xlane.f32.xlu1 %v678_v53  ;;  %441 = vmatprep.subr.mxu0 %v383_v50 }
  0x61   : > { %676 = vadd.xlane.f32.xlu0 %v675_v56  ;;  %442 = vmatpush1.msra.mxu0 %v382_v49  ;;  %v4547_v56 = vld [vmem:[%s5816_s2 + $0x18] sm:$0xff] }
  0x62   : > { %443 = vmatprep.subr.mxu0 %v381_v55  ;;  %5909 = vst [vmem:[#allocation15_spill] sm:$0xff] %v4547_v56 }
  0x63   : > { %444 = vmatpush1.msra.mxu0 %v380_v54 }
  0x64   : > { %673 = vadd.xlane.f32.xlu1 %v672_v57  ;;  %3198 = vmatmul.mubr.msk.f32.vlgmr.msra.gmra.mxu0 %vm406_vm0, %v288_v58 }
  0x65   : > { %483 = vmatprep.mubr.f32.mxu0 %v5823_v0 }
  0x68   : > { %3199 = vmatmul.mubr.msk.f32.gmra.mxu0 %vm406_vm0, %v289_v59 }
  0x69   : > { %3498 = vmatprep.mubr.msk.f32.mxu0 %vm406_vm0, %v4513_v61 }
  0x75   : > { %398 = vperm.xlu1 %3680, %v318_v60  }
  0x77   : > { %403 = vperm.xlu0 %3679, %v319_v62  }
  0x79   : > { %531 = vperm.xlu1 %3680, %v327_v1  }
  0x7b   : > { %511 = vperm.xlu0 %3679, %v323_v63  }
  0x7d   : > { %526 = vperm.xlu1 %3680, %v326_v9  }
  0x7f   : > { %506 = vperm.xlu0 %3679, %v322_v6  }
  0x81   : > { %521 = vperm.xlu1 %3680, %v325_v14  }
  0x83   : > { %501 = vperm.xlu0 %3679, %v321_v13  }
  0x85   : > { %516 = vperm.xlu1 %3680, %v324_v19  }
  0x87   : > { %496 = vperm.xlu0 %3679, %v320_v18  }
  0xde   : > { %v695_v20 = vpop.xlane.xlu0 %694 }
  0xdf   : > { %v704_v25 = vmul.f32 0.00390625, %v695_v20 }
  0xe1   : > { %v689_v28 = vpop.xlane.xlu1 %688  ;;  %3482 = vmatprep.subr.mxu0 %v704_v25 }
  0xe2   : > { %v692_v29 = vpop.xlane.xlu0 %691  ;;  %3483 = vmatpush3.msra.mxu0 %v704_v25  ;;  %v702_v35 = vmul.f32 0.00390625, %v689_v28  ;;  %v294_v25 = vld [vmem:[%s5817_s3] sm:$0xff]  ;;  %v295_v28 = vld [vmem:[%s5817_s3 + $0x8] sm:$0xff] }
  0xe3   : > { %v703_v30 = vmul.f32 0.00390625, %v692_v29  ;;  %v296_v29 = vld [vmem:[%s5817_s3 + $0x10] sm:$0xff] }
  0xe5   : > { %v686_v34 = vpop.xlane.xlu1 %685  ;;  %3484 = vmatprep.subr.mxu0 %v703_v30 }
  0xe6   : > { %v701_v39 = vmul.f32 0.00390625, %v686_v34  ;;  %3485 = vmatpush3.msra.mxu0 %v703_v30  ;;  %v683_v40 = vpop.xlane.xlu0 %682  ;;  %v4575_v30 = vld [vmem:[%s5817_s3 + $0x40] sm:$0xff]  ;;  %v297_v34 = vld [vmem:[%s5817_s3 + $0x18] sm:$0xff] }
  0xe7   : > { %3486 = vmatprep.subr.mxu0 %v702_v35  ;;  %v700_v41 = vmul.f32 0.00390625, %v683_v40  ;;  %5912 = vst [vmem:[#allocation18_spill] sm:$0xff] %v4575_v30  ;;  %v300_v40 = vld [vmem:[%s5817_s3 + $0x30] sm:$0xff] }
  0xe8   : > { %3487 = vmatpush3.msra.mxu0 %v702_v35  ;;  %v298_v35 = vld [vmem:[%s5817_s3 + $0x20] sm:$0xff] }
  0xe9   : > { %v680_v48 = vpop.xlane.xlu1 %679  ;;  %3488 = vmatprep.subr.mxu0 %v701_v39 }
  0xea   : > { %v699_v49 = vmul.f32 0.00390625, %v680_v48  ;;  %3489 = vmatpush3.msra.mxu0 %v701_v39  ;;  %v677_v50 = vpop.xlane.xlu0 %676  ;;  %v299_v39 = vld [vmem:[%s5817_s3 + $0x28] sm:$0xff]  ;;  %v4609_v48 = vld [vmem:[%s5818_s4 + $0x58] sm:$0xff] }
  0xeb   : > { %3490 = vmatprep.subr.mxu0 %v700_v41  ;;  %v698_v53 = vmul.f32 0.00390625, %v677_v50  ;;  %5913 = vst [vmem:[#allocation19_spill] sm:$0xff] %v4609_v48  ;;  %v4614_v50 = vld [vmem:[%s5818_s4 + $0x50] sm:$0xff] }
  0xec   : > { %3491 = vmatpush3.msra.mxu0 %v700_v41  ;;  %v301_v41 = vld [vmem:[%s5817_s3 + $0x38] sm:$0xff]  ;;  %5914 = vst [vmem:[#allocation20_spill] sm:$0xff] %v4614_v50 }
  0xed   : > { %v674_v54 = vpop.xlane.xlu1 %673  ;;  %3492 = vmatprep.subr.mxu0 %v699_v49 }
  0xee   : > { %v697_v55 = vmul.f32 0.00390625, %v674_v54  ;;  %3493 = vmatpush3.msra.mxu0 %v699_v49 }
  0xef   : > { %3494 = vmatprep.subr.mxu0 %v698_v53 }
  0xf0   : > { %3495 = vmatpush3.msra.mxu0 %v698_v53 }
  0xf1   : > { %3496 = vmatprep.subr.mxu0 %v697_v55  ;;  %v4551_v58 = vpop.permute.xlu1 %398 }
  0xf2   : > { %3497 = vmatpush3.msra.mxu0 %v697_v55  ;;  %5910 = vst [vmem:[#allocation16_spill] sm:$0xff] %v4551_v58  ;;  %v4553_v60 = vpop.permute.xlu0 %403 }
  0xf3   : > { %3499 = vmatmul.mubr.msk.f32.vlgmr.msra.gmra.mxu0 %vm406_vm0, %v4547_v56  ;;  %5911 = vst [vmem:[#allocation17_spill] sm:$0xff] %v4553_v60 }
  0xf4   : > { %3505 = vmatprep.mubr.msk.f32.mxu0 %vm534_vm1, %v4575_v30 }
 0x124   : > { %v479_v57 = vpop.f32.mrf.mxu0 }
 0x125   : > { %v480_v9 = vadd.f32 %v479_v57, %v4551_v58 }
 0x126   : > { %v481_v59 = vpop.f32.mrf.mxu0 }
 0x127   : > { %v482_v1 = vadd.f32 %v481_v59, %v4551_v58  ;;  %v490_v20 = vmax.f32 %v480_v9, 0.0  ;;  %v4649_v9 = vld [vmem:[%s5817_s3 + $0x68] sm:$0xff] }
 0x128   : > { %v485_v62 = vpop.f32.mrf.mxu0  ;;  %5919 = vst [vmem:[#allocation25_spill] sm:$0xff] %v4649_v9 }
 0x129   : > { %v486_v63 = vadd.f32 %v485_v62, %v4553_v60  ;;  %v491_v19 = vmax.f32 %v482_v1, 0.0  ;;  %v4621_v62 = vld [vmem:[%s5817_s3 + $0x48] sm:$0xff]  ;;  %v4635_v1 = vld [vmem:[%s5817_s3 + $0x58] sm:$0xff] }
 0x12a   : > { %v487_v6 = vpop.f32.mrf.mxu0  ;;  %5915 = vst [vmem:[#allocation21_spill] sm:$0xff] %v4621_v62  ;;  %5917 = vst [vmem:[#allocation23_spill] sm:$0xff] %v4635_v1 }
 0x12b   : > { %v488_v13 = vadd.f32 %v487_v6, %v4553_v60  ;;  %v492_v14 = vmax.f32 %v486_v63, 0.0  ;;  %v4626_v63 = vld [vmem:[%s5817_s3 + $0x50] sm:$0xff]  ;;  %v4640_v6 = vld [vmem:[%s5817_s3 + $0x60] sm:$0xff] }
 0x12c   : > { %5916 = vst [vmem:[#allocation22_spill] sm:$0xff] %v4626_v63  ;;  %5918 = vst [vmem:[#allocation24_spill] sm:$0xff] %v4640_v6 }
 0x12d   : > { %v493_v18 = vmax.f32 %v488_v13, 0.0  ;;  %v4654_v13 = vld [vmem:[%s5817_s3 + $0x70] sm:$0xff] }
 0x12e   : > { %5920 = vst [vmem:[#allocation26_spill] sm:$0xff] %v4654_v13 }
 0x12f   : > { %587 = vmatprep.subr.mxu1 %v493_v18 }
 0x130   : > { %588 = vmatpush1.msra.mxu1 %v492_v14  ;;  %v4663_v14 = vld [vmem:[%s5817_s3 + $0x78] sm:$0xff] }
 0x131   : > { %589 = vmatprep.subr.mxu1 %v491_v19  ;;  %5921 = vst [vmem:[#allocation27_spill] sm:$0xff] %v4663_v14  ;;  %v330_v19 = vld [vmem:[%s5818_s4 + $0x60] sm:$0xff] }
 0x132   : > { %590 = vmatpush1.msra.mxu1 %v490_v20 }
 0x133   : > { %3200 = vmatmul.mubr.msk.f32.vlgmr.msra.gmra.mxu1 %vm534_vm1, %v294_v25 }
 0x134   : > { %629 = vmatprep.mubr.f32.mxu1 %v5823_v0 }
 0x137   : > { %3201 = vmatmul.mubr.msk.f32.gmra.mxu1 %vm534_vm1, %v295_v28 }
 0x138   : > { %635 = vmatprep.mubr.f32.mxu1 %v5823_v0 }
 0x13b   : > { %3202 = vmatmul.mubr.msk.f32.gmra.mxu1 %vm534_vm1, %v296_v29 }
 0x13c   : > { %641 = vmatprep.mubr.f32.mxu1 %v5823_v0 }
 0x13f   : > { %3203 = vmatmul.mubr.msk.f32.gmra.mxu1 %vm534_vm1, %v297_v34  ;;  %v335_v34 = vld [vmem:[%s5818_s4 + $0x88] sm:$0xff] }
 0x140   : > { %647 = vmatprep.mubr.f32.mxu1 %v5823_v0 }
 0x143   : > { %3204 = vmatmul.mubr.msk.f32.gmra.mxu1 %vm534_vm1, %v298_v35 }
 0x144   : > { %653 = vmatprep.mubr.f32.mxu1 %v5823_v0 }
 0x147   : > { %3205 = vmatmul.mubr.msk.f32.gmra.mxu1 %vm534_vm1, %v299_v39 }
 0x148   : > { %659 = vmatprep.mubr.f32.mxu1 %v5823_v0 }
 0x14b   : > { %3206 = vmatmul.mubr.msk.f32.gmra.mxu1 %vm534_vm1, %v300_v40 }
 0x14c   : > { %665 = vmatprep.mubr.f32.mxu1 %v5823_v0 }
 0x14f   : > { %3207 = vmatmul.mubr.msk.f32.gmra.mxu1 %vm534_vm1, %v301_v41  ;;  %v337_v41 = vld [vmem:[%s5818_s4 + $0x98] sm:$0xff] }
 0x150   : > { %1197 = vmatprep.mubr.f32.mxu1 %v5823_v0 }
 0x1b3   : > { %v3500_v49 = vpop.f32.mrf.mxu0 }
 0x1b4   : > { %v783_v53 = vadd.f32 %v3500_v49, %v4609_v48 }
 0x1b5   : > { %v777_v54 = vpop.f32.mrf.mxu0 }
 0x1b6   : > { %v787_v55 = vmax.f32 %v783_v53, 0.0  ;;  %v778_v57 = vadd.f32 %v777_v54, %v4614_v50 }
 0x1b8   : > { %v786_v59 = vmax.f32 %v778_v57, 0.0  ;;  %3501 = vmatprep.subr.mxu0 %v787_v55  ;;  %v336_v57 = vld [vmem:[%s5818_s4 + $0x90] sm:$0xff] }
 0x1b9   : > { %3502 = vmatpush3.msra.mxu0 %v787_v55 }
 0x1ba   : > { %3503 = vmatprep.subr.mxu0 %v786_v59 }
 0x1bb   : > { %3504 = vmatpush3.msra.mxu0 %v786_v59 }
 0x1bc   : > { %3506 = vmatmul.mubr.msk.f32.vlgmr.msra.gmra.mxu0 %vm534_vm1, %v4621_v62 }
 0x1bd   : > { %3508 = vmatprep.mubr.msk.f32.mxu0 %vm534_vm1, %v4626_v63 }
 0x1c0   : > { %3509 = vmatmul.mubr.msk.f32.gmra.mxu0 %vm534_vm1, %v4635_v1 }
 0x1c1   : > { %3511 = vmatprep.mubr.msk.f32.mxu0 %vm534_vm1, %v4640_v6 }
 0x1c4   : > { %3512 = vmatmul.mubr.msk.f32.gmra.mxu0 %vm534_vm1, %v4649_v9 }
 0x1c5   : > { %3514 = vmatprep.mubr.msk.f32.mxu0 %vm534_vm1, %v4654_v13 }
 0x1c8   : > { %3515 = vmatmul.mubr.msk.f32.gmra.mxu0 %vm534_vm1, %v4663_v14 }
 0x1c9   : > { %3533 = vmatprep.mubr.msk.f32.mxu0 %vm406_vm0, %v4513_v61  ;;  %v334_v61 = vld [vmem:[%s5818_s4 + $0x80] sm:$0xff] }
 0x27c   : > { %v3507_v18 = vpop.f32.mrf.mxu0 }
 0x27e   : > { %v878_v20 = vpop.f32.mrf.mxu0 }
 0x27f   : > { %v879_v25 = vadd.f32 %v878_v20, %v330_v19  ;;  %v333_v19 = vld [vmem:[%s5818_s4 + $0x78] sm:$0xff] }
 0x280   : > { %v3510_v28 = vpop.f32.mrf.mxu0 }
 0x281   : > { %919 = vperm.xlu0 %3679, %v879_v25   ;;  %v894_v20 = vadd.f32 %v3510_v28, %v333_v19  ;;  %v332_v25 = vld [vmem:[%s5818_s4 + $0x70] sm:$0xff] }
 0x282   : > { %v888_v29 = vpop.f32.mrf.mxu0 }
 0x284   : > { %v3513_v35 = vpop.f32.mrf.mxu0 }
 0x285   : > { %v904_v39 = vadd.f32 %v3513_v35, %v335_v34  ;;  %v889_v34 = vadd.f32 %v888_v29, %v332_v25  ;;  %v331_v35 = vld [vmem:[%s5818_s4 + $0x68] sm:$0xff] }
 0x286   : > { %v898_v40 = vpop.f32.mrf.mxu0 }
 0x287   : > { %944 = vperm.xlu1 %3680, %v904_v39   ;;  %v899_v49 = vadd.f32 %v898_v40, %v334_v61  ;;  %v884_v39 = vadd.f32 %v3507_v18, %v331_v35  ;;  %v625_v40 = vpop.f32.mrf.mxu1  ;;  %v4705_v18 = vpop.permute.xlu0 %511 }
 0x288   : > { %v3516_v53 = vpop.f32.mrf.mxu0 }
 0x289   : > { %v914_v54 = vadd.f32 %v3516_v53, %v337_v41  ;;  %v627_v61 = vpop.f32.mrf.mxu1 }
 0x28a   : > { %v908_v55 = vpop.f32.mrf.mxu0 }
 0x28b   : > { %939 = vperm.xlu1 %3680, %v899_v49   ;;  %v909_v59 = vadd.f32 %v908_v55, %v336_v57  ;;  %v4693_v41 = vpop.f32.mrf.mxu1  ;;  %v4701_v57 = vpop.permute.xlu1 %531 }
 0x28c   : > { %v4709_v35 = vpop.permute.xlu0 %506 }
 0x28d   : > { %v4695_v49 = vpop.f32.mrf.mxu1 }
 0x28f   : > { %954 = vperm.xlu1 %3680, %v914_v54   ;;  %v4697_v28 = vpop.f32.mrf.mxu1 }
 0x290   : > { %v4713_v60 = vpop.permute.xlu0 %501 }
 0x291   : > { %v4699_v53 = vpop.f32.mrf.mxu1 }
 0x293   : > { %949 = vperm.xlu1 %3680, %v909_v59   ;;  %v643_v54 = vpop.f32.mrf.mxu1 }
 0x294   : > { %v4717_v62 = vpop.permute.xlu0 %496 }
 0x295   : > { %v645_v55 = vpop.f32.mrf.mxu1 }
 0x297   : > { %934 = vperm.xlu1 %3680, %v894_v20   ;;  %v649_v29 = vpop.f32.mrf.mxu1  ;;  %v4703_v20 = vpop.permute.xlu1 %526 }
 0x299   : > { %v651_v59 = vpop.f32.mrf.mxu1 }
 0x29b   : > { %929 = vperm.xlu1 %3680, %v889_v34   ;;  %v655_v19 = vpop.f32.mrf.mxu1  ;;  %v4707_v34 = vpop.permute.xlu1 %521 }
 0x29c   : > { %5922 = vst [vmem:[#allocation28_spill] sm:$0xff] %v4707_v34  ;;  %v656_v14 = vadd.f32 %v655_v19, %v4707_v34 }
 0x29d   : > { %v657_v25 = vpop.f32.mrf.mxu1 }
 0x29e   : > { %v658_v13 = vadd.f32 %v657_v25, %v4707_v34 }
 0x29f   : > { %924 = vperm.xlu1 %3680, %v884_v39   ;;  %v661_v39 = vpop.f32.mrf.mxu1  ;;  %v4711_v58 = vpop.permute.xlu1 %516 }
 0x2a0   : > { %v650_v30 = vadd.f32 %v649_v29, %v4711_v58  ;;  %v652_v56 = vadd.f32 %v651_v59, %v4711_v58  ;;  %v662_v59 = vadd.f32 %v661_v39, %v4703_v20  ;;  %v646_v39 = vadd.f32 %v645_v55, %v4705_v18 }
 0x2a1   : > { %v663_v0 = vpop.f32.mrf.mxu1 }
 0x2a3   : > { %v667_v9 = vpop.f32.mrf.mxu1 }
 0x2a4   : > { %v668_v19 = vadd.f32 %v667_v9, %v4701_v57 }
 0x2a5   : > { %v669_v43 = vpop.f32.mrf.mxu1 }
 0x2a6   : > { %v670_v25 = vadd.f32 %v669_v43, %v4701_v57 }
 0x302   : > { %v945_v6 = vpop.permute.xlu1 %944 }
 0x303   : > { %v967_v1 = vadd.f32 %v945_v6, %v656_v14  ;;  %v968_v63 = vadd.f32 %v945_v6, %v658_v13  ;;  %v920_v13 = vpop.permute.xlu0 %919 }
 0x305   : > { %v3228_v50 = vmul.f32 -1.442695, %v967_v1  ;;  %v3229_v48 = vmul.f32 -1.442695, %v968_v63  ;;  %v626_v63 = vadd.f32 %v625_v40, %v4717_v62  ;;  %v644_v40 = vadd.f32 %v643_v54, %v4705_v18 }
 0x306   : > { %v940_v45 = vpop.permute.xlu1 %939  ;;  %v640_v54 = vadd.f32 %v4699_v53, %v4709_v35 }
 0x307   : > { %3681 = vpow2.f32 %v3228_v50  ;;  %v965_v42 = vadd.f32 %v940_v45, %v650_v30  ;;  %v966_v44 = vadd.f32 %v940_v45, %v652_v56  ;;  %v628_v50 = vadd.f32 %v627_v61, %v4717_v62 }
 0x308   : > { %3683 = vpow2.f32 %v3229_v48  ;;  %v664_v45 = vadd.f32 %v663_v0, %v4703_v20  ;;  %v957_v56 = vadd.f32 %v920_v13, %v626_v63 }
 0x309   : > { %v3226_v14 = vmul.f32 -1.442695, %v965_v42  ;;  %v3227_v6 = vmul.f32 -1.442695, %v966_v44  ;;  %v958_v43 = vadd.f32 %v920_v13, %v628_v50  ;;  %v638_v13 = vadd.f32 %v4697_v28, %v4709_v35 }
 0x30a   : > { %v955_v34 = vpop.permute.xlu1 %954 }
 0x30b   : > { %3685 = vpow2.f32 %v3226_v14  ;;  %v971_v1 = vadd.f32 %v955_v34, %v668_v19  ;;  %v972_v29 = vadd.f32 %v955_v34, %v670_v25  ;;  %v3218_v19 = vmul.f32 -1.442695, %v957_v56 }
 0x30c   : > { %3687 = vpow2.f32 %v3227_v6  ;;  %v3219_v61 = vmul.f32 -1.442695, %v958_v43  ;;  %v632_v43 = vadd.f32 %v4693_v41, %v4713_v60 }
 0x30d   : > { %v3232_v30 = vmul.f32 -1.442695, %v971_v1  ;;  %v3233_v48 = vmul.f32 -1.442695, %v972_v29 }
 0x30e   : > { %v950_v42 = vpop.permute.xlu1 %949 }
 0x30f   : > { %3689 = vpow2.f32 %v3232_v30  ;;  %v969_v44 = vadd.f32 %v950_v42, %v662_v59  ;;  %v970_v9 = vadd.f32 %v950_v42, %v664_v45 }
 0x310   : > { %3691 = vpow2.f32 %v3233_v48 }
 0x311   : > { %v3230_v34 = vmul.f32 -1.442695, %v969_v44  ;;  %v3231_v25 = vmul.f32 -1.442695, %v970_v9  ;;  %v634_v9 = vadd.f32 %v4695_v49, %v4713_v60 }
 0x312   : > { %v935_v14 = vpop.permute.xlu1 %934 }
 0x313   : > { %3693 = vpow2.f32 %v3230_v34  ;;  %v963_v0 = vadd.f32 %v935_v14, %v644_v40  ;;  %v964_v6 = vadd.f32 %v935_v14, %v646_v39 }
 0x314   : > { %v3682_v63 = vpop.eup %3681  ;;  %3695 = vpow2.f32 %v3231_v25 }
 0x315   : > { %v3684_v1 = vpop.eup %3683  ;;  %3697 = vpow2.f32 %v3218_v19  ;;  %v1031_v29 = vadd.f32 1.0, %v3682_v63  ;;  %v3224_v59 = vmul.f32 -1.442695, %v963_v0  ;;  %v3225_v55 = vmul.f32 -1.442695, %v964_v6 }
 0x316   : > { %3699 = vpow2.f32 %v3219_v61  ;;  %v1032_v50 = vadd.f32 1.0, %v3684_v1  ;;  %v930_v45 = vpop.permute.xlu1 %929 }
 0x317   : > { %3701 = vrcp.f32 %v1031_v29  ;;  %v961_v56 = vadd.f32 %v930_v45, %v638_v13  ;;  %v962_v30 = vadd.f32 %v930_v45, %v640_v54 }
 0x318   : > { %v3686_v48 = vpop.eup %3685  ;;  %3703 = vrcp.f32 %v1032_v50 }
 0x319   : > { %v3688_v28 = vpop.eup %3687  ;;  %v1029_v42 = vadd.f32 1.0, %v3686_v48  ;;  %3705 = vpow2.f32 %v3224_v59  ;;  %v3222_v44 = vmul.f32 -1.442695, %v961_v56  ;;  %v3223_v40 = vmul.f32 -1.442695, %v962_v30 }
 0x31a   : > { %v1030_v53 = vadd.f32 1.0, %v3688_v28  ;;  %3707 = vpow2.f32 %v3225_v55  ;;  %v925_v19 = vpop.permute.xlu1 %924 }
 0x31b   : > { %3709 = vrcp.f32 %v1029_v42  ;;  %v959_v34 = vadd.f32 %v925_v19, %v632_v43  ;;  %v960_v25 = vadd.f32 %v925_v19, %v634_v9  ;;  %v4747_v19 = vsub.f32 %v4419_v21, %v4425_v23 }
 0x31c   : > { %v3690_v39 = vpop.eup %3689  ;;  %3711 = vrcp.f32 %v1030_v53  ;;  %v4743_v53 = vsub.f32 %v4374_v3, %v4380_v5  ;;  %v4755_v3 = vsub.f32 %v4385_v7, %v4393_v10 }
 0x31d   : > { %v3692_v61 = vpop.eup %3691  ;;  %v1035_v14 = vadd.f32 1.0, %v3690_v39  ;;  %3713 = vpow2.f32 %v3222_v44  ;;  %v3220_v41 = vmul.f32 -1.442695, %v959_v34  ;;  %v3221_v6 = vmul.f32 -1.442695, %v960_v25  ;;  %5925 = vst [vmem:[#allocation31_spill] sm:$0xff] %v4747_v19 }
 0x31e   : > { %v1036_v0 = vadd.f32 1.0, %v3692_v61  ;;  %3715 = vpow2.f32 %v3223_v40  ;;  %v4739_v44 = vsub.f32 %v4371_v2, %v4377_v4  ;;  %5924 = vst [vmem:[#allocation30_spill] sm:$0xff] %v4743_v53  ;;  %v4751_v34 = vsub.f32 %v4422_v22, %v4428_v24  ;;  %5927 = vst [vmem:[#allocation33_spill] sm:$0xff] %v4755_v3 }
 0x31f   : > { %3717 = vrcp.f32 %v1035_v14  ;;  %v4759_v14 = vsub.f32 %v4399_v12, %v4409_v16  ;;  %v4764_v22 = vsub.f32 %v4388_v8, %v4396_v11 }
 0x320   : > { %v3694_v63 = vpop.eup %3693  ;;  %3719 = vrcp.f32 %v1036_v0  ;;  %5923 = vst [vmem:[#allocation29_spill] sm:$0xff] %v4739_v44  ;;  %5926 = vst [vmem:[#allocation32_spill] sm:$0xff] %v4751_v34  ;;  %v4768_v0 = vsub.f32 %v4406_v15, %v4412_v17 }
 0x321   : > { %v3696_v49 = vpop.eup %3695  ;;  %v1033_v13 = vadd.f32 1.0, %v3694_v63  ;;  %3721 = vpow2.f32 %v3220_v41  ;;  %5928 = vst [vmem:[#allocation34_spill] sm:$0xff] %v4759_v14  ;;  %5929 = vst [vmem:[#allocation35_spill] sm:$0xff] %v4764_v22 }
 0x322   : > { %v3698_v1 = vpop.eup %3697  ;;  %v1034_v29 = vadd.f32 1.0, %v3696_v49  ;;  %3723 = vpow2.f32 %v3221_v6  ;;  %5930 = vst [vmem:[#allocation36_spill] sm:$0xff] %v4768_v0 }
 0x323   : > { %v3700_v59 = vpop.eup %3699  ;;  %3725 = vrcp.f32 %v1033_v13  ;;  %v1021_v56 = vadd.f32 1.0, %v3698_v1 }
 0x324   : > { %v3702_v54 = vpop.eup %3701  ;;  %3727 = vrcp.f32 %v1034_v29  ;;  %v1022_v43 = vadd.f32 1.0, %v3700_v59 }
 0x325   : > { %v3704_v50 = vpop.eup %3703 }
 0x326   : > { %v3706_v55 = vpop.eup %3705 }
 0x327   : > { %v3708_v45 = vpop.eup %3707  ;;  %v1027_v30 = vadd.f32 1.0, %v3706_v55  ;;  %v1095_v55 = vmul.f32 %v3702_v54, %v4759_v14  ;;  %v4788_v54 = vsub.f32 %v4436_v27, %v4444_v32  ;;  %v4989_v14 = vld [vmem:[%s4362_s28 + $0x80] sm:$0xff] }
 0x328   : > { %v3710_v48 = vpop.eup %3709  ;;  %v1028_v28 = vadd.f32 1.0, %v3708_v45  ;;  %5957 = vst [vmem:[#allocation54_spill] sm:$0xff] %v4989_v14 }
 0x329   : > { %v3712_v42 = vpop.eup %3711  ;;  %3729 = vrcp.f32 %v1027_v30  ;;  %v1093_v49 = vmul.f32 %v3710_v48, %v4747_v19  ;;  %v4781_v30 = vsub.f32 %v4433_v26, %v4441_v31  ;;  %5932 = vst [vmem:[#allocation38_spill] sm:$0xff] %v4788_v54 }
 0x32a   : > { %v3714_v9 = vpop.eup %3713  ;;  %3731 = vrcp.f32 %v1028_v28  ;;  %v1094_v13 = vmul.f32 %v3712_v42, %v4751_v34  ;;  %v4992_v34 = vld [vmem:[%s4362_s28 + $0x88] sm:$0xff] }
 0x32b   : > { %v3716_v40 = vpop.eup %3715  ;;  %3733 = vrcp.f32 %v1021_v56  ;;  %v1025_v25 = vadd.f32 1.0, %v3714_v9  ;;  %5931 = vst [vmem:[#allocation37_spill] sm:$0xff] %v4781_v30  ;;  %v1109_v48 = vadd.f32 %v1093_v49, %v4425_v23  ;;  %v1111_v9 = vadd.f32 %v1095_v55, %v4409_v16  ;;  %5958 = vst [vmem:[#allocation55_spill] sm:$0xff] %v4992_v34 }
 0x32c   : > { %v3718_v2 = vpop.eup %3717  ;;  %3735 = vrcp.f32 %v1022_v43  ;;  %v1026_v39 = vadd.f32 1.0, %v3716_v40  ;;  %v1110_v43 = vadd.f32 %v1094_v13, %v4428_v24  ;;  %v4805_v16 = vsub.f32 %v4479_v46, %v4489_v51 }
 0x32d   : > { %v3720_v61 = vpop.eup %3719  ;;  %3737 = vrcp.f32 %v1025_v25  ;;  %v1099_v21 = vmul.f32 %v3718_v2, %v4739_v44 }
 0x32e   : > { %v3722_v41 = vpop.eup %3721  ;;  %3739 = vrcp.f32 %v1026_v39  ;;  %v1100_v7 = vmul.f32 %v3720_v61, %v4743_v53  ;;  %v1403_v23 = vadd.f32 %v1110_v43, %v1109_v48  ;;  %5935 = vst [vmem:[#allocation41_spill] sm:$0xff] %v4805_v16 }
 0x32f   : > { %v3724_v6 = vpop.eup %3723  ;;  %v1023_v63 = vadd.f32 1.0, %v3722_v41  ;;  %v1115_v12 = vadd.f32 %v1099_v21, %v4377_v4  ;;  %v1096_v4 = vmul.f32 %v3704_v50, %v4768_v0  ;;  %v5937_v41 = vld [vmem:[#allocation13_spill] sm:$0xff]  ;;  %v4982_v0 = vld [vmem:[%s4354_s15 + $0x80] sm:$0xff] }
 0x330   : > { %v3726_v1 = vpop.eup %3725  ;;  %v1024_v29 = vadd.f32 1.0, %v3724_v6  ;;  %v1116_v8 = vadd.f32 %v1100_v7, %v4380_v5  ;;  %v5938_v7 = vld [vmem:[#allocation11_spill] sm:$0xff]  ;;  %v5940_v6 = vld [vmem:[#allocation14_spill] sm:$0xff]  ;;  %5955 = vst [vmem:[#allocation52_spill] sm:$0xff] %v4982_v0 }
 0x331   : > { %v3728_v59 = vpop.eup %3727  ;;  %3741 = vrcp.f32 %v1023_v63  ;;  %v1097_v15 = vmul.f32 %v3726_v1, %v4755_v3  ;;  %v1112_v26 = vadd.f32 %v1096_v4, %v4412_v17  ;;  %v4815_v46 = vsub.f32 %v5938_v7, %v5937_v41  ;;  %v5941_v63 = vld [vmem:[#allocation12_spill] sm:$0xff]  ;;  %v4841_v4 = vld [vmem:[%s4354_s15 + $0xe0] sm:$0xff]  ;;  %v4979_v3 = vld [vmem:[%s4362_s28 + $0x98] sm:$0xff] }
 0x332   : > { %3743 = vrcp.f32 %v1024_v29  ;;  %1149 = vmatprep.subr.mxu1 %v1116_v8  ;;  %v1412_v45 = vadd.f32 %v1116_v8, %v1115_v12  ;;  %v1098_v56 = vmul.f32 %v3728_v59, %v4764_v22  ;;  %v4828_v59 = vld [vmem:[%s4354_s15 + $0xf0] sm:$0xff]  ;;  %v292_v7 = vld [vmem:[%s5816_s2 + $0x20] sm:$0xff]  ;;  %5954 = vst [vmem:[#allocation51_spill] sm:$0xff] %v4979_v3 }
 0x333   : > { %1150 = vmatpush1.msra.mxu1 %v1115_v12  ;;  %v1113_v5 = vadd.f32 %v1097_v15, %v4393_v10  ;;  %v4795_v10 = vsub.f32 %v4447_v33, %v4457_v37  ;;  %v4809_v33 = vsub.f32 %v4482_v47, %v4492_v52  ;;  %v1406_v39 = vadd.f32 %v1112_v26, %v1111_v9  ;;  %v4831_v15 = vld [vmem:[%s4354_s15 + $0xf8] sm:$0xff]  ;;  %v4976_v22 = vld [vmem:[%s4362_s28 + $0x90] sm:$0xff] }
 0x334   : > { %1413 = vadd.xlane.f32.xlu1 %v1412_v45  ;;  %v1114_v28 = vadd.f32 %v1098_v56, %v4396_v11  ;;  %v4800_v11 = vsub.f32 %v4454_v36, %v4460_v38  ;;  %5939 = vst [vmem:[#allocation13_spill] sm:$0xff] %v4815_v46  ;;  %v4820_v12 = vsub.f32 %v5941_v63, %v5940_v6  ;;  %v4835_v56 = vld [vmem:[%s4362_s28 + $0xf0] sm:$0xff]  ;;  %5953 = vst [vmem:[#allocation50_spill] sm:$0xff] %v4976_v22 }
 0x335   : > { %5933 = vst [vmem:[#allocation39_spill] sm:$0xff] %v4795_v10  ;;  %5936 = vst [vmem:[#allocation42_spill] sm:$0xff] %v4809_v33 }
 0x336   : > { %v3730_v42 = vpop.eup %3729  ;;  %1151 = vmatprep.subr.mxu1 %v1114_v28  ;;  %v1409_v50 = vadd.f32 %v1114_v28, %v1113_v5  ;;  %5934 = vst [vmem:[#allocation40_spill] sm:$0xff] %v4800_v11  ;;  %5942 = vst [vmem:[#allocation11_spill] sm:$0xff] %v4820_v12  ;;  %v4851_v28 = vld [vmem:[%s4362_s28 + $0xe8] sm:$0xff] }
 0x337   : > { %v3732_v40 = vpop.eup %3731  ;;  %1152 = vmatpush1.msra.mxu1 %v1113_v5  ;;  %v1091_v24 = vmul.f32 %v3730_v42, %v4781_v30 }
 0x338   : > { %v3734_v27 = vpop.eup %3733  ;;  %1410 = vadd.xlane.f32.xlu0 %v1409_v50  ;;  %1153 = vmatprep.subr.mxu1 %v1112_v26  ;;  %v1092_v17 = vmul.f32 %v3732_v40, %v4788_v54  ;;  %v4859_v40 = vadd.f32 %v4835_v56, %v4828_v59 }
 0x339   : > { %v3736_v25 = vpop.eup %3735  ;;  %1404 = vadd.xlane.f32.xlu1 %v1403_v23  ;;  %1154 = vmatpush1.msra.mxu1 %v1111_v9  ;;  %v1107_v61 = vadd.f32 %v1091_v24, %v4441_v31  ;;  %v1085_v13 = vmul.f32 %v3734_v27, %v4805_v16  ;;  %v4866_v24 = vld [vmem:[%s4354_s15 + $0xd0] sm:$0xff]  ;;  %v4869_v27 = vld [vmem:[%s4354_s15 + $0xd8] sm:$0xff] }
 0x33a   : > { %v3738_v2 = vpop.eup %3737  ;;  %1155 = vmatprep.subr.mxu1 %v1110_v43  ;;  %v1108_v36 = vadd.f32 %v1092_v17, %v4444_v32  ;;  %v1086_v49 = vmul.f32 %v3736_v25, %v4809_v33  ;;  %v4848_v43 = vld [vmem:[%s4362_s28 + $0xe0] sm:$0xff]  ;;  %v4880_v17 = vld [vmem:[%s4362_s28 + $0xd0] sm:$0xff]  ;;  %v4883_v25 = vld [vmem:[%s4362_s28 + $0xd8] sm:$0xff] }
 0x33b   : > { %v3740_v21 = vpop.eup %3739  ;;  %1156 = vmatpush1.msra.mxu1 %v1109_v48  ;;  %v1089_v47 = vmul.f32 %v3738_v2, %v4795_v10  ;;  %v4845_v48 = vld [vmem:[%s4354_s15 + $0xe8] sm:$0xff]  ;;  %v1101_v26 = vadd.f32 %v1085_v13, %v4489_v51  ;;  %v4886_v2 = vld [vmem:[%s4354_s15 + $0xc0] sm:$0xff]  ;;  %v4908_v63 = vadd.f32 %v4883_v25, %v4869_v27 }
 0x33c   : > { %1407 = vadd.xlane.f32.xlu0 %v1406_v39  ;;  %1157 = vmatprep.subr.mxu1 %v1108_v36  ;;  %v1090_v31 = vmul.f32 %v3740_v21, %v4800_v11  ;;  %v1400_v8 = vadd.f32 %v1108_v36, %v1107_v61  ;;  %v1102_v50 = vadd.f32 %v1086_v49, %v4492_v52  ;;  %v4889_v36 = vld [vmem:[%s4354_s15 + $0xc8] sm:$0xff] }
 0x33d   : > { %1158 = vmatpush1.msra.mxu1 %v1107_v61  ;;  %v1105_v32 = vadd.f32 %v1089_v47, %v4457_v37  ;;  %v4838_v37 = vld [vmem:[%s4362_s28 + $0xf8] sm:$0xff]  ;;  %v4873_v52 = vadd.f32 %v4848_v43, %v4841_v4  ;;  %v4877_v51 = vadd.f32 %v4851_v28, %v4845_v48  ;;  %v4892_v61 = vld [vmem:[%s4362_s28 + $0xc0] sm:$0xff]  ;;  %v4895_v21 = vld [vmem:[%s4362_s28 + $0xc8] sm:$0xff]  ;;  %v5009_v11 = vadd.f32 %v4989_v14, %v4982_v0 }
 0x33e   : > { %v3742_v1 = vpop.eup %3741  ;;  %v1106_v29 = vadd.f32 %v1090_v31, %v4460_v38  ;;  %v4863_v23 = vadd.f32 %v4838_v37, %v4831_v15  ;;  %v4911_v31 = vld [vmem:[%s4354_s15 + $0xb0] sm:$0xff]  ;;  %v4920_v13 = vadd.f32 %v4892_v61, %v4886_v2 }
 0x33f   : > { %v3744_v55 = vpop.eup %3743  ;;  %v1087_v45 = vmul.f32 %v3742_v1, %v4815_v46  ;;  %5943 = vst [vmem:[#allocation14_spill] sm:$0xff] %v4911_v31  ;;  %v2067_v49 = vadd.f32 %v4877_v51, %v4873_v52  ;;  %v4924_v1 = vadd.f32 %v4895_v21, %v4889_v36  ;;  %v339_v46 = vld [vmem:[%s5818_s4 + $0xa8] sm:$0xff] }
 0x340   : > { %1159 = vmatprep.subr.mxu1 %v1106_v29  ;;  %1401 = vadd.xlane.f32.xlu0 %v1400_v8  ;;  %v1397_v5 = vadd.f32 %v1106_v29, %v1105_v32  ;;  %v1088_v38 = vmul.f32 %v3744_v55, %v4820_v12  ;;  %v2070_v47 = vadd.f32 %v4863_v23, %v4859_v40  ;;  %v4927_v29 = vld [vmem:[%s4362_s28 + $0xb0] sm:$0xff]  ;;  %v4930_v8 = vld [vmem:[%s4362_s28 + $0xb8] sm:$0xff]  ;;  %v4933_v55 = vld [vmem:[%s4354_s15 + $0xa0] sm:$0xff] }
 0x341   : > { %1160 = vmatpush1.msra.mxu1 %v1105_v32  ;;  %v1103_v42 = vadd.f32 %v1087_v45, %v5937_v41  ;;  %v1391_v41 = vadd.f32 %v1102_v50, %v1101_v26  ;;  %v4914_v32 = vld [vmem:[%s4354_s15 + $0xb8] sm:$0xff]  ;;  %5945 = vst [vmem:[#allocation43_spill] sm:$0xff] %v4930_v8  ;;  %5946 = vst [vmem:[#allocation44_spill] sm:$0xff] %v4933_v55  ;;  %v4937_v45 = vld [vmem:[%s4354_s15 + $0xa8] sm:$0xff] }
 0x342   : > { %1398 = vadd.xlane.f32.xlu1 %v1397_v5  ;;  %v1104_v9 = vadd.f32 %v1088_v38, %v5940_v6  ;;  %v4904_v6 = vadd.f32 %v4880_v17, %v4866_v24  ;;  %5944 = vst [vmem:[#allocation12_spill] sm:$0xff] %v4914_v32  ;;  %5947 = vst [vmem:[#allocation45_spill] sm:$0xff] %v4937_v45  ;;  %v4940_v5 = vld [vmem:[%s4362_s28 + $0xa0] sm:$0xff]  ;;  %v4943_v38 = vld [vmem:[%s4362_s28 + $0xa8] sm:$0xff] }
 0x343   : > { %5948 = vst [vmem:[#allocation46_spill] sm:$0xff] %v4940_v5  ;;  %5949 = vst [vmem:[#allocation47_spill] sm:$0xff] %v4943_v38  ;;  %v4969_v53 = vadd.f32 %v4940_v5, %v4933_v55  ;;  %v4973_v44 = vadd.f32 %v4943_v38, %v4937_v45 }
 0x344   : > { %1161 = vmatprep.subr.mxu1 %v1104_v9  ;;  %v1394_v39 = vadd.f32 %v1104_v9, %v1103_v42  ;;  %v4953_v9 = vadd.f32 %v4927_v29, %v4911_v31  ;;  %v310_v31 = vld [vmem:[%s5817_s3 + $0x80] sm:$0xff] }
 0x345   : > { %1162 = vmatpush1.msra.mxu1 %v1103_v42  ;;  %v5950_v42 = vmov 0.0  }
 0x346   : > { %1395 = vadd.xlane.f32.xlu0 %v1394_v39  ;;  %1163 = vmatprep.subr.mxu1 %v1102_v50  ;;  %v293_v50 = vld [vmem:[%s5816_s2 + $0x28] sm:$0xff]  ;;  %v4957_v39 = vadd.f32 %v4930_v8, %v4914_v32 }
 0x347   : > { %1392 = vadd.xlane.f32.xlu1 %v1391_v41  ;;  %1164 = vmatpush1.msra.mxu1 %v1101_v26  ;;  %v2064_v26 = vadd.f32 %v4908_v63, %v4904_v6  ;;  %v4960_v41 = vld [vmem:[%s4354_s15 + $0x90] sm:$0xff] }
 0x348   : > { %3234 = vmatmul.mubr.msk.f32.vlgmr.msra.gmra.mxu1 %vm406_vm0, %v292_v7  ;;  %5951 = vst [vmem:[#allocation48_spill] sm:$0xff] %v4960_v41  ;;  %v4963_v7 = vld [vmem:[%s4354_s15 + $0x98] sm:$0xff]  ;;  %v2058_v19 = vadd.f32 %v4957_v39, %v4953_v9  ;;  %v4999_v54 = vadd.f32 %v4976_v22, %v4960_v41 }
 0x349   : > { %1203 = vmatprep.mubr.f32.mxu1 %v5950_v42  ;;  %5952 = vst [vmem:[#allocation49_spill] sm:$0xff] %v4963_v7  ;;  %v5003_v30 = vadd.f32 %v4979_v3, %v4963_v7 }
 0x34a   : > { %2071 = vadd.xlane.f32.xlu0 %v2070_v47  ;;  %v2061_v47 = vadd.f32 %v4924_v1, %v4920_v13 }
 0x34b   : > { %2068 = vadd.xlane.f32.xlu1 %v2067_v49  ;;  %v4986_v49 = vld [vmem:[%s4354_s15 + $0x88] sm:$0xff]  ;;  %v2052_v10 = vadd.f32 %v5003_v30, %v4999_v54  ;;  %s4158_s15 = smov [#allocation7]  }
 0x34c   : > { %3235 = vmatmul.mubr.msk.f32.gmra.mxu1 %vm406_vm0, %v293_v50  ;;  %5956 = vst [vmem:[#allocation53_spill] sm:$0xff] %v4986_v49  ;;  %v2055_v50 = vadd.f32 %v4973_v44, %v4969_v53  ;;  %s4086_s29 = sshll.u32 %s4158_s15, 4  ;;  %s4087_s29 = int_to_ptr.vmem [resolvable:$false] %s4086_s29 }
 0x34d   : > { %1342 = vmatprep.mubr.f32.mxu1 %v5950_v42  ;;  %s4088_s13 = scalar_lea.vmem %s4087_s29, 8192  ;;  %p4089_p10 = scmp.lt.s32.totalorder %s5767_s17, %s4087_s29 }
 0x34e   : > { %2065 = vadd.xlane.f32.xlu0 %v2064_v26  ;;  %v5013_v26 = vadd.f32 %v4992_v34, %v4986_v49  ;;  %p4090_p0 = scmp.lt.s32.totalorder %s4088_s13, %s4082_s26 }
 0x34f   : > { %2062 = vadd.xlane.f32.xlu1 %v2061_v47  ;;  %v338_v47 = vld [vmem:[%s5818_s4 + $0xa0] sm:$0xff] }
 0x350   : > { %v2049_v12 = vadd.f32 %v5013_v26, %v5009_v11  ;;  %p4091_p2 = por %p4090_p0, %p4089_p10 }
 0x352   : > { %2059 = vadd.xlane.f32.xlu0 %v2058_v19  ;;  %p4092_p4 = pnand %p4091_p2, %p4085_p7 }
 0x353   : > { %2056 = vadd.xlane.f32.xlu1 %v2055_v50 }
 0x356   : > { %2053 = vadd.xlane.f32.xlu0 %v2052_v10 }
 0x357   : > { %2050 = vadd.xlane.f32.xlu1 %v2049_v12 }
 0x368   : > { %1119 = vperm.xlu1 %3680, %v338_v47  }
 0x36c   : > { %1124 = vperm.xlu0 %3679, %v339_v46  }
 0x3bd   : > { %v1414_v19 = vpop.xlane.xlu1 %1413 }
 0x3be   : > { %v1422_v33 = vmul.f32 0.00390625, %v1414_v19 }
 0x3c0   : > { %3517 = vmatprep.subr.mxu0 %v1422_v33 }
 0x3c1   : > { %3518 = vmatpush3.msra.mxu0 %v1422_v33  ;;  %v1411_v50 = vpop.xlane.xlu0 %1410 }
 0x3c2   : > { %v1421_v16 = vmul.f32 0.00390625, %v1411_v50  ;;  %v1405_v49 = vpop.xlane.xlu1 %1404 }
 0x3c3   : > { %v1419_v34 = vmul.f32 0.00390625, %v1405_v49  ;;  %v5960_v49 = vld [vmem:[#allocation18_spill] sm:$0xff] }
 0x3c4   : > { %3519 = vmatprep.subr.mxu0 %v1421_v16 }
 0x3c5   : > { %3520 = vmatpush3.msra.mxu0 %v1421_v16  ;;  %v1408_v10 = vpop.xlane.xlu0 %1407  ;;  %v5959_v16 = vld [vmem:[#allocation15_spill] sm:$0xff] }
 0x3c6   : > { %v1420_v12 = vmul.f32 0.00390625, %v1408_v10 }
 0x3c8   : > { %3521 = vmatprep.subr.mxu0 %v1420_v12 }
 0x3c9   : > { %3522 = vmatpush3.msra.mxu0 %v1420_v12  ;;  %v1402_v47 = vpop.xlane.xlu0 %1401 }
 0x3ca   : > { %v1418_v0 = vmul.f32 0.00390625, %v1402_v47  ;;  %3523 = vmatprep.subr.mxu0 %v1419_v34 }
 0x3cb   : > { %v1399_v14 = vpop.xlane.xlu1 %1398  ;;  %3524 = vmatpush3.msra.mxu0 %v1419_v34 }
 0x3cc   : > { %v1417_v46 = vmul.f32 0.00390625, %v1399_v14  ;;  %3525 = vmatprep.subr.mxu0 %v1418_v0 }
 0x3cd   : > { %3526 = vmatpush3.msra.mxu0 %v1418_v0 }
 0x3ce   : > { %3527 = vmatprep.subr.mxu0 %v1417_v46 }
 0x3cf   : > { %v1396_v33 = vpop.xlane.xlu0 %1395  ;;  %3528 = vmatpush3.msra.mxu0 %v1417_v46 }
 0x3d0   : > { %v1416_v19 = vmul.f32 0.00390625, %v1396_v33  ;;  %v1393_v50 = vpop.xlane.xlu1 %1392 }
 0x3d1   : > { %v1415_v7 = vmul.f32 0.00390625, %v1393_v50 }
 0x3d2   : > { %3529 = vmatprep.subr.mxu0 %v1416_v19 }
 0x3d3   : > { %3530 = vmatpush3.msra.mxu0 %v1416_v19  ;;  %v2072_v34 = vpop.xlane.xlu0 %2071 }
 0x3d4   : > { %3531 = vmatprep.subr.mxu0 %v1415_v7  ;;  %v2069_v14 = vpop.xlane.xlu1 %2068 }
 0x3d5   : > { %3532 = vmatpush3.msra.mxu0 %v1415_v7 }
 0x3d6   : > { %3534 = vmatmul.mubr.msk.f32.vlgmr.msra.gmra.mxu0 %vm406_vm0, %v5959_v16 }
 0x3d7   : > { %3540 = vmatprep.mubr.msk.f32.mxu0 %vm534_vm1, %v5960_v49  ;;  %v2066_v10 = vpop.xlane.xlu0 %2065 }
 0x3d8   : > { %v5029_v0 = vpop.xlane.xlu1 %2062 }
 0x3db   : > { %v5031_v12 = vpop.xlane.xlu0 %2059 }
 0x3dc   : > { %v5033_v47 = vpop.xlane.xlu1 %2056 }
 0x3df   : > { %v5035_v46 = vpop.xlane.xlu0 %2053 }
 0x3e0   : > { %v5037_v33 = vpop.xlane.xlu1 %2050 }
 0x3e4   : > { %v5041_v3 = vpop.permute.xlu1 %1119 }
 0x3e5   : > { %5962 = vst [vmem:[#allocation18_spill] sm:$0xff] %v5041_v3 }
 0x3e7   : > { %v5039_v16 = vpop.permute.xlu0 %1124 }
 0x3e8   : > { %5961 = vst [vmem:[#allocation15_spill] sm:$0xff] %v5039_v16 }
 0x408   : > { %v1199_v7 = vpop.f32.mrf.mxu1 }
 0x409   : > { %v1200_v38 = vadd.f32 %v1199_v7, %v5041_v3 }
 0x40a   : > { %v1201_v19 = vpop.f32.mrf.mxu1 }
 0x40b   : > { %v1202_v22 = vadd.f32 %v1201_v19, %v5041_v3  ;;  %v1210_v8 = vmax.f32 %v1200_v38, 0.0  ;;  %v2073_v38 = vmul.f32 0.00390625, %v5037_v33 }
 0x40c   : > { %v1205_v50 = vpop.f32.mrf.mxu1 }
 0x40d   : > { %v1206_v49 = vadd.f32 %v1205_v50, %v5039_v16  ;;  %v1211_v32 = vmax.f32 %v1202_v22, 0.0 }
 0x40e   : > { %v1207_v41 = vpop.f32.mrf.mxu1 }
 0x40f   : > { %v1208_v45 = vadd.f32 %v1207_v41, %v5039_v16  ;;  %v1212_v5 = vmax.f32 %v1206_v49, 0.0  ;;  %v5963_v41 = vld [vmem:[#allocation19_spill] sm:$0xff]  ;;  %v5964_v49 = vld [vmem:[#allocation20_spill] sm:$0xff] }
 0x411   : > { %v1213_v55 = vmax.f32 %v1208_v45, 0.0 }
 0x413   : > { %1306 = vmatprep.subr.mxu1 %v1213_v55 }
 0x414   : > { %1307 = vmatpush1.msra.mxu1 %v1212_v5  ;;  %v5968_v5 = vld [vmem:[#allocation24_spill] sm:$0xff] }
 0x415   : > { %1308 = vmatprep.subr.mxu1 %v1211_v32  ;;  %v5965_v32 = vld [vmem:[#allocation21_spill] sm:$0xff] }
 0x416   : > { %1309 = vmatpush1.msra.mxu1 %v1210_v8  ;;  %v5967_v8 = vld [vmem:[#allocation23_spill] sm:$0xff] }
 0x417   : > { %3236 = vmatmul.mubr.msk.f32.vlgmr.msra.gmra.mxu1 %vm534_vm1, %v310_v31  ;;  %v5966_v31 = vld [vmem:[#allocation22_spill] sm:$0xff] }
 0x418   : > { %1348 = vmatprep.mubr.f32.mxu1 %v5950_v42 }
 0x496   : > { %v3535_v19 = vpop.f32.mrf.mxu0 }
 0x497   : > { %v1495_v50 = vadd.f32 %v3535_v19, %v5963_v41 }
 0x498   : > { %v1489_v7 = vpop.f32.mrf.mxu0 }
 0x499   : > { %v1499_v45 = vmax.f32 %v1495_v50, 0.0  ;;  %v1490_v22 = vadd.f32 %v1489_v7, %v5964_v49 }
 0x49b   : > { %v1498_v55 = vmax.f32 %v1490_v22, 0.0  ;;  %3536 = vmatprep.subr.mxu0 %v1499_v45 }
 0x49c   : > { %3537 = vmatpush3.msra.mxu0 %v1499_v45 }
 0x49d   : > { %3538 = vmatprep.subr.mxu0 %v1498_v55 }
 0x49e   : > { %3539 = vmatpush3.msra.mxu0 %v1498_v55 }
 0x49f   : > { %3541 = vmatmul.mubr.msk.f32.vlgmr.msra.gmra.mxu0 %vm534_vm1, %v5965_v32  ;;  %1871 = vmatprep.subr.mxu0 %v4863_v23  ;;  %v5970_v23 = vld [vmem:[#allocation26_spill] sm:$0xff] }
 0x4a0   : > { %1872 = vmatpush1.msra.mxu0 %v4859_v40  ;;  %3543 = vmatprep.mubr.msk.f32.mxu0 %vm534_vm1, %v5966_v31  ;;  %v5969_v40 = vld [vmem:[#allocation25_spill] sm:$0xff] }
 0x4a1   : > { %1873 = vmatprep.subr.mxu0 %v4877_v51  ;;  %v5971_v51 = vld [vmem:[#allocation27_spill] sm:$0xff]  ;;  %v5979_v31 = vld [vmem:[#allocation17_spill] sm:$0xff] }
 0x4a2   : > { %1874 = vmatpush1.msra.mxu0 %v4873_v52  ;;  %v2080_v52 = vmul.f32 0.00390625, %v2072_v34  ;;  %v312_v34 = vld [vmem:[%s5817_s3 + $0x90] sm:$0xff] }
 0x4a3   : > { %3544 = vmatmul.mubr.msk.f32.gmra.mxu0 %vm534_vm1, %v5967_v8  ;;  %1875 = vmatprep.subr.mxu0 %v4908_v63  ;;  %v2078_v63 = vmul.f32 0.00390625, %v2066_v10  ;;  %v314_v10 = vld [vmem:[%s5817_s3 + $0xa0] sm:$0xff] }
 0x4a4   : > { %1876 = vmatpush1.msra.mxu0 %v4904_v6  ;;  %3546 = vmatprep.mubr.msk.f32.mxu0 %vm534_vm1, %v5968_v5  ;;  %v2079_v6 = vmul.f32 0.00390625, %v2069_v14  ;;  %v313_v14 = vld [vmem:[%s5817_s3 + $0x98] sm:$0xff] }
 0x4a5   : > { %1877 = vmatprep.subr.mxu0 %v4924_v1  ;;  %v2074_v1 = vmul.f32 0.00390625, %v5035_v46 }
 0x4a6   : > { %1878 = vmatpush1.msra.mxu0 %v4920_v13  ;;  %v2075_v13 = vmul.f32 0.00390625, %v5033_v47  ;;  %v317_v47 = vld [vmem:[%s5817_s3 + $0xb8] sm:$0xff] }
 0x4a7   : > { %3547 = vmatmul.mubr.msk.f32.gmra.mxu0 %vm534_vm1, %v5969_v40  ;;  %1879 = vmatprep.subr.mxu0 %v4957_v39  ;;  %v5116_v39 = vld [vmem:[%s5817_s3 + $0x40] sm:$0xff]  ;;  %v5980_v40 = vld [vmem:[#allocation16_spill] sm:$0xff] }
 0x4a8   : > { %1880 = vmatpush1.msra.mxu0 %v4953_v9  ;;  %3549 = vmatprep.mubr.msk.f32.mxu0 %vm534_vm1, %v5970_v23  ;;  %v5109_v9 = vld [vmem:[%s5816_s2 + $0x18] sm:$0xff]  ;;  %5973 = vst [vmem:[#allocation20_spill] sm:$0xff] %v5116_v39 }
 0x4a9   : > { %1881 = vmatprep.subr.mxu0 %v4973_v44  ;;  %v3937_v44 = vld [vmem:[%s5816_s2] sm:$0xff]  ;;  %5972 = vst [vmem:[#allocation19_spill] sm:$0xff] %v5109_v9 }
 0x4aa   : > { %1882 = vmatpush1.msra.mxu0 %v4969_v53  ;;  %v2077_v53 = vmul.f32 0.00390625, %v5029_v0  ;;  %v315_v0 = vld [vmem:[%s5817_s3 + $0xa8] sm:$0xff] }
 0x4ab   : > { %3550 = vmatmul.mubr.msk.f32.gmra.mxu0 %vm534_vm1, %v5971_v51  ;;  %1883 = vmatprep.subr.mxu0 %v5003_v30  ;;  %v2076_v30 = vmul.f32 0.00390625, %v5031_v12  ;;  %v316_v12 = vld [vmem:[%s5817_s3 + $0xb0] sm:$0xff] }
 0x4ac   : > { %1884 = vmatpush1.msra.mxu0 %v4999_v54  ;;  %1919 = vmatprep.mubr.f32.mxu0 %v5950_v42  ;;  %v3938_v54 = vld [vmem:[%s5816_s2 + $0x8] sm:$0xff] }
 0x4ad   : > { %1885 = vmatprep.subr.mxu0 %v5013_v26  ;;  %v311_v26 = vld [vmem:[%s5817_s3 + $0x88] sm:$0xff] }
 0x4ae   : > { %1886 = vmatpush1.msra.mxu0 %v5009_v11  ;;  %v5099_v11 = vld [vmem:[%s5816_s2 + $0x10] sm:$0xff]  ;;  %3237 = vmatmul.mubr.msk.f32.gmra.mxu1 %vm534_vm1, %v311_v26 }
 0x4af   : > { %3302 = vmatmul.mubr.msk.f32.vlgmr.msra.gmra.mxu0 %vm406_vm0, %v3937_v44  ;;  %3552 = vmatprep.subr.mxu0 %v2080_v52 }
 0x4b0   : > { %3553 = vmatpush3.msra.mxu0 %v2080_v52  ;;  %1925 = vmatprep.mubr.f32.mxu0 %v5950_v42 }
 0x4b1   : > { %3554 = vmatprep.subr.mxu0 %v2079_v6  ;;  %1354 = vmatprep.mubr.f32.mxu1 %v5950_v42 }
 0x4b2   : > { %3555 = vmatpush3.msra.mxu0 %v2079_v6  ;;  %3238 = vmatmul.mubr.msk.f32.gmra.mxu1 %vm534_vm1, %v312_v34  ;;  %v3944_v34 = vld [vmem:[%s5818_s4 + $0x50] sm:$0xff] }
 0x4b3   : > { %3303 = vmatmul.mubr.msk.f32.gmra.mxu0 %vm406_vm0, %v3938_v54  ;;  %3556 = vmatprep.subr.mxu0 %v2078_v63 }
 0x4b4   : > { %3557 = vmatpush3.msra.mxu0 %v2078_v63  ;;  %3568 = vmatprep.mubr.msk.f32.mxu0 %vm406_vm0, %v5099_v11 }
 0x4b5   : > { %3558 = vmatprep.subr.mxu0 %v2077_v53  ;;  %1360 = vmatprep.mubr.f32.mxu1 %v5950_v42 }
 0x4b6   : > { %3559 = vmatpush3.msra.mxu0 %v2077_v53  ;;  %3239 = vmatmul.mubr.msk.f32.gmra.mxu1 %vm534_vm1, %v313_v14 }
 0x4b7   : > { %3560 = vmatprep.subr.mxu0 %v2076_v30  ;;  %1366 = vmatprep.mubr.f32.mxu1 %v5950_v42 }
 0x4b8   : > { %3561 = vmatpush3.msra.mxu0 %v2076_v30  ;;  %v3942_v30 = vld [vmem:[%s5817_s3] sm:$0xff] }
 0x4b9   : > { %3562 = vmatprep.subr.mxu0 %v2075_v13 }
 0x4ba   : > { %3563 = vmatpush3.msra.mxu0 %v2075_v13  ;;  %3240 = vmatmul.mubr.msk.f32.gmra.mxu1 %vm534_vm1, %v314_v10  ;;  %v3943_v13 = vld [vmem:[%s5818_s4 + $0x58] sm:$0xff]  ;;  %v3945_v10 = vld [vmem:[%s5817_s3 + $0x8] sm:$0xff] }
 0x4bb   : > { %3564 = vmatprep.subr.mxu0 %v2074_v1  ;;  %1372 = vmatprep.mubr.f32.mxu1 %v5950_v42 }
 0x4bc   : > { %3565 = vmatpush3.msra.mxu0 %v2074_v1 }
 0x4bd   : > { %3566 = vmatprep.subr.mxu0 %v2073_v38 }
 0x4be   : > { %3567 = vmatpush3.msra.mxu0 %v2073_v38  ;;  %3241 = vmatmul.mubr.msk.f32.gmra.mxu1 %vm534_vm1, %v315_v0 }
 0x4bf   : > { %3569 = vmatmul.mubr.msk.f32.vlgmr.msra.gmra.mxu0 %vm406_vm0, %v5109_v9  ;;  %1378 = vmatprep.mubr.f32.mxu1 %v5950_v42 }
 0x4c0   : > { %3575 = vmatprep.mubr.msk.f32.mxu0 %vm534_vm1, %v5116_v39 }
 0x4c2   : > { %3242 = vmatmul.mubr.msk.f32.gmra.mxu1 %vm534_vm1, %v316_v12  ;;  %v3946_v12 = vld [vmem:[%s5817_s3 + $0x10] sm:$0xff] }
 0x4c3   : > { %1384 = vmatprep.mubr.f32.mxu1 %v5950_v42 }
 0x4c6   : > { %3243 = vmatmul.mubr.msk.f32.gmra.mxu1 %vm534_vm1, %v317_v47  ;;  %v3947_v47 = vld [vmem:[%s5817_s3 + $0x48] sm:$0xff] }
 0x4c7   : > { %2000 = vmatprep.mubr.f32.mxu1 %v5950_v42 }
 0x55f   : > { %v5155_v46 = vpop.f32.mrf.mxu0 }
 0x561   : > { %v5157_v33 = vpop.f32.mrf.mxu0 }
 0x563   : > { %v5159_v19 = vpop.f32.mrf.mxu0 }
 0x564   : > { %5974 = vst [vmem:[#allocation21_spill] sm:$0xff] %v5159_v19 }
 0x565   : > { %v5161_v41 = vpop.f32.mrf.mxu0 }
 0x567   : > { %v5163_v50 = vpop.f32.mrf.mxu0 }
 0x568   : > { %5975 = vst [vmem:[#allocation22_spill] sm:$0xff] %v5163_v50 }
 0x569   : > { %v5165_v7 = vpop.f32.mrf.mxu0 }
 0x56a   : > { %5976 = vst [vmem:[#allocation23_spill] sm:$0xff] %v5165_v7 }
 0x56b   : > { %v5167_v45 = vpop.f32.mrf.mxu0 }
 0x56c   : > { %5977 = vst [vmem:[#allocation24_spill] sm:$0xff] %v5167_v45  ;;  %v6002_v45 = vld [vmem:[#allocation28_spill] sm:$0xff] }
 0x56d   : > { %v5169_v49 = vpop.f32.mrf.mxu0 }
 0x56e   : > { %5978 = vst [vmem:[#allocation25_spill] sm:$0xff] %v5169_v49 }
 0x56f   : > { %v1921_v22 = vpop.f32.mrf.mxu0 }
 0x570   : > { %v1922_v51 = vadd.f32 %v1921_v22, %v5980_v40  ;;  %v3948_v22 = vld [vmem:[%s5817_s3 + $0x50] sm:$0xff] }
 0x571   : > { %v1923_v55 = vpop.f32.mrf.mxu0 }
 0x572   : > { %v1924_v23 = vadd.f32 %v1923_v55, %v5980_v40  ;;  %v1932_v53 = vmax.f32 %v1922_v51, 0.0  ;;  %v3949_v55 = vld [vmem:[%s5817_s3 + $0x18] sm:$0xff]  ;;  %v3954_v40 = vld [vmem:[%s5817_s3 + $0x70] sm:$0xff] }
 0x573   : > { %v1927_v32 = vpop.f32.mrf.mxu0  ;;  %v3957_v51 = vld [vmem:[%s5817_s3 + $0x30] sm:$0xff] }
 0x574   : > { %v1928_v8 = vadd.f32 %v1927_v32, %v5979_v31  ;;  %v1933_v44 = vmax.f32 %v1924_v23, 0.0  ;;  %v3950_v32 = vld [vmem:[%s5817_s3 + $0x58] sm:$0xff]  ;;  %v3955_v23 = vld [vmem:[%s5817_s3 + $0x28] sm:$0xff] }
 0x575   : > { %v1929_v5 = vpop.f32.mrf.mxu0 }
 0x576   : > { %v1930_v52 = vadd.f32 %v1929_v5, %v5979_v31  ;;  %v1934_v63 = vmax.f32 %v1928_v8, 0.0  ;;  %v3951_v31 = vld [vmem:[%s5817_s3 + $0x60] sm:$0xff]  ;;  %v3953_v5 = vld [vmem:[%s5817_s3 + $0x68] sm:$0xff] }
 0x577   : > { %v3952_v8 = vld [vmem:[%s5817_s3 + $0x20] sm:$0xff] }
 0x578   : > { %v1935_v6 = vmax.f32 %v1930_v52, 0.0  ;;  %v3956_v52 = vld [vmem:[%s5817_s3 + $0x78] sm:$0xff] }
 0x57a   : > { %1964 = vmatprep.subr.mxu1 %v1935_v6  ;;  %v3958_v6 = vld [vmem:[%s5817_s3 + $0x38] sm:$0xff] }
 0x57b   : > { %1965 = vmatpush1.msra.mxu1 %v1934_v63 }
 0x57c   : > { %1966 = vmatprep.subr.mxu1 %v1933_v44 }
 0x57d   : > { %1967 = vmatpush1.msra.mxu1 %v1932_v53 }
 0x57e   : > { %3304 = vmatmul.mubr.msk.f32.vlgmr.msra.gmra.mxu1 %vm534_vm1, %v3942_v30 }
 0x57f   : > { %v3570_v54 = vpop.f32.mrf.mxu0  ;;  %2006 = vmatprep.mubr.f32.mxu1 %v5950_v42 }
 0x580   : > { %v2153_v1 = vadd.f32 %v3943_v13, %v3570_v54  ;;  %v5250_v13 = vpop.f32.mrf.mxu1 }
 0x581   : > { %v2147_v38 = vpop.f32.mrf.mxu0  ;;  %5981 = vst [vmem:[#allocation26_spill] sm:$0xff] %v5250_v13 }
 0x582   : > { %v2157_v26 = vmax.f32 %v2153_v1, 0.0  ;;  %v2148_v14 = vadd.f32 %v3944_v34, %v2147_v38  ;;  %3305 = vmatmul.mubr.msk.f32.gmra.mxu1 %vm534_vm1, %v3945_v10 }
 0x583   : > { %2012 = vmatprep.mubr.f32.mxu1 %v5950_v42 }
 0x584   : > { %v2156_v0 = vmax.f32 %v2148_v14, 0.0  ;;  %3571 = vmatprep.subr.mxu0 %v2157_v26  ;;  %v5258_v14 = vpop.f32.mrf.mxu1 }
 0x585   : > { %3572 = vmatpush3.msra.mxu0 %v2157_v26  ;;  %v5255_v26 = vld [vmem:[%s5818_s4 + $0x98] sm:$0xff]  ;;  %5983 = vst [vmem:[#allocation17_spill] sm:$0xff] %v5258_v14 }
 0x586   : > { %3306 = vmatmul.mubr.msk.f32.gmra.mxu1 %vm534_vm1, %v3946_v12  ;;  %3573 = vmatprep.subr.mxu0 %v2156_v0  ;;  %5982 = vst [vmem:[#allocation27_spill] sm:$0xff] %v5255_v26 }
 0x587   : > { %3574 = vmatpush3.msra.mxu0 %v2156_v0  ;;  %2018 = vmatprep.mubr.f32.mxu1 %v5950_v42  ;;  %v5263_v0 = vld [vmem:[%s5818_s4 + $0x90] sm:$0xff] }
 0x588   : > { %3576 = vmatmul.mubr.msk.f32.vlgmr.msra.gmra.mxu0 %vm534_vm1, %v3947_v47  ;;  %5984 = vst [vmem:[#allocation16_spill] sm:$0xff] %v5263_v0  ;;  %v5269_v47 = vld [vmem:[%s5818_s4 + $0x88] sm:$0xff] }
 0x589   : > { %3578 = vmatprep.mubr.msk.f32.mxu0 %vm534_vm1, %v3948_v22  ;;  %5985 = vst [vmem:[#allocation56_spill] sm:$0xff] %v5269_v47 }
 0x58a   : > { %3307 = vmatmul.mubr.msk.f32.gmra.mxu1 %vm534_vm1, %v3949_v55  ;;  %v5272_v55 = vpop.f32.mrf.mxu1 }
 0x58b   : > { %2024 = vmatprep.mubr.f32.mxu1 %v5950_v42  ;;  %5986 = vst [vmem:[#allocation57_spill] sm:$0xff] %v5272_v55 }
 0x58c   : > { %3579 = vmatmul.mubr.msk.f32.gmra.mxu0 %vm534_vm1, %v3950_v32  ;;  %v5277_v32 = vld [vmem:[%s5818_s4 + $0x80] sm:$0xff] }
 0x58d   : > { %3581 = vmatprep.mubr.msk.f32.mxu0 %vm534_vm1, %v3951_v31  ;;  %5987 = vst [vmem:[#allocation58_spill] sm:$0xff] %v5277_v32 }
 0x58e   : > { %3308 = vmatmul.mubr.msk.f32.gmra.mxu1 %vm534_vm1, %v3952_v8  ;;  %v5283_v8 = vld [vmem:[%s5818_s4 + $0x78] sm:$0xff] }
 0x58f   : > { %2030 = vmatprep.mubr.f32.mxu1 %v5950_v42  ;;  %5988 = vst [vmem:[#allocation59_spill] sm:$0xff] %v5283_v8 }
 0x590   : > { %3582 = vmatmul.mubr.msk.f32.gmra.mxu0 %vm534_vm1, %v3953_v5 }
 0x591   : > { %3584 = vmatprep.mubr.msk.f32.mxu0 %vm534_vm1, %v3954_v40  ;;  %v5286_v40 = vpop.f32.mrf.mxu1 }
 0x592   : > { %3309 = vmatmul.mubr.msk.f32.gmra.mxu1 %vm534_vm1, %v3955_v23  ;;  %5989 = vst [vmem:[#allocation60_spill] sm:$0xff] %v5286_v40  ;;  %v5291_v23 = vld [vmem:[%s5818_s4 + $0x70] sm:$0xff] }
 0x593   : > { %2036 = vmatprep.mubr.f32.mxu1 %v5950_v42 }
 0x594   : > { %3585 = vmatmul.mubr.msk.f32.gmra.mxu0 %vm534_vm1, %v3956_v52 }
 0x595   : > { %2527 = vmatprep.mubr.f32.mxu0 %v5950_v42 }
 0x596   : > { %3310 = vmatmul.mubr.msk.f32.gmra.mxu1 %vm534_vm1, %v3957_v51  ;;  %v5297_v51 = vld [vmem:[%s5818_s4 + $0x68] sm:$0xff] }
 0x597   : > { %2042 = vmatprep.mubr.f32.mxu1 %v5950_v42 }
 0x59a   : > { %3311 = vmatmul.mubr.msk.f32.gmra.mxu1 %vm534_vm1, %v3958_v6 }
 0x59b   : > { %2608 = vmatprep.mubr.f32.mxu1 %v5950_v42 }
 0x648   : > { %v3577_v63 = vpop.f32.mrf.mxu0 }
 0x649   : > { %v2230_v6 = vadd.f32 %v5297_v51, %v3577_v63 }
 0x64a   : > { %v2224_v44 = vpop.f32.mrf.mxu0 }
 0x64c   : > { %v3580_v53 = vpop.f32.mrf.mxu0 }
 0x64d   : > { %v2240_v5 = vadd.f32 %v5283_v8, %v3580_v53  ;;  %v5300_v53 = vpop.f32.mrf.mxu1 }
 0x64e   : > { %v2234_v30 = vpop.f32.mrf.mxu0  ;;  %5990 = vst [vmem:[#allocation61_spill] sm:$0xff] %v5300_v53 }
 0x64f   : > { %v2235_v52 = vadd.f32 %v5291_v23, %v2234_v30  ;;  %v5308_v30 = vpop.f32.mrf.mxu1 }
 0x650   : > { %v3583_v54 = vpop.f32.mrf.mxu0  ;;  %5991 = vst [vmem:[#allocation62_spill] sm:$0xff] %v5308_v30 }
 0x651   : > { %v2250_v22 = vadd.f32 %v5269_v47, %v3583_v54  ;;  %v5305_v54 = vld [vmem:[%s5818_s4 + $0x60] sm:$0xff] }
 0x652   : > { %v2244_v1 = vpop.f32.mrf.mxu0 }
 0x653   : > { %v2245_v31 = vadd.f32 %v5277_v32, %v2244_v1  ;;  %v2225_v1 = vadd.f32 %v5305_v54, %v2224_v44 }
 0x654   : > { %v3586_v38 = vpop.f32.mrf.mxu0 }
 0x655   : > { %v2260_v34 = vadd.f32 %v5255_v26, %v3586_v38  ;;  %v5310_v38 = vpop.f32.mrf.mxu1 }
 0x656   : > { %v2254_v10 = vpop.f32.mrf.mxu0  ;;  %5992 = vst [vmem:[#allocation63_spill] sm:$0xff] %v5310_v38 }
 0x657   : > { %v2255_v12 = vadd.f32 %v5263_v0, %v2254_v10  ;;  %2300 = vperm.xlu1 %3680, %v2260_v34   ;;  %v5312_v34 = vpop.f32.mrf.mxu1 }
 0x658   : > { %5993 = vst [vmem:[#allocation64_spill] sm:$0xff] %v5312_v34 }
 0x659   : > { %2295 = vperm.xlu0 %3679, %v2255_v12   ;;  %v5314_v10 = vpop.f32.mrf.mxu1 }
 0x65a   : > { %5994 = vst [vmem:[#allocation65_spill] sm:$0xff] %v5314_v10 }
 0x65b   : > { %2290 = vperm.xlu1 %3680, %v2250_v22   ;;  %v5316_v63 = vpop.f32.mrf.mxu1 }
 0x65c   : > { %5995 = vst [vmem:[#allocation66_spill] sm:$0xff] %v5316_v63 }
 0x65d   : > { %2285 = vperm.xlu0 %3679, %v2245_v31   ;;  %v5318_v12 = vpop.f32.mrf.mxu1 }
 0x65e   : > { %5996 = vst [vmem:[#allocation67_spill] sm:$0xff] %v5318_v12 }
 0x65f   : > { %2280 = vperm.xlu1 %3680, %v2240_v5   ;;  %v5320_v22 = vpop.f32.mrf.mxu1 }
 0x660   : > { %5997 = vst [vmem:[#allocation68_spill] sm:$0xff] %v5320_v22 }
 0x661   : > { %2275 = vperm.xlu0 %3679, %v2235_v52   ;;  %v5322_v31 = vpop.f32.mrf.mxu1 }
 0x662   : > { %5998 = vst [vmem:[#allocation69_spill] sm:$0xff] %v5322_v31 }
 0x663   : > { %2270 = vperm.xlu1 %3680, %v2230_v6   ;;  %v5324_v5 = vpop.f32.mrf.mxu1 }
 0x664   : > { %5999 = vst [vmem:[#allocation70_spill] sm:$0xff] %v5324_v5 }
 0x665   : > { %2265 = vperm.xlu0 %3679, %v2225_v1   ;;  %v5326_v44 = vpop.f32.mrf.mxu1 }
 0x666   : > { %6000 = vst [vmem:[#allocation71_spill] sm:$0xff] %v5326_v44 }
 0x667   : > { %v5328_v52 = vpop.f32.mrf.mxu1 }
 0x668   : > { %6001 = vst [vmem:[#allocation72_spill] sm:$0xff] %v5328_v52 }
 0x669   : > { %v2002_v6 = vpop.f32.mrf.mxu1 }
 0x66b   : > { %v5330_v1 = vpop.f32.mrf.mxu1 }
 0x66d   : > { %v2008_v3 = vpop.f32.mrf.mxu1 }
 0x66f   : > { %v2010_v16 = vpop.f32.mrf.mxu1 }
 0x671   : > { %v2014_v10 = vpop.f32.mrf.mxu1 }
 0x673   : > { %v2016_v34 = vpop.f32.mrf.mxu1 }
 0x675   : > { %v2020_v63 = vpop.f32.mrf.mxu1 }
 0x677   : > { %v2022_v38 = vpop.f32.mrf.mxu1 }
 0x679   : > { %v2026_v12 = vpop.f32.mrf.mxu1 }
 0x67a   : > { %v2027_v8 = vadd.f32 %v2026_v12, %v4711_v58 }
 0x67b   : > { %v2028_v30 = vpop.f32.mrf.mxu1 }
 0x67d   : > { %v2032_v22 = vpop.f32.mrf.mxu1 }
 0x67e   : > { %v2033_v0 = vadd.f32 %v2032_v22, %v6002_v45 }
 0x67f   : > { %v2034_v53 = vpop.f32.mrf.mxu1 }
 0x681   : > { %v2038_v31 = vpop.f32.mrf.mxu1 }
 0x682   : > { %v2039_v13 = vadd.f32 %v2038_v31, %v4703_v20 }
 0x683   : > { %v2040_v40 = vpop.f32.mrf.mxu1 }
 0x684   : > { %v2041_v39 = vadd.f32 %v2040_v40, %v4703_v20  ;;  %v2021_v40 = vadd.f32 %v2020_v63, %v4705_v18 }
 0x685   : > { %v2044_v5 = vpop.f32.mrf.mxu1 }
 0x686   : > { %v2045_v44 = vadd.f32 %v2044_v5, %v4701_v57  ;;  %v2029_v5 = vadd.f32 %v2028_v30, %v4711_v58  ;;  %v2017_v58 = vadd.f32 %v2016_v34, %v4709_v35  ;;  %v2003_v30 = vadd.f32 %v2002_v6, %v4717_v62 }
 0x687   : > { %v2046_v55 = vpop.f32.mrf.mxu1 }
 0x688   : > { %v2047_v52 = vadd.f32 %v2046_v55, %v4701_v57  ;;  %v2035_v57 = vadd.f32 %v2034_v53, %v6002_v45  ;;  %v2023_v45 = vadd.f32 %v2022_v38, %v4705_v18  ;;  %v2005_v18 = vadd.f32 %v5330_v1, %v4717_v62 }
 0x6d2   : > { %v2301_v14 = vpop.permute.xlu1 %2300 }
 0x6d3   : > { %v2317_v9 = vadd.f32 %v2301_v14, %v2045_v44  ;;  %v2318_v26 = vadd.f32 %v2301_v14, %v2047_v52  ;;  %v2015_v14 = vadd.f32 %v2014_v10, %v4709_v35 }
 0x6d4   : > { %v2296_v49 = vpop.permute.xlu0 %2295 }
 0x6d5   : > { %v3336_v47 = vmul.f32 -1.442695, %v2317_v9  ;;  %v3337_v50 = vmul.f32 -1.442695, %v2318_v26  ;;  %v2315_v32 = vadd.f32 %v2296_v49, %v2039_v13  ;;  %v2316_v7 = vadd.f32 %v2296_v49, %v2041_v39 }
 0x6d6   : > { %v2291_v55 = vpop.permute.xlu1 %2290 }
 0x6d7   : > { %3745 = vpow2.f32 %v3336_v47  ;;  %v3334_v31 = vmul.f32 -1.442695, %v2315_v32  ;;  %v3335_v19 = vmul.f32 -1.442695, %v2316_v7  ;;  %v2313_v20 = vadd.f32 %v2291_v55, %v2033_v0 }
 0x6d8   : > { %3747 = vpow2.f32 %v3337_v50  ;;  %v2314_v9 = vadd.f32 %v2291_v55, %v2035_v57  ;;  %v2286_v26 = vpop.permute.xlu0 %2285  ;;  %v2009_v50 = vadd.f32 %v2008_v3, %v4713_v60 }
 0x6d9   : > { %3749 = vpow2.f32 %v3334_v31  ;;  %v3332_v39 = vmul.f32 -1.442695, %v2313_v20  ;;  %v2311_v49 = vadd.f32 %v2286_v26, %v2027_v8  ;;  %v2312_v13 = vadd.f32 %v2286_v26, %v2029_v5 }
 0x6da   : > { %3751 = vpow2.f32 %v3335_v19  ;;  %v3333_v47 = vmul.f32 -1.442695, %v2314_v9  ;;  %v2281_v32 = vpop.permute.xlu1 %2280  ;;  %v2011_v19 = vadd.f32 %v2010_v16, %v4713_v60 }
 0x6db   : > { %3753 = vpow2.f32 %v3332_v39  ;;  %v3330_v7 = vmul.f32 -1.442695, %v2311_v49  ;;  %v3331_v0 = vmul.f32 -1.442695, %v2312_v13  ;;  %v2309_v53 = vadd.f32 %v2281_v32, %v2021_v40 }
 0x6dc   : > { %3755 = vpow2.f32 %v3333_v47  ;;  %v2310_v10 = vadd.f32 %v2281_v32, %v2023_v45  ;;  %v2276_v63 = vpop.permute.xlu0 %2275 }
 0x6dd   : > { %3757 = vpow2.f32 %v3330_v7  ;;  %v3328_v8 = vmul.f32 -1.442695, %v2309_v53  ;;  %v2307_v12 = vadd.f32 %v2276_v63, %v2015_v14  ;;  %v2308_v35 = vadd.f32 %v2276_v63, %v2017_v58 }
 0x6de   : > { %3759 = vpow2.f32 %v3331_v0  ;;  %v3329_v38 = vmul.f32 -1.442695, %v2310_v10  ;;  %v2271_v34 = vpop.permute.xlu1 %2270 }
 0x6df   : > { %3761 = vpow2.f32 %v3328_v8  ;;  %v3326_v22 = vmul.f32 -1.442695, %v2307_v12  ;;  %v3327_v44 = vmul.f32 -1.442695, %v2308_v35  ;;  %v2305_v52 = vadd.f32 %v2271_v34, %v2009_v50 }
 0x6e0   : > { %3763 = vpow2.f32 %v3329_v38  ;;  %v2306_v3 = vadd.f32 %v2271_v34, %v2011_v19  ;;  %v2266_v6 = vpop.permute.xlu0 %2265  ;;  %v5351_v38 = vsub.f32 %v4828_v59, %v4835_v56  ;;  %v5363_v59 = vsub.f32 %v4845_v48, %v4851_v28 }
 0x6e1   : > { %3765 = vpow2.f32 %v3326_v22  ;;  %v3324_v5 = vmul.f32 -1.442695, %v2305_v52  ;;  %v2303_v57 = vadd.f32 %v2266_v6, %v2003_v30  ;;  %v2304_v55 = vadd.f32 %v2266_v6, %v2005_v18 }
 0x6e2   : > { %3767 = vpow2.f32 %v3327_v44  ;;  %v3325_v31 = vmul.f32 -1.442695, %v2306_v3  ;;  %v5355_v44 = vsub.f32 %v4831_v15, %v4838_v37  ;;  %v5359_v6 = vsub.f32 %v4841_v4, %v4848_v43 }
 0x6e3   : > { %3769 = vpow2.f32 %v3324_v5  ;;  %v3322_v62 = vmul.f32 -1.442695, %v2303_v57  ;;  %v3323_v1 = vmul.f32 -1.442695, %v2304_v55  ;;  %v5367_v15 = vsub.f32 %v4866_v24, %v4880_v17 }
 0x6e4   : > { %v3746_v60 = vpop.eup %3745  ;;  %3771 = vpow2.f32 %v3325_v31  ;;  %v5372_v4 = vsub.f32 %v4869_v27, %v4883_v25 }
 0x6e5   : > { %v3748_v16 = vpop.eup %3747  ;;  %v2381_v20 = vadd.f32 1.0, %v3746_v60  ;;  %3773 = vpow2.f32 %v3322_v62 }
 0x6e6   : > { %v3750_v14 = vpop.eup %3749  ;;  %v2382_v40 = vadd.f32 1.0, %v3748_v16  ;;  %3775 = vpow2.f32 %v3323_v1  ;;  %v5377_v16 = vsub.f32 %v4886_v2, %v4892_v61 }
 0x6e7   : > { %v3752_v9 = vpop.eup %3751  ;;  %3777 = vrcp.f32 %v2381_v20  ;;  %v2379_v26 = vadd.f32 1.0, %v3750_v14 }
 0x6e8   : > { %v3754_v39 = vpop.eup %3753  ;;  %3779 = vrcp.f32 %v2382_v40  ;;  %v2380_v49 = vadd.f32 1.0, %v3752_v9  ;;  %v5383_v40 = vsub.f32 %v4889_v36, %v4895_v21 }
 0x6e9   : > { %v3756_v13 = vpop.eup %3755  ;;  %3781 = vrcp.f32 %v2379_v26  ;;  %v2377_v58 = vadd.f32 1.0, %v3754_v39  ;;  %v6003_v39 = vld [vmem:[#allocation14_spill] sm:$0xff] }
 0x6ea   : > { %v3758_v45 = vpop.eup %3757  ;;  %3783 = vrcp.f32 %v2380_v49  ;;  %v2378_v47 = vadd.f32 1.0, %v3756_v13  ;;  %v5389_v49 = vsub.f32 %v6003_v39, %v4927_v29 }
 0x6eb   : > { %v3760_v32 = vpop.eup %3759  ;;  %3785 = vrcp.f32 %v2377_v58  ;;  %v2375_v7 = vadd.f32 1.0, %v3758_v45  ;;  %v6004_v58 = vld [vmem:[#allocation43_spill] sm:$0xff]  ;;  %v6005_v45 = vld [vmem:[#allocation12_spill] sm:$0xff] }
 0x6ec   : > { %v3762_v0 = vpop.eup %3761  ;;  %3787 = vrcp.f32 %v2378_v47  ;;  %v2376_v53 = vadd.f32 1.0, %v3760_v32  ;;  %v5395_v47 = vsub.f32 %v6005_v45, %v6004_v58 }
 0x6ed   : > { %v3764_v30 = vpop.eup %3763  ;;  %3789 = vrcp.f32 %v2375_v7  ;;  %v2373_v50 = vadd.f32 1.0, %v3762_v0  ;;  %v6006_v0 = vld [vmem:[#allocation46_spill] sm:$0xff] }
 0x6ee   : > { %v3766_v10 = vpop.eup %3765  ;;  %3791 = vrcp.f32 %v2376_v53  ;;  %v2374_v63 = vadd.f32 1.0, %v3764_v30  ;;  %v6007_v53 = vld [vmem:[#allocation44_spill] sm:$0xff] }
 0x6ef   : > { %v3768_v8 = vpop.eup %3767  ;;  %3793 = vrcp.f32 %v2373_v50  ;;  %v2371_v12 = vadd.f32 1.0, %v3766_v10  ;;  %v5401_v30 = vsub.f32 %v6007_v53, %v6006_v0  ;;  %v6008_v50 = vld [vmem:[#allocation47_spill] sm:$0xff] }
 0x6f0   : > { %v3770_v35 = vpop.eup %3769  ;;  %3795 = vrcp.f32 %v2374_v63  ;;  %v2372_v18 = vadd.f32 1.0, %v3768_v8 }
 0x6f1   : > { %v3772_v19 = vpop.eup %3771  ;;  %3797 = vrcp.f32 %v2371_v12  ;;  %v2369_v34 = vadd.f32 1.0, %v3770_v35 }
 0x6f2   : > { %v3774_v22 = vpop.eup %3773  ;;  %3799 = vrcp.f32 %v2372_v18  ;;  %v2370_v52 = vadd.f32 1.0, %v3772_v19 }
 0x6f3   : > { %v3776_v3 = vpop.eup %3775  ;;  %3801 = vrcp.f32 %v2369_v34  ;;  %v2367_v5 = vadd.f32 1.0, %v3774_v22  ;;  %v6010_v34 = vld [vmem:[#allocation50_spill] sm:$0xff]  ;;  %v6011_v22 = vld [vmem:[#allocation48_spill] sm:$0xff] }
 0x6f4   : > { %v3778_v57 = vpop.eup %3777  ;;  %3803 = vrcp.f32 %v2370_v52  ;;  %v2368_v55 = vadd.f32 1.0, %v3776_v3  ;;  %v5413_v52 = vsub.f32 %v6011_v22, %v6010_v34  ;;  %v342_v22 = vld [vmem:[%s5818_s4 + $0xc0] sm:$0xff] }
 0x6f5   : > { %v3780_v31 = vpop.eup %3779  ;;  %3805 = vrcp.f32 %v2367_v5  ;;  %v2445_v62 = vmul.f32 %v3778_v57, %v5351_v38  ;;  %v6012_v57 = vld [vmem:[#allocation51_spill] sm:$0xff] }
 0x6f6   : > { %v3782_v1 = vpop.eup %3781  ;;  %3807 = vrcp.f32 %v2368_v55  ;;  %v2446_v60 = vmul.f32 %v3780_v31, %v5355_v44  ;;  %v6013_v55 = vld [vmem:[#allocation49_spill] sm:$0xff] }
 0x6f7   : > { %v3784_v48 = vpop.eup %3783  ;;  %v2461_v20 = vadd.f32 %v4835_v56, %v2445_v62  ;;  %v2443_v24 = vmul.f32 %v3782_v1, %v5359_v6  ;;  %v5419_v31 = vsub.f32 %v6013_v55, %v6012_v57  ;;  %v347_v55 = vld [vmem:[%s5818_s4 + $0xe8] sm:$0xff] }
 0x6f8   : > { %v3786_v14 = vpop.eup %3785  ;;  %v2462_v27 = vadd.f32 %v4838_v37, %v2446_v60  ;;  %v2444_v9 = vmul.f32 %v3784_v48, %v5363_v59  ;;  %v6014_v60 = vld [vmem:[#allocation54_spill] sm:$0xff]  ;;  %v6015_v48 = vld [vmem:[#allocation52_spill] sm:$0xff] }
 0x6f9   : > { %v3788_v26 = vpop.eup %3787  ;;  %v2459_v2 = vadd.f32 %v4848_v43, %v2443_v24  ;;  %v2441_v56 = vmul.f32 %v3786_v14, %v5367_v15  ;;  %v6009_v43 = vld [vmem:[#allocation45_spill] sm:$0xff]  ;;  %v6016_v24 = vld [vmem:[#allocation55_spill] sm:$0xff] }
 0x6fa   : > { %v3790_v13 = vpop.eup %3789  ;;  %2479 = vmatprep.subr.mxu0 %v2462_v27  ;;  %v2678_v36 = vadd.f32 %v2462_v27, %v2461_v20  ;;  %v2460_v37 = vadd.f32 %v4851_v28, %v2444_v9  ;;  %v2442_v32 = vmul.f32 %v3788_v26, %v5372_v4  ;;  %v5405_v10 = vsub.f32 %v6009_v43, %v6008_v50 }
 0x6fb   : > { %v3792_v7 = vpop.eup %3791  ;;  %2480 = vmatpush1.msra.mxu0 %v2461_v20  ;;  %v2457_v63 = vadd.f32 %v4880_v17, %v2441_v56  ;;  %v2439_v8 = vmul.f32 %v3790_v13, %v5377_v16  ;;  %v5425_v20 = vsub.f32 %v6015_v48, %v6014_v60  ;;  %v6019_v48 = vld [vmem:[#allocation59_spill] sm:$0xff] }
 0x6fc   : > { %v3794_v12 = vpop.eup %3793  ;;  %2679 = vadd.xlane.f32.xlu1 %v2678_v36  ;;  %2481 = vmatprep.subr.mxu0 %v2460_v37  ;;  %v2675_v28 = vadd.f32 %v2460_v37, %v2459_v2  ;;  %v2458_v35 = vadd.f32 %v4883_v25, %v2442_v32  ;;  %v2440_v18 = vmul.f32 %v3792_v7, %v5383_v40 }
 0x6fd   : > { %v3796_v19 = vpop.eup %3795  ;;  %2482 = vmatpush1.msra.mxu0 %v2459_v2  ;;  %v2455_v3 = vadd.f32 %v4892_v61, %v2439_v8  ;;  %v2437_v17 = vmul.f32 %v3794_v12, %v5389_v49  ;;  %v6017_v61 = vld [vmem:[#allocation53_spill] sm:$0xff] }
 0x6fe   : > { %v3798_v5 = vpop.eup %3797  ;;  %2676 = vadd.xlane.f32.xlu0 %v2675_v28  ;;  %2483 = vmatprep.subr.mxu0 %v2458_v35  ;;  %v2456_v25 = vadd.f32 %v4895_v21, %v2440_v18  ;;  %v2438_v62 = vmul.f32 %v3796_v19, %v5395_v47  ;;  %v5429_v14 = vsub.f32 %v6017_v61, %v6016_v24  ;;  %v3967_v18 = vld [vmem:[%s5816_s2 + $0x20] sm:$0xff]  ;;  %v3968_v19 = vld [vmem:[%s5816_s2 + $0x28] sm:$0xff] }
 0x6ff   : > { %v3800_v1 = vpop.eup %3799  ;;  %2484 = vmatpush1.msra.mxu0 %v2457_v63  ;;  %v2453_v27 = vadd.f32 %v4927_v29, %v2437_v17  ;;  %v2435_v9 = vmul.f32 %v3798_v5, %v5401_v30  ;;  %v2672_v39 = vadd.f32 %v2458_v35, %v2457_v63  ;;  %v344_v17 = vld [vmem:[%s5818_s4 + $0xd0] sm:$0xff]  ;;  %v346_v5 = vld [vmem:[%s5818_s4 + $0xe0] sm:$0xff] }
 0x700   : > { %v3802_v26 = vpop.eup %3801  ;;  %2485 = vmatprep.subr.mxu0 %v2456_v25  ;;  %v2669_v21 = vadd.f32 %v2456_v25, %v2455_v3  ;;  %v2454_v2 = vadd.f32 %v6004_v58, %v2438_v62  ;;  %v2436_v56 = vmul.f32 %v3800_v1, %v5405_v10  ;;  %v1567_v25 = vadd.f32 %v5305_v54, %v5157_v33  ;;  %v6020_v61 = vld [vmem:[#allocation23_spill] sm:$0xff]  ;;  %v6023_v33 = vld [vmem:[#allocation56_spill] sm:$0xff] }
 0x701   : > { %v3804_v13 = vpop.eup %3803  ;;  %2486 = vmatpush1.msra.mxu0 %v2455_v3  ;;  %v2451_v45 = vadd.f32 %v6006_v0, %v2435_v9  ;;  %v2433_v36 = vmul.f32 %v3802_v26, %v5413_v52  ;;  %v340_v3 = vld [vmem:[%s5818_s4 + $0xb0] sm:$0xff]  ;;  %v1572_v62 = vadd.f32 %v5297_v51, %v5155_v46  ;;  %v1577_v1 = vadd.f32 %v5291_v23, %v5161_v41  ;;  %v6022_v26 = vld [vmem:[#allocation22_spill] sm:$0xff]  ;;  %v6026_v46 = vld [vmem:[#allocation24_spill] sm:$0xff] }
 0x702   : > { %v3806_v37 = vpop.eup %3805  ;;  %2673 = vadd.xlane.f32.xlu0 %v2672_v39  ;;  %2670 = vadd.xlane.f32.xlu1 %v2669_v21  ;;  %v2452_v29 = vadd.f32 %v6008_v50, %v2436_v56  ;;  %v2434_v32 = vmul.f32 %v3804_v13, %v5419_v31  ;;  %v2666_v53 = vadd.f32 %v2454_v2, %v2453_v27  ;;  %v6024_v39 = vld [vmem:[#allocation25_spill] sm:$0xff]  ;;  %v6025_v21 = vld [vmem:[#allocation16_spill] sm:$0xff]  ;;  %v6027_v41 = vld [vmem:[#allocation27_spill] sm:$0xff] }
 0x703   : > { %v3808_v7 = vpop.eup %3807  ;;  %2487 = vmatprep.subr.mxu0 %v2454_v2  ;;  %v2431_v58 = vmul.f32 %v3806_v37, %v5425_v20  ;;  %v2449_v0 = vadd.f32 %v6010_v34, %v2433_v36  ;;  %v341_v34 = vld [vmem:[%s5818_s4 + $0xb8] sm:$0xff]  ;;  %v1592_v54 = vadd.f32 %v6023_v33, %v6022_v26  ;;  %v1597_v2 = vadd.f32 %v6025_v21, %v6024_v39 }
 0x704   : > { %2488 = vmatpush1.msra.mxu0 %v2453_v27  ;;  %v2663_v43 = vadd.f32 %v2452_v29, %v2451_v45  ;;  %v2450_v63 = vadd.f32 %v6012_v57, %v2434_v32  ;;  %v2432_v8 = vmul.f32 %v3808_v7, %v5429_v14  ;;  %v345_v57 = vld [vmem:[%s5818_s4 + $0xd8] sm:$0xff]  ;;  %v1602_v23 = vadd.f32 %v6027_v41, %v6026_v46 }
 0x705   : > { %2489 = vmatprep.subr.mxu0 %v2452_v29  ;;  %v2447_v12 = vadd.f32 %v6014_v60, %v2431_v58  ;;  %v6018_v60 = vld [vmem:[#allocation21_spill] sm:$0xff]  ;;  %v6021_v27 = vld [vmem:[#allocation58_spill] sm:$0xff] }
 0x706   : > { %2490 = vmatpush1.msra.mxu0 %v2451_v45  ;;  %2667 = vadd.xlane.f32.xlu0 %v2666_v53  ;;  %v2448_v50 = vadd.f32 %v6016_v24, %v2432_v8  ;;  %v2660_v28 = vadd.f32 %v2450_v63, %v2449_v0  ;;  %v1582_v24 = vadd.f32 %v6019_v48, %v6018_v60  ;;  %v6032_v48 = vld [vmem:[#allocation57_spill] sm:$0xff]  ;;  %v6035_v21 = vld [vmem:[#allocation62_spill] sm:$0xff] }
 0x707   : > { %2664 = vadd.xlane.f32.xlu1 %v2663_v43  ;;  %2491 = vmatprep.subr.mxu0 %v2450_v63  ;;  %v1587_v9 = vadd.f32 %v6021_v27, %v6020_v61  ;;  %v6033_v61 = vld [vmem:[#allocation60_spill] sm:$0xff] }
 0x708   : > { %2492 = vmatpush1.msra.mxu0 %v2449_v0  ;;  %v2657_v35 = vadd.f32 %v2448_v50, %v2447_v12 }
 0x709   : > { %2493 = vmatprep.subr.mxu0 %v2448_v50 }
 0x70a   : > { %2494 = vmatpush1.msra.mxu0 %v2447_v12  ;;  %2661 = vadd.xlane.f32.xlu0 %v2660_v28  ;;  %v6028_v28 = vld [vmem:[#allocation19_spill] sm:$0xff] }
 0x70b   : > { %2658 = vadd.xlane.f32.xlu1 %v2657_v35  ;;  %3338 = vmatmul.mubr.msk.f32.vlgmr.msra.gmra.mxu0 %vm406_vm0, %v3967_v18  ;;  %v6029_v18 = vld [vmem:[#allocation20_spill] sm:$0xff] }
 0x70c   : > { %2533 = vmatprep.mubr.f32.mxu0 %v5950_v42 }
 0x70f   : > { %3339 = vmatmul.mubr.msk.f32.gmra.mxu0 %vm406_vm0, %v3968_v19 }
 0x710   : > { %3603 = vmatprep.mubr.msk.f32.mxu0 %vm406_vm0, %v5099_v11  ;;  %v343_v11 = vld [vmem:[%s5818_s4 + $0xc8] sm:$0xff] }
 0x71c   : > { %1221 = vperm.xlu1 %3680, %v341_v34  }
 0x720   : > { %1226 = vperm.xlu1 %3680, %v342_v22   ;;  %1216 = vperm.xlu0 %3679, %v340_v3  }
 0x724   : > { %1236 = vperm.xlu1 %3680, %v344_v17   ;;  %1231 = vperm.xlu0 %3679, %v343_v11  }
 0x728   : > { %1246 = vperm.xlu1 %3680, %v346_v5   ;;  %1241 = vperm.xlu0 %3679, %v345_v57   ;;  %v6030_v5 = vld [vmem:[#allocation26_spill] sm:$0xff] }
 0x72c   : > { %1607 = vperm.xlu1 %3680, %v1567_v25   ;;  %1251 = vperm.xlu0 %3679, %v347_v55   ;;  %v6031_v55 = vld [vmem:[#allocation17_spill] sm:$0xff] }
 0x730   : > { %1617 = vperm.xlu1 %3680, %v1577_v1   ;;  %1612 = vperm.xlu0 %3679, %v1572_v62  }
 0x734   : > { %1627 = vperm.xlu1 %3680, %v1587_v9   ;;  %1622 = vperm.xlu0 %3679, %v1582_v24  }
 0x738   : > { %1637 = vperm.xlu1 %3680, %v1597_v2   ;;  %1632 = vperm.xlu0 %3679, %v1592_v54   ;;  %v6034_v54 = vld [vmem:[#allocation61_spill] sm:$0xff] }
 0x73c   : > { %1642 = vperm.xlu0 %3679, %v1602_v23  }
 0x785   : > { %v2680_v51 = vpop.xlane.xlu1 %2679 }
 0x786   : > { %v2688_v56 = vmul.f32 0.00390625, %v2680_v51 }
 0x787   : > { %v2677_v13 = vpop.xlane.xlu0 %2676 }
 0x788   : > { %v2687_v45 = vmul.f32 0.00390625, %v2677_v13  ;;  %3587 = vmatprep.subr.mxu0 %v2688_v56  ;;  %v6036_v13 = vld [vmem:[#allocation63_spill] sm:$0xff] }
 0x789   : > { %3588 = vmatpush3.msra.mxu0 %v2688_v56 }
 0x78a   : > { %3589 = vmatprep.subr.mxu0 %v2687_v45 }
 0x78b   : > { %v2674_v36 = vpop.xlane.xlu0 %2673  ;;  %v2671_v37 = vpop.xlane.xlu1 %2670  ;;  %3590 = vmatpush3.msra.mxu0 %v2687_v45 }
 0x78c   : > { %v2686_v29 = vmul.f32 0.00390625, %v2674_v36  ;;  %v2685_v32 = vmul.f32 0.00390625, %v2671_v37 }
 0x78e   : > { %3591 = vmatprep.subr.mxu0 %v2686_v29 }
 0x78f   : > { %v2668_v7 = vpop.xlane.xlu0 %2667  ;;  %3592 = vmatpush3.msra.mxu0 %v2686_v29  ;;  %v6037_v29 = vld [vmem:[#allocation64_spill] sm:$0xff] }
 0x790   : > { %v2684_v53 = vmul.f32 0.00390625, %v2668_v7  ;;  %v2665_v58 = vpop.xlane.xlu1 %2664  ;;  %3593 = vmatprep.subr.mxu0 %v2685_v32 }
 0x791   : > { %3594 = vmatpush3.msra.mxu0 %v2685_v32  ;;  %v2683_v43 = vmul.f32 0.00390625, %v2665_v58 }
 0x792   : > { %3595 = vmatprep.subr.mxu0 %v2684_v53 }
 0x793   : > { %v2662_v63 = vpop.xlane.xlu0 %2661  ;;  %3596 = vmatpush3.msra.mxu0 %v2684_v53 }
 0x794   : > { %v2682_v0 = vmul.f32 0.00390625, %v2662_v63  ;;  %v2659_v8 = vpop.xlane.xlu1 %2658  ;;  %3597 = vmatprep.subr.mxu0 %v2683_v43 }
 0x795   : > { %3598 = vmatpush3.msra.mxu0 %v2683_v43  ;;  %v2681_v12 = vmul.f32 0.00390625, %v2659_v8  ;;  %v6038_v43 = vld [vmem:[#allocation65_spill] sm:$0xff] }
 0x796   : > { %3599 = vmatprep.subr.mxu0 %v2682_v0 }
 0x797   : > { %3600 = vmatpush3.msra.mxu0 %v2682_v0  ;;  %v6039_v0 = vld [vmem:[#allocation66_spill] sm:$0xff] }
 0x798   : > { %v5496_v50 = vpop.permute.xlu1 %1221  ;;  %3601 = vmatprep.subr.mxu0 %v2681_v12 }
 0x799   : > { %3602 = vmatpush3.msra.mxu0 %v2681_v12  ;;  %v1351_v24 = vadd.f32 %v6032_v48, %v5496_v50  ;;  %v1353_v27 = vadd.f32 %v6033_v61, %v5496_v50 }
 0x79a   : > { %3604 = vmatmul.mubr.msk.f32.vlgmr.msra.gmra.mxu0 %vm406_vm0, %v6028_v28 }
 0x79b   : > { %v5500_v35 = vpop.permute.xlu0 %1216  ;;  %3610 = vmatprep.mubr.msk.f32.mxu0 %vm534_vm1, %v6029_v18 }
 0x79c   : > { %v5504_v19 = vpop.permute.xlu1 %1226  ;;  %v1345_v57 = vadd.f32 %v6030_v5, %v5500_v35  ;;  %v1347_v25 = vadd.f32 %v6031_v55, %v5500_v35  ;;  %v6040_v5 = vld [vmem:[#allocation67_spill] sm:$0xff] }
 0x79d   : > { %v1357_v39 = vadd.f32 %v6034_v54, %v5504_v19  ;;  %v1359_v2 = vadd.f32 %v6035_v21, %v5504_v19 }
 0x79f   : > { %v5506_v34 = vpop.permute.xlu0 %1231 }
 0x7a0   : > { %v5508_v22 = vpop.permute.xlu1 %1236  ;;  %v1363_v45 = vadd.f32 %v6036_v13, %v5506_v34  ;;  %v1365_v32 = vadd.f32 %v6037_v29, %v5506_v34 }
 0x7a1   : > { %v1369_v63 = vadd.f32 %v6038_v43, %v5508_v22  ;;  %v1371_v8 = vadd.f32 %v6039_v0, %v5508_v22 }
 0x7a3   : > { %v5510_v3 = vpop.permute.xlu0 %1241 }
 0x7a4   : > { %v5512_v17 = vpop.permute.xlu1 %1246 }
 0x7a7   : > { %v5514_v11 = vpop.permute.xlu0 %1251 }
 0x7a8   : > { %v1608_v62 = vpop.permute.xlu1 %1607 }
 0x7a9   : > { %v1645_v1 = vadd.f32 %v1608_v62, %v1345_v57  ;;  %v1646_v60 = vadd.f32 %v1608_v62, %v1347_v25  ;;  %v1375_v57 = vadd.f32 %v6040_v5, %v5510_v3  ;;  %v6041_v62 = vld [vmem:[#allocation68_spill] sm:$0xff] }
 0x7ab   : > { %v3254_v9 = vmul.f32 -1.442695, %v1645_v1  ;;  %v3255_v26 = vmul.f32 -1.442695, %v1646_v60  ;;  %v1613_v33 = vpop.permute.xlu0 %1612  ;;  %v1377_v1 = vadd.f32 %v6041_v62, %v5510_v3 }
 0x7ac   : > { %v1647_v46 = vadd.f32 %v1613_v33, %v1351_v24  ;;  %v1648_v41 = vadd.f32 %v1613_v33, %v1353_v27  ;;  %v1618_v23 = vpop.permute.xlu1 %1617  ;;  %v6042_v24 = vld [vmem:[#allocation69_spill] sm:$0xff]  ;;  %v6043_v33 = vld [vmem:[#allocation70_spill] sm:$0xff] }
 0x7ad   : > { %3809 = vpow2.f32 %v3254_v9  ;;  %v1649_v51 = vadd.f32 %v1618_v23, %v1357_v39  ;;  %v1650_v56 = vadd.f32 %v1618_v23, %v1359_v2  ;;  %v1381_v61 = vadd.f32 %v6042_v24, %v5512_v17  ;;  %v6044_v23 = vld [vmem:[#allocation71_spill] sm:$0xff] }
 0x7ae   : > { %3811 = vpow2.f32 %v3255_v26  ;;  %v3256_v36 = vmul.f32 -1.442695, %v1647_v46  ;;  %v3257_v37 = vmul.f32 -1.442695, %v1648_v41  ;;  %v1383_v54 = vadd.f32 %v6043_v33, %v5512_v17 }
 0x7af   : > { %v3258_v7 = vmul.f32 -1.442695, %v1649_v51  ;;  %v3259_v53 = vmul.f32 -1.442695, %v1650_v56  ;;  %v1623_v58 = vpop.permute.xlu0 %1622  ;;  %v1387_v51 = vadd.f32 %v6044_v23, %v5514_v11 }
 0x7b0   : > { %3813 = vpow2.f32 %v3256_v36  ;;  %v1651_v12 = vadd.f32 %v1623_v58, %v1363_v45  ;;  %v1652_v28 = vadd.f32 %v1623_v58, %v1365_v32  ;;  %v1628_v18 = vpop.permute.xlu1 %1627  ;;  %v6045_v45 = vld [vmem:[#allocation72_spill] sm:$0xff] }
 0x7b1   : > { %3815 = vpow2.f32 %v3257_v37  ;;  %v1653_v55 = vadd.f32 %v1628_v18, %v1369_v63  ;;  %v1654_v25 = vadd.f32 %v1628_v18, %v1371_v8  ;;  %v1389_v36 = vadd.f32 %v6045_v45, %v5514_v11 }
 0x7b2   : > { %3817 = vpow2.f32 %v3258_v7  ;;  %v3260_v60 = vmul.f32 -1.442695, %v1651_v12  ;;  %v3261_v48 = vmul.f32 -1.442695, %v1652_v28 }
 0x7b3   : > { %3819 = vpow2.f32 %v3259_v53  ;;  %v3262_v27 = vmul.f32 -1.442695, %v1653_v55  ;;  %v3263_v9 = vmul.f32 -1.442695, %v1654_v25  ;;  %v1633_v26 = vpop.permute.xlu0 %1632 }
 0x7b4   : > { %3821 = vpow2.f32 %v3260_v60  ;;  %v1655_v39 = vadd.f32 %v1633_v26, %v1375_v57  ;;  %v1656_v21 = vadd.f32 %v1633_v26, %v1377_v1  ;;  %v1638_v2 = vpop.permute.xlu1 %1637 }
 0x7b5   : > { %3823 = vpow2.f32 %v3261_v48  ;;  %v1657_v46 = vadd.f32 %v1638_v2, %v1381_v61  ;;  %v1658_v41 = vadd.f32 %v1638_v2, %v1383_v54 }
 0x7b6   : > { %3825 = vpow2.f32 %v3262_v27  ;;  %v3264_v56 = vmul.f32 -1.442695, %v1655_v39  ;;  %v3265_v13 = vmul.f32 -1.442695, %v1656_v21 }
 0x7b7   : > { %3827 = vpow2.f32 %v3263_v9  ;;  %v3266_v37 = vmul.f32 -1.442695, %v1657_v46  ;;  %v3267_v29 = vmul.f32 -1.442695, %v1658_v41  ;;  %v1643_v32 = vpop.permute.xlu0 %1642 }
 0x7b8   : > { %3829 = vpow2.f32 %v3264_v56  ;;  %v1659_v7 = vadd.f32 %v1643_v32, %v1387_v51  ;;  %v1660_v53 = vadd.f32 %v1643_v32, %v1389_v36 }
 0x7b9   : > { %3831 = vpow2.f32 %v3265_v13 }
 0x7ba   : > { %v3810_v58 = vpop.eup %3809  ;;  %3833 = vpow2.f32 %v3266_v37  ;;  %v3268_v43 = vmul.f32 -1.442695, %v1659_v7  ;;  %v3269_v8 = vmul.f32 -1.442695, %v1660_v53  ;;  %v6046_v37 = vld [vmem:[#allocation41_spill] sm:$0xff]  ;;  %v6047_v53 = vld [vmem:[#allocation42_spill] sm:$0xff] }
 0x7bb   : > { %v3812_v63 = vpop.eup %3811  ;;  %v1709_v0 = vadd.f32 1.0, %v3810_v58  ;;  %3835 = vpow2.f32 %v3267_v29 }
 0x7bc   : > { %v1710_v12 = vadd.f32 1.0, %v3812_v63  ;;  %3837 = vpow2.f32 %v3268_v43  ;;  %v3969_v63 = vld [vmem:[%s4362_s28] sm:$0xff] }
 0x7bd   : > { %v3814_v28 = vpop.eup %3813  ;;  %3839 = vrcp.f32 %v1709_v0 }
 0x7be   : > { %v3816_v18 = vpop.eup %3815  ;;  %3841 = vrcp.f32 %v1710_v12  ;;  %v1711_v5 = vadd.f32 1.0, %v3814_v28 }
 0x7bf   : > { %v3818_v57 = vpop.eup %3817  ;;  %v1712_v55 = vadd.f32 1.0, %v3816_v18  ;;  %3843 = vpow2.f32 %v3269_v8  ;;  %v3970_v18 = vld [vmem:[%s4362_s28 + $0x8] sm:$0xff] }
 0x7c0   : > { %v3820_v25 = vpop.eup %3819  ;;  %3845 = vrcp.f32 %v1711_v5  ;;  %v1713_v62 = vadd.f32 1.0, %v3818_v57  ;;  %v6048_v57 = vld [vmem:[#allocation13_spill] sm:$0xff] }
 0x7c1   : > { %v3822_v1 = vpop.eup %3821  ;;  %3847 = vrcp.f32 %v1712_v55  ;;  %v1714_v60 = vadd.f32 1.0, %v3820_v25 }
 0x7c2   : > { %v3824_v48 = vpop.eup %3823  ;;  %3849 = vrcp.f32 %v1713_v62  ;;  %v1715_v24 = vadd.f32 1.0, %v3822_v1  ;;  %v6049_v62 = vld [vmem:[#allocation11_spill] sm:$0xff] }
 0x7c3   : > { %v3826_v61 = vpop.eup %3825  ;;  %3851 = vrcp.f32 %v1714_v60  ;;  %v1716_v27 = vadd.f32 1.0, %v3824_v48 }
 0x7c4   : > { %v3828_v9 = vpop.eup %3827  ;;  %3853 = vrcp.f32 %v1715_v24  ;;  %v1717_v26 = vadd.f32 1.0, %v3826_v61  ;;  %v3971_v24 = vld [vmem:[%s4362_s28 + $0x10] sm:$0xff] }
 0x7c5   : > { %v3830_v33 = vpop.eup %3829  ;;  %3855 = vrcp.f32 %v1716_v27  ;;  %v1718_v54 = vadd.f32 1.0, %v3828_v9  ;;  %v6050_v27 = vld [vmem:[#allocation39_spill] sm:$0xff] }
 0x7c6   : > { %v3832_v39 = vpop.eup %3831  ;;  %3857 = vrcp.f32 %v1717_v26  ;;  %v1719_v21 = vadd.f32 1.0, %v3830_v33  ;;  %v3972_v33 = vld [vmem:[%s4362_s28 + $0x18] sm:$0xff] }
 0x7c7   : > { %v3834_v2 = vpop.eup %3833  ;;  %3859 = vrcp.f32 %v1718_v54  ;;  %v1720_v46 = vadd.f32 1.0, %v3832_v39  ;;  %v6051_v39 = vld [vmem:[#allocation40_spill] sm:$0xff] }
 0x7c8   : > { %v3836_v41 = vpop.eup %3835  ;;  %3861 = vrcp.f32 %v1719_v21  ;;  %v1721_v23 = vadd.f32 1.0, %v3834_v2  ;;  %v6052_v2 = vld [vmem:[#allocation15_spill] sm:$0xff] }
 0x7c9   : > { %v3838_v51 = vpop.eup %3837  ;;  %3863 = vrcp.f32 %v1720_v46  ;;  %v1722_v56 = vadd.f32 1.0, %v3836_v41 }
 0x7ca   : > { %v3840_v13 = vpop.eup %3839  ;;  %3865 = vrcp.f32 %v1721_v23  ;;  %v1723_v45 = vadd.f32 1.0, %v3838_v51  ;;  %v3973_v51 = vld [vmem:[%s4362_s28 + $0x20] sm:$0xff] }
 0x7cb   : > { %v3842_v36 = vpop.eup %3841  ;;  %v1757_v29 = vmul.f32 %v3840_v13, %v6046_v37  ;;  %3867 = vrcp.f32 %v1722_v56  ;;  %v2529_v32 = vpop.f32.mrf.mxu0  ;;  %v6053_v13 = vld [vmem:[#allocation37_spill] sm:$0xff] }
 0x7cc   : > { %v3844_v7 = vpop.eup %3843  ;;  %v1758_v58 = vmul.f32 %v3842_v36, %v6047_v53  ;;  %3869 = vrcp.f32 %v1723_v45  ;;  %v6054_v36 = vld [vmem:[#allocation18_spill] sm:$0xff]  ;;  %v3974_v53 = vld [vmem:[%s4362_s28 + $0x28] sm:$0xff] }
 0x7cd   : > { %v3846_v43 = vpop.eup %3845  ;;  %v1773_v0 = vadd.f32 %v3969_v63, %v1757_v29  ;;  %v1724_v8 = vadd.f32 1.0, %v3844_v7  ;;  %v2531_v12 = vpop.f32.mrf.mxu0 }
 0x7ce   : > { %v3848_v28 = vpop.eup %3847  ;;  %v1774_v5 = vadd.f32 %v3970_v18, %v1758_v58  ;;  %v1759_v55 = vmul.f32 %v3846_v43, %v6048_v57  ;;  %v2532_v37 = vadd.f32 %v2531_v12, %v6054_v36  ;;  %v6055_v43 = vld [vmem:[#allocation38_spill] sm:$0xff] }
 0x7cf   : > { %v3850_v25 = vpop.eup %3849  ;;  %1789 = vst [vmem:[%s5554_s23] sm:$0xff] %v1773_v0  ;;  %v1760_v1 = vmul.f32 %v3848_v28, %v6049_v62  ;;  %3871 = vrcp.f32 %v1724_v8  ;;  %v2535_v60 = vpop.f32.mrf.mxu0  ;;  %v2530_v0 = vadd.f32 %v2529_v32, %v6054_v36  ;;  %v3975_v28 = vld [vmem:[%s4362_s28 + $0x30] sm:$0xff]  ;;  %v3977_v32 = vld [vmem:[%s4362_s28 + $0x40] sm:$0xff]  ;;  %v3980_v36 = vld [vmem:[%s4362_s28 + $0x58] sm:$0xff] }
 0x7d0   : > { %v3852_v48 = vpop.eup %3851  ;;  %1790 = vst [vmem:[%s5554_s23 + $0x8] sm:$0xff] %v1774_v5  ;;  %v1775_v61 = vadd.f32 %v3971_v24, %v1759_v55  ;;  %v1761_v9 = vmul.f32 %v3850_v25, %v6050_v27  ;;  %v2536_v46 = vadd.f32 %v2535_v60, %v6052_v2  ;;  %v6056_v5 = vld [vmem:[#allocation31_spill] sm:$0xff]  ;;  %v3976_v25 = vld [vmem:[%s4362_s28 + $0x38] sm:$0xff] }
 0x7d1   : > { %v3854_v26 = vpop.eup %3853  ;;  %v1776_v54 = vadd.f32 %v3972_v33, %v1760_v1  ;;  %v1762_v21 = vmul.f32 %v3852_v48, %v6051_v39  ;;  %v2537_v41 = vpop.f32.mrf.mxu0  ;;  %v6057_v1 = vld [vmem:[#allocation32_spill] sm:$0xff]  ;;  %v6058_v27 = vld [vmem:[#allocation34_spill] sm:$0xff] }
 0x7d2   : > { %v3856_v23 = vpop.eup %3855  ;;  %1791 = vst [vmem:[%s5554_s23 + $0x10] sm:$0xff] %v1775_v61  ;;  %v1777_v56 = vadd.f32 %v3973_v51, %v1761_v9  ;;  %v1763_v45 = vmul.f32 %v3854_v26, %v6053_v13  ;;  %v2538_v29 = vadd.f32 %v2537_v41, %v6052_v2  ;;  %v2542_v48 = vmax.f32 %v2536_v46, 0.0 }
 0x7d3   : > { %v3858_v7 = vpop.eup %3857  ;;  %1792 = vst [vmem:[%s5554_s23 + $0x18] sm:$0xff] %v1776_v54  ;;  %v1778_v58 = vadd.f32 %v3974_v53, %v1762_v21  ;;  %v1764_v63 = vmul.f32 %v3856_v23, %v6055_v43  ;;  %v2541_v26 = vmax.f32 %v2532_v37, 0.0  ;;  %v3978_v54 = vld [vmem:[%s4362_s28 + $0x48] sm:$0xff]  ;;  %v2540_v46 = vmax.f32 %v2530_v0, 0.0  ;;  %v3979_v23 = vld [vmem:[%s4362_s28 + $0x50] sm:$0xff]  ;;  %v3981_v53 = vld [vmem:[%s4362_s28 + $0x60] sm:$0xff] }
 0x7d4   : > { %v3860_v8 = vpop.eup %3859  ;;  %1793 = vst [vmem:[%s5554_s23 + $0x20] sm:$0xff] %v1777_v56  ;;  %v1779_v18 = vadd.f32 %v3975_v28, %v1763_v45  ;;  %v1765_v57 = vmul.f32 %v3858_v7, %v6056_v5  ;;  %v2543_v12 = vmax.f32 %v2538_v29, 0.0  ;;  %v6059_v21 = vld [vmem:[#allocation36_spill] sm:$0xff]  ;;  %v6060_v56 = vld [vmem:[#allocation33_spill] sm:$0xff]  ;;  %v6061_v29 = vld [vmem:[#allocation35_spill] sm:$0xff] }
 0x7d5   : > { %v3862_v55 = vpop.eup %3861  ;;  %1794 = vst [vmem:[%s5554_s23 + $0x28] sm:$0xff] %v1778_v58  ;;  %v1780_v62 = vadd.f32 %v3976_v25, %v1764_v63  ;;  %v1766_v60 = vmul.f32 %v3860_v8, %v6057_v1  ;;  %v6062_v43 = vld [vmem:[#allocation29_spill] sm:$0xff]  ;;  %v3982_v0 = vld [vmem:[%s5817_s3 + $0x80] sm:$0xff]  ;;  %v3983_v8 = vld [vmem:[%s4362_s28 + $0x68] sm:$0xff] }
 0x7d6   : > { %v3864_v24 = vpop.eup %3863  ;;  %1795 = vst [vmem:[%s5554_s23 + $0x30] sm:$0xff] %v1779_v18  ;;  %v1781_v61 = vadd.f32 %v3977_v32, %v1765_v57  ;;  %v1767_v9 = vmul.f32 %v3862_v55, %v6058_v27  ;;  %2572 = vmatprep.subr.mxu1 %v2543_v12  ;;  %v3984_v5 = vld [vmem:[%s4362_s28 + $0x70] sm:$0xff]  ;;  %v6063_v12 = vld [vmem:[#allocation30_spill] sm:$0xff]  ;;  %v3985_v25 = vld [vmem:[%s5817_s3 + $0x88] sm:$0xff] }
 0x7d7   : > { %v3866_v33 = vpop.eup %3865  ;;  %1796 = vst [vmem:[%s5554_s23 + $0x38] sm:$0xff] %v1780_v62  ;;  %v1782_v39 = vadd.f32 %v3978_v54, %v1766_v60  ;;  %v1768_v2 = vmul.f32 %v3864_v24, %v6059_v21  ;;  %2573 = vmatpush1.msra.mxu1 %v2542_v48  ;;  %v3986_v62 = vld [vmem:[%s4362_s28 + $0x78] sm:$0xff]  ;;  %v3987_v60 = vld [vmem:[%s5817_s3 + $0x90] sm:$0xff]  ;;  %v3989_v24 = vld [vmem:[%s5817_s3 + $0xa0] sm:$0xff] }
 0x7d8   : > { %v3868_v41 = vpop.eup %3867  ;;  %1797 = vst [vmem:[%s5554_s23 + $0x40] sm:$0xff] %v1781_v61  ;;  %v1783_v51 = vadd.f32 %v3979_v23, %v1767_v9  ;;  %v1769_v13 = vmul.f32 %v3866_v33, %v6060_v56  ;;  %2574 = vmatprep.subr.mxu1 %v2541_v26  ;;  %v3988_v48 = vld [vmem:[%s5817_s3 + $0x98] sm:$0xff]  ;;  %v3990_v32 = vld [vmem:[%s5817_s3 + $0xa8] sm:$0xff]  ;;  %v3991_v61 = vld [vmem:[%s5817_s3 + $0xb0] sm:$0xff] }
 0x7d9   : > { %v3870_v45 = vpop.eup %3869  ;;  %1798 = vst [vmem:[%s5554_s23 + $0x48] sm:$0xff] %v1782_v39  ;;  %v1784_v37 = vadd.f32 %v3980_v36, %v1768_v2  ;;  %v1770_v7 = vmul.f32 %v3868_v41, %v6061_v29  ;;  %2575 = vmatpush1.msra.mxu1 %v2540_v46  ;;  %v3992_v27 = vld [vmem:[%s5817_s3 + $0xb8] sm:$0xff]  ;;  %v3994_v21 = vld [vmem:[%s5818_s4 + $0x50] sm:$0xff]  ;;  %v3995_v46 = vld [vmem:[%s5817_s3 + $0x48] sm:$0xff] }
 0x7da   : > { %1799 = vst [vmem:[%s5554_s23 + $0x50] sm:$0xff] %v1783_v51  ;;  %v1785_v58 = vadd.f32 %v3981_v53, %v1769_v13  ;;  %v1771_v63 = vmul.f32 %v3870_v45, %v6062_v43  ;;  %3340 = vmatmul.mubr.msk.f32.vlgmr.msra.gmra.mxu1 %vm534_vm1, %v3982_v0  ;;  %v3993_v26 = vld [vmem:[%s5818_s4 + $0x58] sm:$0xff]  ;;  %v3996_v41 = vld [vmem:[%s5817_s3 + $0x50] sm:$0xff]  ;;  %v3998_v51 = vld [vmem:[%s5817_s3 + $0x60] sm:$0xff] }
 0x7db   : > { %1800 = vst [vmem:[%s5554_s23 + $0x58] sm:$0xff] %v1784_v37  ;;  %v1786_v28 = vadd.f32 %v3983_v8, %v1770_v7  ;;  %2614 = vmatprep.mubr.f32.mxu1 %v5950_v42  ;;  %v3997_v23 = vld [vmem:[%s5817_s3 + $0x58] sm:$0xff]  ;;  %v3999_v56 = vld [vmem:[%s5817_s3 + $0x68] sm:$0xff]  ;;  %v4000_v13 = vld [vmem:[%s5817_s3 + $0x70] sm:$0xff] }
 0x7dc   : > { %v3872_v18 = vpop.eup %3871  ;;  %1801 = vst [vmem:[%s5554_s23 + $0x60] sm:$0xff] %v1785_v58  ;;  %v1787_v57 = vadd.f32 %v3984_v5, %v1771_v63  ;;  %v4001_v45 = vld [vmem:[%s5817_s3 + $0x78] sm:$0xff]  ;;  %v4002_v37 = vld [vmem:[%s5818_s4 + $0x68] sm:$0xff]  ;;  %v4003_v53 = vld [vmem:[%s5818_s4 + $0x60] sm:$0xff] }
 0x7dd   : > { %1802 = vst [vmem:[%s5554_s23 + $0x68] sm:$0xff] %v1786_v28  ;;  %v1772_v55 = vmul.f32 %v3872_v18, %v6063_v12  ;;  %v4004_v63 = vld [vmem:[%s5818_s4 + $0x78] sm:$0xff]  ;;  %v4005_v28 = vld [vmem:[%s5818_s4 + $0x70] sm:$0xff] }
 0x7de   : > { %1803 = vst [vmem:[%s5554_s23 + $0x70] sm:$0xff] %v1787_v57  ;;  %3341 = vmatmul.mubr.msk.f32.gmra.mxu1 %vm534_vm1, %v3985_v25  ;;  %v4006_v57 = vld [vmem:[%s5818_s4 + $0x88] sm:$0xff]  ;;  %v4007_v25 = vld [vmem:[%s5818_s4 + $0x80] sm:$0xff] }
 0x7df   : > { %v1788_v1 = vadd.f32 %v3986_v62, %v1772_v55  ;;  %2620 = vmatprep.mubr.f32.mxu1 %v5950_v42 }
 0x7e1   : > { %1804 = vst [vmem:[%s5554_s23 + $0x78] sm:$0xff] %v1788_v1 }
 0x7e2   : > { %3342 = vmatmul.mubr.msk.f32.gmra.mxu1 %vm534_vm1, %v3987_v60  ;;  %v4008_v60 = vld [vmem:[%s5818_s4 + $0x98] sm:$0xff] }
 0x7e3   : > { %2626 = vmatprep.mubr.f32.mxu1 %v5950_v42 }
 0x7e6   : > { %3343 = vmatmul.mubr.msk.f32.gmra.mxu1 %vm534_vm1, %v3988_v48 }
 0x7e7   : > { %2632 = vmatprep.mubr.f32.mxu1 %v5950_v42 }
 0x7ea   : > { %3344 = vmatmul.mubr.msk.f32.gmra.mxu1 %vm534_vm1, %v3989_v24 }
 0x7eb   : > { %2638 = vmatprep.mubr.f32.mxu1 %v5950_v42 }
 0x7ee   : > { %3345 = vmatmul.mubr.msk.f32.gmra.mxu1 %vm534_vm1, %v3990_v32  ;;  %v4009_v32 = vld [vmem:[%s5818_s4 + $0x90] sm:$0xff] }
 0x7ef   : > { %2644 = vmatprep.mubr.f32.mxu1 %v5950_v42 }
 0x7f2   : > { %3346 = vmatmul.mubr.msk.f32.gmra.mxu1 %vm534_vm1, %v3991_v61 }
 0x7f3   : > { %2650 = vmatprep.mubr.f32.mxu1 %v5950_v42 }
 0x7f6   : > { %3347 = vmatmul.mubr.msk.f32.gmra.mxu1 %vm534_vm1, %v3992_v27 }
 0x85a   : > { %v3605_v9 = vpop.f32.mrf.mxu0 }
 0x85b   : > { %v2761_v33 = vadd.f32 %v3993_v26, %v3605_v9 }
 0x85c   : > { %v2755_v54 = vpop.f32.mrf.mxu0 }
 0x85d   : > { %v2765_v39 = vmax.f32 %v2761_v33, 0.0  ;;  %v2756_v2 = vadd.f32 %v3994_v21, %v2755_v54 }
 0x85f   : > { %v2764_v42 = vmax.f32 %v2756_v2, 0.0  ;;  %3606 = vmatprep.subr.mxu0 %v2765_v39 }
 0x860   : > { %3607 = vmatpush3.msra.mxu0 %v2765_v39 }
 0x861   : > { %3608 = vmatprep.subr.mxu0 %v2764_v42 }
 0x862   : > { %3609 = vmatpush3.msra.mxu0 %v2764_v42 }
 0x863   : > { %3611 = vmatmul.mubr.msk.f32.vlgmr.msra.gmra.mxu0 %vm534_vm1, %v3995_v46 }
 0x864   : > { %3613 = vmatprep.mubr.msk.f32.mxu0 %vm534_vm1, %v3996_v41 }
 0x867   : > { %3614 = vmatmul.mubr.msk.f32.gmra.mxu0 %vm534_vm1, %v3997_v23 }
 0x868   : > { %3616 = vmatprep.mubr.msk.f32.mxu0 %vm534_vm1, %v3998_v51 }
 0x86b   : > { %3617 = vmatmul.mubr.msk.f32.gmra.mxu0 %vm534_vm1, %v3999_v56 }
 0x86c   : > { %3619 = vmatprep.mubr.msk.f32.mxu0 %vm534_vm1, %v4000_v13 }
 0x86f   : > { %3620 = vmatmul.mubr.msk.f32.gmra.mxu0 %vm534_vm1, %v4001_v45 }
 0x89a   : > { %v2610_v27 = vpop.f32.mrf.mxu1 }
 0x89c   : > { %v2612_v9 = vpop.f32.mrf.mxu1 }
 0x89e   : > { %v2616_v26 = vpop.f32.mrf.mxu1 }
 0x89f   : > { %v2617_v56 = vadd.f32 %v2616_v26, %v5496_v50 }
 0x8a0   : > { %v2618_v33 = vpop.f32.mrf.mxu1 }
 0x8a1   : > { %v2619_v13 = vadd.f32 %v2618_v33, %v5496_v50 }
 0x8a2   : > { %v2622_v54 = vpop.f32.mrf.mxu1 }
 0x8a4   : > { %v2624_v39 = vpop.f32.mrf.mxu1 }
 0x8a6   : > { %v2628_v21 = vpop.f32.mrf.mxu1 }
 0x8a8   : > { %v2630_v2 = vpop.f32.mrf.mxu1 }
 0x8a9   : > { %v2631_v50 = vadd.f32 %v2630_v2, %v5506_v34 }
 0x8aa   : > { %v2634_v42 = vpop.f32.mrf.mxu1 }
 0x8ac   : > { %v2636_v46 = vpop.f32.mrf.mxu1 }
 0x8ae   : > { %v2640_v41 = vpop.f32.mrf.mxu1 }
 0x8b0   : > { %v2642_v23 = vpop.f32.mrf.mxu1 }
 0x8b2   : > { %v2646_v51 = vpop.f32.mrf.mxu1 }
 0x923   : > { %v3612_v36 = vpop.f32.mrf.mxu0 }
 0x924   : > { %v2838_v29 = vadd.f32 %v4002_v37, %v3612_v36  ;;  %v2611_v36 = vadd.f32 %v2610_v27, %v5500_v35  ;;  %v2613_v37 = vadd.f32 %v2612_v9, %v5500_v35 }
 0x925   : > { %v2832_v7 = vpop.f32.mrf.mxu0 }
 0x926   : > { %v2833_v58 = vadd.f32 %v4003_v53, %v2832_v7  ;;  %2878 = vperm.xlu0 %3679, %v2838_v29   ;;  %v2648_v29 = vpop.f32.mrf.mxu1 }
 0x927   : > { %v3615_v43 = vpop.f32.mrf.mxu0 }
 0x928   : > { %v2848_v0 = vadd.f32 %v4004_v63, %v3615_v43  ;;  %2873 = vperm.xlu1 %3680, %v2833_v58   ;;  %v2629_v58 = vadd.f32 %v2628_v21, %v5506_v34  ;;  %v2643_v34 = vadd.f32 %v2642_v23, %v5510_v3  ;;  %v2647_v21 = vadd.f32 %v2646_v51, %v5512_v17 }
 0x929   : > { %v2842_v8 = vpop.f32.mrf.mxu0 }
 0x92a   : > { %v2843_v18 = vadd.f32 %v4005_v28, %v2842_v8  ;;  %2888 = vperm.xlu0 %3679, %v2848_v0  }
 0x92b   : > { %v3618_v5 = vpop.f32.mrf.mxu0 }
 0x92c   : > { %v2858_v12 = vadd.f32 %v4006_v57, %v3618_v5  ;;  %2883 = vperm.xlu1 %3680, %v2843_v18   ;;  %v2623_v18 = vadd.f32 %v2622_v54, %v5504_v19  ;;  %v2625_v5 = vadd.f32 %v2624_v39, %v5504_v19  ;;  %v2637_v19 = vadd.f32 %v2636_v46, %v5508_v22 }
 0x92d   : > { %v2852_v55 = vpop.f32.mrf.mxu0 }
 0x92e   : > { %v2853_v62 = vadd.f32 %v4007_v25, %v2852_v55  ;;  %2898 = vperm.xlu0 %3679, %v2858_v12   ;;  %v2652_v12 = vpop.f32.mrf.mxu1 }
 0x92f   : > { %v3621_v1 = vpop.f32.mrf.mxu0  ;;  %v2653_v2 = vadd.f32 %v2652_v12, %v5514_v11 }
 0x930   : > { %v2868_v48 = vadd.f32 %v4008_v60, %v3621_v1  ;;  %2893 = vperm.xlu1 %3680, %v2853_v62   ;;  %v2635_v62 = vadd.f32 %v2634_v42, %v5508_v22  ;;  %v2641_v1 = vadd.f32 %v2640_v41, %v5510_v3  ;;  %v2654_v26 = vpop.f32.mrf.mxu1  ;;  %v2649_v3 = vadd.f32 %v2648_v29, %v5512_v17 }
 0x931   : > { %v2862_v24 = vpop.f32.mrf.mxu0  ;;  %v2655_v23 = vadd.f32 %v2654_v26, %v5514_v11 }
 0x932   : > { %v2863_v61 = vadd.f32 %v4009_v32, %v2862_v24  ;;  %2908 = vperm.xlu0 %3679, %v2868_v48  }
 0x934   : > { %2903 = vperm.xlu1 %3680, %v2863_v61  }
 0x9a1   : > { %v2879_v45 = vpop.permute.xlu0 %2878 }
 0x9a2   : > { %v2913_v7 = vadd.f32 %v2879_v45, %v2617_v56  ;;  %v2914_v53 = vadd.f32 %v2879_v45, %v2619_v13 }
 0x9a3   : > { %v2874_v43 = vpop.permute.xlu1 %2873 }
 0x9a4   : > { %v3360_v63 = vmul.f32 -1.442695, %v2913_v7  ;;  %v3361_v0 = vmul.f32 -1.442695, %v2914_v53  ;;  %v2911_v8 = vadd.f32 %v2874_v43, %v2611_v36  ;;  %v2912_v28 = vadd.f32 %v2874_v43, %v2613_v37 }
 0x9a5   : > { %v2889_v57 = vpop.permute.xlu0 %2888 }
 0x9a6   : > { %3873 = vpow2.f32 %v3360_v63  ;;  %v3358_v35 = vmul.f32 -1.442695, %v2911_v8  ;;  %v3359_v55 = vmul.f32 -1.442695, %v2912_v28  ;;  %v2917_v25 = vadd.f32 %v2889_v57, %v2629_v58 }
 0x9a7   : > { %3875 = vpow2.f32 %v3361_v0  ;;  %v2918_v60 = vadd.f32 %v2889_v57, %v2631_v50  ;;  %v2884_v48 = vpop.permute.xlu1 %2883 }
 0x9a8   : > { %3877 = vpow2.f32 %v3358_v35  ;;  %v3364_v24 = vmul.f32 -1.442695, %v2917_v25  ;;  %v2915_v32 = vadd.f32 %v2884_v48, %v2623_v18  ;;  %v2916_v61 = vadd.f32 %v2884_v48, %v2625_v5 }
 0x9a9   : > { %3879 = vpow2.f32 %v3359_v55  ;;  %v3365_v27 = vmul.f32 -1.442695, %v2918_v60  ;;  %v2899_v9 = vpop.permute.xlu0 %2898 }
 0x9aa   : > { %3881 = vpow2.f32 %v3364_v24  ;;  %v3362_v33 = vmul.f32 -1.442695, %v2915_v32  ;;  %v3363_v54 = vmul.f32 -1.442695, %v2916_v61  ;;  %v2921_v39 = vadd.f32 %v2899_v9, %v2641_v1 }
 0x9ab   : > { %3883 = vpow2.f32 %v3365_v27  ;;  %v2922_v42 = vadd.f32 %v2899_v9, %v2643_v34  ;;  %v2894_v41 = vpop.permute.xlu1 %2893 }
 0x9ac   : > { %3885 = vpow2.f32 %v3362_v33  ;;  %v3368_v56 = vmul.f32 -1.442695, %v2921_v39  ;;  %v2919_v22 = vadd.f32 %v2894_v41, %v2635_v62  ;;  %v2920_v46 = vadd.f32 %v2894_v41, %v2637_v19 }
 0x9ad   : > { %3887 = vpow2.f32 %v3363_v54  ;;  %v3369_v13 = vmul.f32 -1.442695, %v2922_v42  ;;  %v2909_v45 = vpop.permute.xlu0 %2908 }
 0x9ae   : > { %3889 = vpow2.f32 %v3368_v56  ;;  %v3366_v36 = vmul.f32 -1.442695, %v2919_v22  ;;  %v3367_v37 = vmul.f32 -1.442695, %v2920_v46  ;;  %v2925_v51 = vadd.f32 %v2909_v45, %v2653_v2 }
 0x9af   : > { %3891 = vpow2.f32 %v3369_v13  ;;  %v2926_v7 = vadd.f32 %v2909_v45, %v2655_v23  ;;  %v2904_v53 = vpop.permute.xlu1 %2903 }
 0x9b0   : > { %3893 = vpow2.f32 %v3366_v36  ;;  %v3372_v58 = vmul.f32 -1.442695, %v2925_v51  ;;  %v2923_v43 = vadd.f32 %v2904_v53, %v2647_v21  ;;  %v2924_v63 = vadd.f32 %v2904_v53, %v2649_v3 }
 0x9b1   : > { %3895 = vpow2.f32 %v3367_v37  ;;  %v3373_v0 = vmul.f32 -1.442695, %v2926_v7  ;;  %v4010_v37 = vld [vmem:[%s4362_s28 + $0x90] sm:$0xff] }
 0x9b2   : > { %3897 = vpow2.f32 %v3372_v58  ;;  %v3370_v17 = vmul.f32 -1.442695, %v2923_v43  ;;  %v3371_v29 = vmul.f32 -1.442695, %v2924_v63  ;;  %v4011_v58 = vld [vmem:[%s4362_s28 + $0x98] sm:$0xff] }
 0x9b3   : > { %v3874_v11 = vpop.eup %3873  ;;  %3899 = vpow2.f32 %v3373_v0 }
 0x9b4   : > { %v3876_v8 = vpop.eup %3875  ;;  %v2977_v28 = vadd.f32 1.0, %v3874_v11  ;;  %3901 = vpow2.f32 %v3370_v17 }
 0x9b5   : > { %v3878_v18 = vpop.eup %3877  ;;  %v2978_v5 = vadd.f32 1.0, %v3876_v8  ;;  %3903 = vpow2.f32 %v3371_v29 }
 0x9b6   : > { %v3880_v50 = vpop.eup %3879  ;;  %3905 = vrcp.f32 %v2977_v28  ;;  %v2975_v57 = vadd.f32 1.0, %v3878_v18 }
 0x9b7   : > { %v3882_v12 = vpop.eup %3881  ;;  %3907 = vrcp.f32 %v2978_v5  ;;  %v2976_v35 = vadd.f32 1.0, %v3880_v50 }
 0x9b8   : > { %v3884_v55 = vpop.eup %3883  ;;  %3909 = vrcp.f32 %v2975_v57  ;;  %v2981_v25 = vadd.f32 1.0, %v3882_v12 }
 0x9b9   : > { %v3886_v62 = vpop.eup %3885  ;;  %3911 = vrcp.f32 %v2976_v35  ;;  %v2982_v1 = vadd.f32 1.0, %v3884_v55 }
 0x9ba   : > { %v3888_v60 = vpop.eup %3887  ;;  %3913 = vrcp.f32 %v2981_v25  ;;  %v2979_v48 = vadd.f32 1.0, %v3886_v62 }
 0x9bb   : > { %v3890_v24 = vpop.eup %3889  ;;  %3915 = vrcp.f32 %v2982_v1  ;;  %v2980_v32 = vadd.f32 1.0, %v3888_v60 }
 0x9bc   : > { %v3892_v61 = vpop.eup %3891  ;;  %3917 = vrcp.f32 %v2979_v48  ;;  %v2985_v19 = vadd.f32 1.0, %v3890_v24 }
 0x9bd   : > { %v3894_v34 = vpop.eup %3893  ;;  %3919 = vrcp.f32 %v2980_v32  ;;  %v2986_v27 = vadd.f32 1.0, %v3892_v61 }
 0x9be   : > { %v3896_v9 = vpop.eup %3895  ;;  %3921 = vrcp.f32 %v2985_v19  ;;  %v2983_v26 = vadd.f32 1.0, %v3894_v34 }
 0x9bf   : > { %v3898_v33 = vpop.eup %3897  ;;  %3923 = vrcp.f32 %v2986_v27  ;;  %v2984_v54 = vadd.f32 1.0, %v3896_v9 }
 0x9c0   : > { %v3900_v39 = vpop.eup %3899  ;;  %3925 = vrcp.f32 %v2983_v26  ;;  %v2989_v21 = vadd.f32 1.0, %v3898_v33 }
 0x9c1   : > { %v3902_v2 = vpop.eup %3901  ;;  %3927 = vrcp.f32 %v2984_v54  ;;  %v2990_v42 = vadd.f32 1.0, %v3900_v39 }
 0x9c2   : > { %v3904_v41 = vpop.eup %3903  ;;  %3929 = vrcp.f32 %v2989_v21  ;;  %v2987_v56 = vadd.f32 1.0, %v3902_v2  ;;  %v4022_v21 = vld [vmem:[%s4362_s28 + $0xf0] sm:$0xff] }
 0x9c3   : > { %v3906_v22 = vpop.eup %3905  ;;  %3931 = vrcp.f32 %v2990_v42  ;;  %v2988_v46 = vadd.f32 1.0, %v3904_v41  ;;  %v4023_v42 = vld [vmem:[%s4362_s28 + $0xf8] sm:$0xff] }
 0x9c4   : > { %v3908_v3 = vpop.eup %3907  ;;  %v3025_v23 = vmul.f32 %v3906_v22, %v5413_v52  ;;  %3933 = vrcp.f32 %v2987_v56 }
 0x9c5   : > { %v3910_v13 = vpop.eup %3909  ;;  %v3026_v45 = vmul.f32 %v3908_v3, %v5419_v31  ;;  %3935 = vrcp.f32 %v2988_v46  ;;  %v4012_v31 = vld [vmem:[%s4362_s28 + $0x80] sm:$0xff] }
 0x9c6   : > { %v3912_v36 = vpop.eup %3911  ;;  %v3041_v51 = vadd.f32 %v4010_v37, %v3025_v23  ;;  %v3023_v7 = vmul.f32 %v3910_v13, %v5425_v20  ;;  %v4013_v20 = vld [vmem:[%s4362_s28 + $0x88] sm:$0xff] }
 0x9c7   : > { %v3914_v53 = vpop.eup %3913  ;;  %v3042_v43 = vadd.f32 %v4011_v58, %v3026_v45  ;;  %v3024_v63 = vmul.f32 %v3912_v36, %v5429_v14  ;;  %v4014_v14 = vld [vmem:[%s4362_s28 + $0xb0] sm:$0xff] }
 0x9c8   : > { %v3916_v52 = vpop.eup %3915  ;;  %3376 = vst [vmem:[%s5554_s23 + $0x90] sm:$0xff] %v3041_v51  ;;  %v3039_v0 = vadd.f32 %v4012_v31, %v3023_v7  ;;  %v3029_v17 = vmul.f32 %v3914_v53, %v5389_v49  ;;  %v4015_v49 = vld [vmem:[%s4362_s28 + $0xb8] sm:$0xff] }
 0x9c9   : > { %v3918_v29 = vpop.eup %3917  ;;  %3377 = vst [vmem:[%s5554_s23 + $0x98] sm:$0xff] %v3042_v43  ;;  %v3040_v11 = vadd.f32 %v4013_v20, %v3024_v63  ;;  %v3030_v8 = vmul.f32 %v3916_v52, %v5395_v47  ;;  %v4016_v47 = vld [vmem:[%s4362_s28 + $0xa0] sm:$0xff] }
 0x9ca   : > { %v3920_v28 = vpop.eup %3919  ;;  %3374 = vst [vmem:[%s5554_s23 + $0x80] sm:$0xff] %v3039_v0  ;;  %v3045_v18 = vadd.f32 %v4014_v14, %v3029_v17  ;;  %v3027_v5 = vmul.f32 %v3918_v29, %v5401_v30  ;;  %v4017_v30 = vld [vmem:[%s4362_s28 + $0xa8] sm:$0xff] }
 0x9cb   : > { %v3922_v50 = vpop.eup %3921  ;;  %3375 = vst [vmem:[%s5554_s23 + $0x88] sm:$0xff] %v3040_v11  ;;  %v3046_v57 = vadd.f32 %v4015_v49, %v3030_v8  ;;  %v3028_v12 = vmul.f32 %v3920_v28, %v5405_v10  ;;  %v4018_v10 = vld [vmem:[%s4362_s28 + $0xd0] sm:$0xff] }
 0x9cc   : > { %v3924_v35 = vpop.eup %3923  ;;  %3380 = vst [vmem:[%s5554_s23 + $0xb0] sm:$0xff] %v3045_v18  ;;  %v3043_v55 = vadd.f32 %v4016_v47, %v3027_v5  ;;  %v3033_v25 = vmul.f32 %v3922_v50, %v5367_v15  ;;  %v4019_v15 = vld [vmem:[%s4362_s28 + $0xd8] sm:$0xff] }
 0x9cd   : > { %v3926_v62 = vpop.eup %3925  ;;  %3381 = vst [vmem:[%s5554_s23 + $0xb8] sm:$0xff] %v3046_v57  ;;  %v3044_v1 = vadd.f32 %v4017_v30, %v3028_v12  ;;  %v3034_v60 = vmul.f32 %v3924_v35, %v5372_v4  ;;  %v4020_v4 = vld [vmem:[%s4362_s28 + $0xc0] sm:$0xff] }
 0x9ce   : > { %v3928_v48 = vpop.eup %3927  ;;  %3378 = vst [vmem:[%s5554_s23 + $0xa0] sm:$0xff] %v3043_v55  ;;  %v3049_v24 = vadd.f32 %v4018_v10, %v3033_v25  ;;  %v3031_v32 = vmul.f32 %v3926_v62, %v5377_v16  ;;  %v4021_v16 = vld [vmem:[%s4362_s28 + $0xc8] sm:$0xff] }
 0x9cf   : > { %v3930_v61 = vpop.eup %3929  ;;  %3379 = vst [vmem:[%s5554_s23 + $0xa8] sm:$0xff] %v3044_v1  ;;  %v3050_v19 = vadd.f32 %v4019_v15, %v3034_v60  ;;  %v3032_v34 = vmul.f32 %v3928_v48, %v5383_v40 }
 0x9d0   : > { %v3932_v27 = vpop.eup %3931  ;;  %3384 = vst [vmem:[%s5554_s23 + $0xd0] sm:$0xff] %v3049_v24  ;;  %v3047_v9 = vadd.f32 %v4020_v4, %v3031_v32  ;;  %v3037_v26 = vmul.f32 %v3930_v61, %v5351_v38 }
 0x9d1   : > { %v3934_v33 = vpop.eup %3933  ;;  %3385 = vst [vmem:[%s5554_s23 + $0xd8] sm:$0xff] %v3050_v19  ;;  %v3048_v54 = vadd.f32 %v4021_v16, %v3032_v34  ;;  %v3038_v39 = vmul.f32 %v3932_v27, %v5355_v44  ;;  %v4024_v44 = vld [vmem:[%s4362_s28 + $0xe0] sm:$0xff] }
 0x9d2   : > { %v3936_v40 = vpop.eup %3935  ;;  %3382 = vst [vmem:[%s5554_s23 + $0xc0] sm:$0xff] %v3047_v9  ;;  %v3053_v2 = vadd.f32 %v4022_v21, %v3037_v26  ;;  %v3035_v38 = vmul.f32 %v3934_v33, %v5359_v6  ;;  %v4025_v6 = vld [vmem:[%s4362_s28 + $0xe8] sm:$0xff] }
 0x9d3   : > { %3383 = vst [vmem:[%s5554_s23 + $0xc8] sm:$0xff] %v3048_v54  ;;  %v3054_v41 = vadd.f32 %v4023_v42, %v3038_v39  ;;  %v3036_v56 = vmul.f32 %v3936_v40, %v5363_v59 }
 0x9d4   : > { %3388 = vst [vmem:[%s5554_s23 + $0xf0] sm:$0xff] %v3053_v2  ;;  %v3051_v22 = vadd.f32 %v4024_v44, %v3035_v38 }
 0x9d5   : > { %3389 = vst [vmem:[%s5554_s23 + $0xf8] sm:$0xff] %v3054_v41  ;;  %v3052_v46 = vadd.f32 %v4025_v6, %v3036_v56 }
 0x9d6   : > { %3386 = vst [vmem:[%s5554_s23 + $0xe0] sm:$0xff] %v3051_v22 }
 0x9d7   : > { %3387 = vst [vmem:[%s5554_s23 + $0xe8] sm:$0xff] %v3052_v46 }
 0x9d8   : > { %4095 = shalt.err (!%p4092_p4)
}
 0x9d9   : > { %s4096_s28 = scalar_lea.hbm %s5765_s14, 4096  ;;  %s4100_s12 = scalar_lea.hbm %s5819_s5, 8192 }
 0x9da   : > { %p4097_p9 = scmp.ne.s32.totalorder %s5765_s14, %s4096_s28  ;;  %p4101_p5 = scmp.lt.s32.totalorder %s5765_s14, %s5819_s5 }
 0x9db   : > { %p4102_p8 = scmp.lt.s32.totalorder %s4100_s12, %s4096_s28 }
 0x9dc   : > { %p4098_p11 = pnand %p4097_p9, %p6064_p1 }
 0x9dd   : > { %p4103_p6 = por %p4102_p8, %p4101_p5 }
 0x9de   : > { %p4099_p3 = pneg %p4098_p11 }
 0x9e0   : > { %p4104_p13 = pnand %p4103_p6, %p4099_p3 }
 0x9e2   : > { %4107 = shalt.err (!%p4104_p13)
}
 0x9e3   : > { %s4159_s9 = smov 256   ;;  %s4160_s22 = smov 16  }
 0x9e4   : > { %3626 = dma.vmem_to_hbm [thread:$0]  (%p6064_p1), %s5767_s17, 4096, %s5765_s14, %s3073_s10, %s4159_s9, %s4159_s9, %s4160_s22  }
 0x9e5 PF: > { %s3102_s8 = sand.u32 1, %s4138_s18   ;;  %p6065_p12 = scmp.ne.s32.totalorder %s5900_s6, 0 }
 0x9e6   : > { %p6066_p7 = scmp.ge.s32.totalorder %s4150_s21, 2  ;;  %s3103_s26 = scalar_lea.sflag [#allocation4], %s3102_s8 }
 0x9e8   : > { %p3636_p10 = pnand %p6066_p7, %p6065_p12 }
 0x9ea   : > { %p3637_p0 = pneg %p3636_p10 }
 0x9ec   : > { %4133 = dma.done.wait (%p3637_p0), %s3103_s26, 4096  }
 0x9ed   : > { %4135 = vsyncadd (%p3637_p0), %s3103_s26, 4294963200  ;;  %p21_p2 = scmp.ge.s32.totalorder %s4216_s24, 4   ;;  %s6067_s18 = smov %s4142_s19 }
 0x9ee   : > { %s6068_s19 = smov %s4146_s20  ;;  %s6069_s20 = smov %s4228_s27 }
 0x9ef   : > { %s6070_s21 = smov %s4216_s24  ;;  %23 = sbr.rel (!%p21_p2) target bundleno = 7 (0x7), region = 101 }
 0x9f4   :  { %3108 = vsyncpa [#allocation3], 1 }
 0x9f5   :  { %3110 = vsyncpa [#allocation3 + $0x1], 1 }
 0x9f6   :  { %3111 = vsyncpa [#allocation6], 1 }
 0x9f7   :  { %3113 = vsyncpa [#allocation6 + $0x1], 1 }
 0x9f8   :  { %3114 = vsyncpa [#allocation4], 1 }
 0x9f9   :  { %3116 = vsyncpa [#allocation4 + $0x1], 1 }

</bundles_post_ra>
